<compile_context>
chip_gen: v7x
topology: tpu7x:2x2x1
jax: 0.10.0
libtpu: 0.0.40
codegen_flags: <defaults>
</compile_context>

<pallas_src>
import jax
import jax.numpy as jnp
import numpy as np
from jax.experimental import pallas as pl
from jax.experimental.pallas import tpu as pltpu


# ----------------------------- Pallas kernel -----------------------------

def _lenet_kernel(x_ref, g1_ref, b1_ref, s1_ref, t1_ref,
                  g2_ref, b2_ref, s2_ref, t2_ref,
                  wf1_ref, bf1_ref, wf2_ref, bf2_ref, out_ref):
    """Whole Net.forward for a small batch; all intermediates stay on-chip.

    Activation layouts (per batch element, all 2-D, channels minor):
      conv1 out r1 : (24, 240)  rows = oy, cols = ox*10 + co
      pool1  out p1: (12, 120)  rows = py, cols = px*10 + ci
      conv2 out r2 : (8, 160)   rows = oy, cols = ox*20 + co2
      pool2  out p2: (4, 80)    rows = qy, cols = qx*20 + co2
    """
    f32 = jnp.float32
    batch = out_ref.shape[0]

    def mm(a, b):
        return jnp.dot(a, b, preferred_element_type=f32)

    for b in range(batch):                      # static unroll over tiny batch
        xb = x_ref[b]                           # (28, 28)

        # conv1 (5x5, 1->10) as 5 accumulated matmuls against g1[dy], + bias, ReLU
        acc1 = mm(xb[0:24, :], g1_ref[0])
        for dy in range(1, 5):
            acc1 = acc1 + mm(xb[dy:dy + 24, :], g1_ref[dy])
        r1 = jnp.maximum(acc1 + b1_ref[...], 0.0)            # (24, 240)

        # 2x2 max-pool: row pairs via selection matmuls, then column pairs
        rp1 = jnp.maximum(mm(s1_ref[0], r1), mm(s1_ref[1], r1))     # (12, 240)
        p1 = jnp.maximum(mm(rp1, t1_ref[0]), mm(rp1, t1_ref[1]))    # (12, 120)

        # conv2 (5x5, 10->20) + bias + ReLU
        acc2 = mm(p1[0:8, :], g2_ref[0])
        for dy in range(1, 5):
            acc2 = acc2 + mm(p1[dy:dy + 8, :], g2_ref[dy])
        r2 = jnp.maximum(acc2 + b2_ref[...], 0.0)            # (8, 160)

        # 2x2 max-pool
        rp2 = jnp.maximum(mm(s2_ref[0], r2), mm(s2_ref[1], r2))     # (4, 160)
        p2 = jnp.maximum(mm(rp2, t2_ref[0]), mm(rp2, t2_ref[1]))    # (4, 80)

        # flatten (PyTorch C,H,W order folded into wf1) + fc1 + fc2 (no ReLU,
        # matching the reference nn.Sequential(Linear, Linear))
        h = bf1_ref[...]                                      # (1, 50)
        for qy in range(4):
            h = h + mm(p2[qy:qy + 1, :], wf1_ref[qy])
        out_b = mm(h, wf2_ref[...]) + bf2_ref[...]            # (1, 10)

        out_ref[pl.ds(b, 1), :] = out_b


# ----------------------------- wrapper -----------------------------

def _full_spec(shape):
    n = len(shape)
    return pl.BlockSpec(shape, lambda i, _n=n: (0,) * _n)


def net_forward(x, prepped):
    """Equivalent of Net.forward.  x: (B, 1, 28, 28) float32 -> (B, 10)."""
    g1, b1r, s1, t1, g2, b2r, s2, t2, wf1s, bf1r, wf2t, bf2r = prepped
    B = x.shape[0]
    xr = x.reshape(B, 28, 28)                    # drop the singleton channel
    args = (xr, g1, b1r, s1, t1, g2, b2r, s2, t2, wf1s, bf1r, wf2t, bf2r)
    return pl.pallas_call(
        _lenet_kernel,
        out_shape=jax.ShapeDtypeStruct((B, 10), jnp.float32),
        grid=(1,),
        in_specs=[_full_spec(a.shape) for a in args],
        out_specs=_full_spec((B, 10)),
        compiler_params=pltpu.CompilerParams(
            dimension_semantics=("arbitrary",)),
    )(*args)


# --------------------- host-side one-time weight prep ---------------------

def prepare_params(params):
    """Fold im2col, pooling selection and flatten reorder into constant matrices.

    Done once on the host (outside the per-forward path); the kernel then only
    does plain 2-D matmuls against these.
    """
    w1, b1, w2, b2, wf1, bf1, wf2, bf2 = [np.asarray(p, np.float32) for p in params]

    # conv1: g1[dy, w, ox*10+co] = w1[co, 0, dy, w-ox]  (0 <= w-ox < 5)
    g1 = np.zeros((5, 28, 24 * 10), np.float32)
    for dy in range(5):
        for dx in range(5):
            for ox in range(24):
                g1[dy, ox + dx, ox * 10:(ox + 1) * 10] = w1[:, 0, dy, dx]
    b1r = np.tile(b1, 24)[None, :]                       # (1, 240)

    # conv2: g2[dy, px*10+ci, ox*20+co2] = w2[co2, ci, dy, px-ox]
    g2 = np.zeros((5, 12 * 10, 8 * 20), np.float32)
    for dy in range(5):
        for dx in range(5):
            for ox in range(8):
                px = ox + dx
                g2[dy, px * 10:(px + 1) * 10, ox * 20:(ox + 1) * 20] = w2[:, :, dy, dx].T
    b2r = np.tile(b2, 8)[None, :]                        # (1, 160)

    def pool_row_sel(n):            # (2, n, 2n): pick even / odd rows
        s = np.zeros((2, n, 2 * n), np.float32)
        for p in range(n):
            s[0, p, 2 * p] = 1.0
            s[1, p, 2 * p + 1] = 1.0
        return s

    def pool_col_sel(nblk, c):      # (2, 2*nblk*c, nblk*c): pick even/odd col blocks
        t = np.zeros((2, 2 * nblk * c, nblk * c), np.float32)
        for px in range(nblk):
            for ch in range(c):
                t[0, (2 * px) * c + ch, px * c + ch] = 1.0
                t[1, (2 * px + 1) * c + ch, px * c + ch] = 1.0
        return t

    s1 = pool_row_sel(12)           # (2, 12, 24)
    t1 = pool_col_sel(12, 10)       # (2, 240, 120)
    s2 = pool_row_sel(4)            # (2, 4, 8)
    t2 = pool_col_sel(4, 20)        # (2, 160, 80)

    # fc1 with the PyTorch (C, H, W) flatten order folded in:
    #   wf1s[qy, qx*20+co2, j] = wf1[j, co2*16 + qy*4 + qx]
    wf1s = np.ascontiguousarray(
        np.transpose(wf1.reshape(50, 20, 4, 4), (2, 3, 1, 0)).reshape(4, 80, 50)
    ).astype(np.float32)
    bf1r = bf1[None, :]             # (1, 50)
    wf2t = np.ascontiguousarray(wf2.T)   # (50, 10)
    bf2r = bf2[None, :]             # (1, 10)

    out = (g1, b1r, s1, t1, g2, b2r, s2, t2, wf1s, bf1r, wf2t, bf2r)
    return tuple(jnp.asarray(a) for a in out)


# ----------------------------- params / reference -----------------------------

def init_params(key):
    """PyTorch-default-style U(-1/sqrt(fan_in), 1/sqrt(fan_in)) init."""
    ks = jax.random.split(key, 8)

    def u(k, shape, fan_in):
        bound = 1.0 / np.sqrt(fan_in)
        return jax.random.uniform(k, shape, jnp.float32, -bound, bound)

    w_c1 = u(ks[0], (10, 1, 5, 5), 25)
    b_c1 = u(ks[1], (10,), 25)
    w_c2 = u(ks[2], (20, 10, 5, 5), 250)
    b_c2 = u(ks[3], (20,), 250)
    w_f1 = u(ks[4], (50, 320), 320)
    b_f1 = u(ks[5], (50,), 320)
    w_f2 = u(ks[6], (10, 50), 50)
    b_f2 = u(ks[7], (10,), 50)
    return (w_c1, b_c1, w_c2, b_c2, w_f1, b_f1, w_f2, b_f2)


def reference_forward(x, params):
    """Pure-JAX reference matching the PyTorch Net.forward semantics."""
    w1, b1, w2, b2, wf1, bf1, wf2, bf2 = params
    dn = ('NCHW', 'OIHW', 'NCHW')
    y = jax.lax.conv_general_dilated(x, w1, (1, 1), 'VALID', dimension_numbers=dn)
    y = jax.nn.relu(y + b1.reshape(1, -1, 1, 1))
    y = jax.lax.reduce_window(y, -jnp.inf, jax.lax.max,
                              (1, 1, 2, 2), (1, 1, 2, 2), 'VALID')
    y = jax.lax.conv_general_dilated(y, w2, (1, 1), 'VALID', dimension_numbers=dn)
    y = jax.nn.relu(y + b2.reshape(1, -1, 1, 1))
    y = jax.lax.reduce_window(y, -jnp.inf, jax.lax.max,
                              (1, 1, 2, 2), (1, 1, 2, 2), 'VALID')
    y = y.reshape(x.shape[0], -1)
    y = y @ wf1.T + bf1
    y = y @ wf2.T + bf2
    return y


# ----------------------------- main -----------------------------

if __name__ == "__main__":
    key = jax.random.PRNGKey(0)
    k_param, k_x = jax.random.split(key)
    params = init_params(k_param)
    prepped = prepare_params(params)

    # Input shape implied by the 320-dim flatten: (B, 1, 28, 28)
    x = jax.random.normal(k_x, (2, 1, 28, 28), dtype=jnp.float32)

    fwd = jax.jit(net_forward)
    out = jax.block_until_ready(fwd(x, prepped))
    assert out.shape == (2, 10) and out.dtype == jnp.float32

    ref = jax.block_until_ready(reference_forward(x, params))
    assert jnp.allclose(out, ref, atol=1e-2, rtol=1e-2), (
        f"mismatch vs reference: max abs diff = {float(jnp.max(jnp.abs(out - ref)))}")

    print("KERNEL_OK")
</pallas_src>

<mosaic_0001>
module attributes {stable_mosaic.version = 11 : i64} {
  func.func @_lenet_kernel(%arg0: i32, %arg1: memref<2x28x28xf32, #tpu.memory_space<vmem>>, %arg2: memref<5x28x240xf32, #tpu.memory_space<vmem>>, %arg3: memref<1x240xf32, #tpu.memory_space<vmem>>, %arg4: memref<2x12x24xf32, #tpu.memory_space<vmem>>, %arg5: memref<2x240x120xf32, #tpu.memory_space<vmem>>, %arg6: memref<5x120x160xf32, #tpu.memory_space<vmem>>, %arg7: memref<1x160xf32, #tpu.memory_space<vmem>>, %arg8: memref<2x4x8xf32, #tpu.memory_space<vmem>>, %arg9: memref<2x160x80xf32, #tpu.memory_space<vmem>>, %arg10: memref<4x80x50xf32, #tpu.memory_space<vmem>>, %arg11: memref<1x50xf32, #tpu.memory_space<vmem>>, %arg12: memref<50x10xf32, #tpu.memory_space<vmem>>, %arg13: memref<1x10xf32, #tpu.memory_space<vmem>>, %arg14: memref<2x10xf32, #tpu.memory_space<vmem>>) attributes {dimension_semantics = [#tpu.dimension_semantics<arbitrary>], iteration_bounds = array<i64: 1>, scalar_prefetch = 0 : i64, scratch_operands = 0 : i64, tpu.core_type = #tpu.core_type<tc>, window_params = [{pipeline_mode = #tpu.pipeline_mode<synchronous>, transform_indices = @transform_0, window_bounds = array<i64: 2, 28, 28>}, {pipeline_mode = #tpu.pipeline_mode<synchronous>, transform_indices = @transform_1, window_bounds = array<i64: 5, 28, 240>}, {pipeline_mode = #tpu.pipeline_mode<synchronous>, transform_indices = @transform_2, window_bounds = array<i64: 1, 240>}, {pipeline_mode = #tpu.pipeline_mode<synchronous>, transform_indices = @transform_3, window_bounds = array<i64: 2, 12, 24>}, {pipeline_mode = #tpu.pipeline_mode<synchronous>, transform_indices = @transform_4, window_bounds = array<i64: 2, 240, 120>}, {pipeline_mode = #tpu.pipeline_mode<synchronous>, transform_indices = @transform_5, window_bounds = array<i64: 5, 120, 160>}, {pipeline_mode = #tpu.pipeline_mode<synchronous>, transform_indices = @transform_6, window_bounds = array<i64: 1, 160>}, {pipeline_mode = #tpu.pipeline_mode<synchronous>, transform_indices = @transform_7, window_bounds = array<i64: 2, 4, 8>}, {pipeline_mode = #tpu.pipeline_mode<synchronous>, transform_indices = @transform_8, window_bounds = array<i64: 2, 160, 80>}, {pipeline_mode = #tpu.pipeline_mode<synchronous>, transform_indices = @transform_9, window_bounds = array<i64: 4, 80, 50>}, {pipeline_mode = #tpu.pipeline_mode<synchronous>, transform_indices = @transform_10, window_bounds = array<i64: 1, 50>}, {pipeline_mode = #tpu.pipeline_mode<synchronous>, transform_indices = @transform_11, window_bounds = array<i64: 50, 10>}, {pipeline_mode = #tpu.pipeline_mode<synchronous>, transform_indices = @transform_12, window_bounds = array<i64: 1, 10>}, {pipeline_mode = #tpu.pipeline_mode<synchronous>, transform_indices = @transform_13, window_bounds = array<i64: 2, 10>}]} {
    %c0 = arith.constant 0 : index
    %c0_0 = arith.constant 0 : index
    %c0_1 = arith.constant 0 : index
    %0 = vector.load %arg1[%c0, %c0_0, %c0_1] : memref<2x28x28xf32, #tpu.memory_space<vmem>>, vector<1x28x28xf32>
    %1 = vector.shape_cast %0 : vector<1x28x28xf32> to vector<28x28xf32>
    %2 = vector.extract_strided_slice %1 {offsets = [0, 0], sizes = [24, 28], strides = [1, 1]} : vector<28x28xf32> to vector<24x28xf32>
    %c0_2 = arith.constant 0 : index
    %c0_3 = arith.constant 0 : index
    %c0_4 = arith.constant 0 : index
    %3 = vector.load %arg2[%c0_2, %c0_3, %c0_4] : memref<5x28x240xf32, #tpu.memory_space<vmem>>, vector<1x28x240xf32>
    %4 = vector.shape_cast %3 : vector<1x28x240xf32> to vector<28x240xf32>
    %cst = arith.constant dense<0.000000e+00> : vector<24x240xf32>
    %5 = tpu.matmul %2, %4, %cst {dimension_numbers = #tpu.dot_dimension_numbers<[1], [0], [0], [1], [0, 0, 1, 1], [], []>} : vector<24x28xf32>, vector<28x240xf32>, vector<24x240xf32> -> vector<24x240xf32>
    %6 = vector.extract_strided_slice %1 {offsets = [1, 0], sizes = [24, 28], strides = [1, 1]} : vector<28x28xf32> to vector<24x28xf32>
    %c1 = arith.constant 1 : index
    %c0_5 = arith.constant 0 : index
    %c0_6 = arith.constant 0 : index
    %7 = vector.load %arg2[%c1, %c0_5, %c0_6] : memref<5x28x240xf32, #tpu.memory_space<vmem>>, vector<1x28x240xf32>
    %8 = vector.shape_cast %7 : vector<1x28x240xf32> to vector<28x240xf32>
    %cst_7 = arith.constant dense<0.000000e+00> : vector<24x240xf32>
    %9 = tpu.matmul %6, %8, %cst_7 {dimension_numbers = #tpu.dot_dimension_numbers<[1], [0], [0], [1], [0, 0, 1, 1], [], []>} : vector<24x28xf32>, vector<28x240xf32>, vector<24x240xf32> -> vector<24x240xf32>
    %10 = arith.addf %5, %9 : vector<24x240xf32>
    %11 = vector.extract_strided_slice %1 {offsets = [2, 0], sizes = [24, 28], strides = [1, 1]} : vector<28x28xf32> to vector<24x28xf32>
    %c2 = arith.constant 2 : index
    %c0_8 = arith.constant 0 : index
    %c0_9 = arith.constant 0 : index
    %12 = vector.load %arg2[%c2, %c0_8, %c0_9] : memref<5x28x240xf32, #tpu.memory_space<vmem>>, vector<1x28x240xf32>
    %13 = vector.shape_cast %12 : vector<1x28x240xf32> to vector<28x240xf32>
    %cst_10 = arith.constant dense<0.000000e+00> : vector<24x240xf32>
    %14 = tpu.matmul %11, %13, %cst_10 {dimension_numbers = #tpu.dot_dimension_numbers<[1], [0], [0], [1], [0, 0, 1, 1], [], []>} : vector<24x28xf32>, vector<28x240xf32>, vector<24x240xf32> -> vector<24x240xf32>
    %15 = arith.addf %10, %14 : vector<24x240xf32>
    %16 = vector.extract_strided_slice %1 {offsets = [3, 0], sizes = [24, 28], strides = [1, 1]} : vector<28x28xf32> to vector<24x28xf32>
    %c3 = arith.constant 3 : index
    %c0_11 = arith.constant 0 : index
    %c0_12 = arith.constant 0 : index
    %17 = vector.load %arg2[%c3, %c0_11, %c0_12] : memref<5x28x240xf32, #tpu.memory_space<vmem>>, vector<1x28x240xf32>
    %18 = vector.shape_cast %17 : vector<1x28x240xf32> to vector<28x240xf32>
    %cst_13 = arith.constant dense<0.000000e+00> : vector<24x240xf32>
    %19 = tpu.matmul %16, %18, %cst_13 {dimension_numbers = #tpu.dot_dimension_numbers<[1], [0], [0], [1], [0, 0, 1, 1], [], []>} : vector<24x28xf32>, vector<28x240xf32>, vector<24x240xf32> -> vector<24x240xf32>
    %20 = arith.addf %15, %19 : vector<24x240xf32>
    %21 = vector.extract_strided_slice %1 {offsets = [4, 0], sizes = [24, 28], strides = [1, 1]} : vector<28x28xf32> to vector<24x28xf32>
    %c4 = arith.constant 4 : index
    %c0_14 = arith.constant 0 : index
    %c0_15 = arith.constant 0 : index
    %22 = vector.load %arg2[%c4, %c0_14, %c0_15] : memref<5x28x240xf32, #tpu.memory_space<vmem>>, vector<1x28x240xf32>
    %23 = vector.shape_cast %22 : vector<1x28x240xf32> to vector<28x240xf32>
    %cst_16 = arith.constant dense<0.000000e+00> : vector<24x240xf32>
    %24 = tpu.matmul %21, %23, %cst_16 {dimension_numbers = #tpu.dot_dimension_numbers<[1], [0], [0], [1], [0, 0, 1, 1], [], []>} : vector<24x28xf32>, vector<28x240xf32>, vector<24x240xf32> -> vector<24x240xf32>
    %25 = arith.addf %20, %24 : vector<24x240xf32>
    %c0_17 = arith.constant 0 : index
    %c0_18 = arith.constant 0 : index
    %26 = vector.load %arg3[%c0_17, %c0_18] : memref<1x240xf32, #tpu.memory_space<vmem>>, vector<1x240xf32>
    %27 = vector.broadcast %26 : vector<1x240xf32> to vector<24x240xf32>
    %28 = arith.addf %25, %27 : vector<24x240xf32>
    %cst_19 = arith.constant 0.000000e+00 : f32
    %29 = vector.broadcast %cst_19 : f32 to vector<24x240xf32>
    %30 = arith.maximumf %28, %29 : vector<24x240xf32>
    %c0_20 = arith.constant 0 : index
    %c0_21 = arith.constant 0 : index
    %c0_22 = arith.constant 0 : index
    %31 = vector.load %arg4[%c0_20, %c0_21, %c0_22] : memref<2x12x24xf32, #tpu.memory_space<vmem>>, vector<1x12x24xf32>
    %32 = vector.shape_cast %31 : vector<1x12x24xf32> to vector<12x24xf32>
    %cst_23 = arith.constant dense<0.000000e+00> : vector<12x240xf32>
    %33 = tpu.matmul %32, %30, %cst_23 {dimension_numbers = #tpu.dot_dimension_numbers<[1], [0], [0], [1], [0, 0, 1, 1], [], []>} : vector<12x24xf32>, vector<24x240xf32>, vector<12x240xf32> -> vector<12x240xf32>
    %c1_24 = arith.constant 1 : index
    %c0_25 = arith.constant 0 : index
    %c0_26 = arith.constant 0 : index
    %34 = vector.load %arg4[%c1_24, %c0_25, %c0_26] : memref<2x12x24xf32, #tpu.memory_space<vmem>>, vector<1x12x24xf32>
    %35 = vector.shape_cast %34 : vector<1x12x24xf32> to vector<12x24xf32>
    %cst_27 = arith.constant dense<0.000000e+00> : vector<12x240xf32>
    %36 = tpu.matmul %35, %30, %cst_27 {dimension_numbers = #tpu.dot_dimension_numbers<[1], [0], [0], [1], [0, 0, 1, 1], [], []>} : vector<12x24xf32>, vector<24x240xf32>, vector<12x240xf32> -> vector<12x240xf32>
    %37 = arith.maximumf %33, %36 : vector<12x240xf32>
    %c0_28 = arith.constant 0 : index
    %c0_29 = arith.constant 0 : index
    %c0_30 = arith.constant 0 : index
    %38 = vector.load %arg5[%c0_28, %c0_29, %c0_30] : memref<2x240x120xf32, #tpu.memory_space<vmem>>, vector<1x240x120xf32>
    %39 = vector.shape_cast %38 : vector<1x240x120xf32> to vector<240x120xf32>
    %cst_31 = arith.constant dense<0.000000e+00> : vector<12x120xf32>
    %40 = tpu.matmul %37, %39, %cst_31 {dimension_numbers = #tpu.dot_dimension_numbers<[1], [0], [0], [1], [0, 0, 1, 1], [], []>} : vector<12x240xf32>, vector<240x120xf32>, vector<12x120xf32> -> vector<12x120xf32>
    %c1_32 = arith.constant 1 : index
    %c0_33 = arith.constant 0 : index
    %c0_34 = arith.constant 0 : index
    %41 = vector.load %arg5[%c1_32, %c0_33, %c0_34] : memref<2x240x120xf32, #tpu.memory_space<vmem>>, vector<1x240x120xf32>
    %42 = vector.shape_cast %41 : vector<1x240x120xf32> to vector<240x120xf32>
    %cst_35 = arith.constant dense<0.000000e+00> : vector<12x120xf32>
    %43 = tpu.matmul %37, %42, %cst_35 {dimension_numbers = #tpu.dot_dimension_numbers<[1], [0], [0], [1], [0, 0, 1, 1], [], []>} : vector<12x240xf32>, vector<240x120xf32>, vector<12x120xf32> -> vector<12x120xf32>
    %44 = arith.maximumf %40, %43 : vector<12x120xf32>
    %45 = vector.extract_strided_slice %44 {offsets = [0, 0], sizes = [8, 120], strides = [1, 1]} : vector<12x120xf32> to vector<8x120xf32>
    %c0_36 = arith.constant 0 : index
    %c0_37 = arith.constant 0 : index
    %c0_38 = arith.constant 0 : index
    %46 = vector.load %arg6[%c0_36, %c0_37, %c0_38] : memref<5x120x160xf32, #tpu.memory_space<vmem>>, vector<1x120x160xf32>
    %47 = vector.shape_cast %46 : vector<1x120x160xf32> to vector<120x160xf32>
    %cst_39 = arith.constant dense<0.000000e+00> : vector<8x160xf32>
    %48 = tpu.matmul %45, %47, %cst_39 {dimension_numbers = #tpu.dot_dimension_numbers<[1], [0], [0], [1], [0, 0, 1, 1], [], []>} : vector<8x120xf32>, vector<120x160xf32>, vector<8x160xf32> -> vector<8x160xf32>
    %49 = vector.extract_strided_slice %44 {offsets = [1, 0], sizes = [8, 120], strides = [1, 1]} : vector<12x120xf32> to vector<8x120xf32>
    %c1_40 = arith.constant 1 : index
    %c0_41 = arith.constant 0 : index
    %c0_42 = arith.constant 0 : index
    %50 = vector.load %arg6[%c1_40, %c0_41, %c0_42] : memref<5x120x160xf32, #tpu.memory_space<vmem>>, vector<1x120x160xf32>
    %51 = vector.shape_cast %50 : vector<1x120x160xf32> to vector<120x160xf32>
    %cst_43 = arith.constant dense<0.000000e+00> : vector<8x160xf32>
    %52 = tpu.matmul %49, %51, %cst_43 {dimension_numbers = #tpu.dot_dimension_numbers<[1], [0], [0], [1], [0, 0, 1, 1], [], []>} : vector<8x120xf32>, vector<120x160xf32>, vector<8x160xf32> -> vector<8x160xf32>
    %53 = arith.addf %48, %52 : vector<8x160xf32>
    %54 = vector.extract_strided_slice %44 {offsets = [2, 0], sizes = [8, 120], strides = [1, 1]} : vector<12x120xf32> to vector<8x120xf32>
    %c2_44 = arith.constant 2 : index
    %c0_45 = arith.constant 0 : index
    %c0_46 = arith.constant 0 : index
    %55 = vector.load %arg6[%c2_44, %c0_45, %c0_46] : memref<5x120x160xf32, #tpu.memory_space<vmem>>, vector<1x120x160xf32>
    %56 = vector.shape_cast %55 : vector<1x120x160xf32> to vector<120x160xf32>
    %cst_47 = arith.constant dense<0.000000e+00> : vector<8x160xf32>
    %57 = tpu.matmul %54, %56, %cst_47 {dimension_numbers = #tpu.dot_dimension_numbers<[1], [0], [0], [1], [0, 0, 1, 1], [], []>} : vector<8x120xf32>, vector<120x160xf32>, vector<8x160xf32> -> vector<8x160xf32>
    %58 = arith.addf %53, %57 : vector<8x160xf32>
    %59 = vector.extract_strided_slice %44 {offsets = [3, 0], sizes = [8, 120], strides = [1, 1]} : vector<12x120xf32> to vector<8x120xf32>
    %c3_48 = arith.constant 3 : index
    %c0_49 = arith.constant 0 : index
    %c0_50 = arith.constant 0 : index
    %60 = vector.load %arg6[%c3_48, %c0_49, %c0_50] : memref<5x120x160xf32, #tpu.memory_space<vmem>>, vector<1x120x160xf32>
    %61 = vector.shape_cast %60 : vector<1x120x160xf32> to vector<120x160xf32>
    %cst_51 = arith.constant dense<0.000000e+00> : vector<8x160xf32>
    %62 = tpu.matmul %59, %61, %cst_51 {dimension_numbers = #tpu.dot_dimension_numbers<[1], [0], [0], [1], [0, 0, 1, 1], [], []>} : vector<8x120xf32>, vector<120x160xf32>, vector<8x160xf32> -> vector<8x160xf32>
    %63 = arith.addf %58, %62 : vector<8x160xf32>
    %64 = vector.extract_strided_slice %44 {offsets = [4, 0], sizes = [8, 120], strides = [1, 1]} : vector<12x120xf32> to vector<8x120xf32>
    %c4_52 = arith.constant 4 : index
    %c0_53 = arith.constant 0 : index
    %c0_54 = arith.constant 0 : index
    %65 = vector.load %arg6[%c4_52, %c0_53, %c0_54] : memref<5x120x160xf32, #tpu.memory_space<vmem>>, vector<1x120x160xf32>
    %66 = vector.shape_cast %65 : vector<1x120x160xf32> to vector<120x160xf32>
    %cst_55 = arith.constant dense<0.000000e+00> : vector<8x160xf32>
    %67 = tpu.matmul %64, %66, %cst_55 {dimension_numbers = #tpu.dot_dimension_numbers<[1], [0], [0], [1], [0, 0, 1, 1], [], []>} : vector<8x120xf32>, vector<120x160xf32>, vector<8x160xf32> -> vector<8x160xf32>
    %68 = arith.addf %63, %67 : vector<8x160xf32>
    %c0_56 = arith.constant 0 : index
    %c0_57 = arith.constant 0 : index
    %69 = vector.load %arg7[%c0_56, %c0_57] : memref<1x160xf32, #tpu.memory_space<vmem>>, vector<1x160xf32>
    %70 = vector.broadcast %69 : vector<1x160xf32> to vector<8x160xf32>
    %71 = arith.addf %68, %70 : vector<8x160xf32>
    %cst_58 = arith.constant 0.000000e+00 : f32
    %72 = vector.broadcast %cst_58 : f32 to vector<8x160xf32>
    %73 = arith.maximumf %71, %72 : vector<8x160xf32>
    %c0_59 = arith.constant 0 : index
    %c0_60 = arith.constant 0 : index
    %c0_61 = arith.constant 0 : index
    %74 = vector.load %arg8[%c0_59, %c0_60, %c0_61] : memref<2x4x8xf32, #tpu.memory_space<vmem>>, vector<1x4x8xf32>
    %75 = vector.shape_cast %74 : vector<1x4x8xf32> to vector<4x8xf32>
    %cst_62 = arith.constant dense<0.000000e+00> : vector<4x160xf32>
    %76 = tpu.matmul %75, %73, %cst_62 {dimension_numbers = #tpu.dot_dimension_numbers<[1], [0], [0], [1], [0, 0, 1, 1], [], []>} : vector<4x8xf32>, vector<8x160xf32>, vector<4x160xf32> -> vector<4x160xf32>
    %c1_63 = arith.constant 1 : index
    %c0_64 = arith.constant 0 : index
    %c0_65 = arith.constant 0 : index
    %77 = vector.load %arg8[%c1_63, %c0_64, %c0_65] : memref<2x4x8xf32, #tpu.memory_space<vmem>>, vector<1x4x8xf32>
    %78 = vector.shape_cast %77 : vector<1x4x8xf32> to vector<4x8xf32>
    %cst_66 = arith.constant dense<0.000000e+00> : vector<4x160xf32>
    %79 = tpu.matmul %78, %73, %cst_66 {dimension_numbers = #tpu.dot_dimension_numbers<[1], [0], [0], [1], [0, 0, 1, 1], [], []>} : vector<4x8xf32>, vector<8x160xf32>, vector<4x160xf32> -> vector<4x160xf32>
    %80 = arith.maximumf %76, %79 : vector<4x160xf32>
    %c0_67 = arith.constant 0 : index
    %c0_68 = arith.constant 0 : index
    %c0_69 = arith.constant 0 : index
    %81 = vector.load %arg9[%c0_67, %c0_68, %c0_69] : memref<2x160x80xf32, #tpu.memory_space<vmem>>, vector<1x160x80xf32>
    %82 = vector.shape_cast %81 : vector<1x160x80xf32> to vector<160x80xf32>
    %cst_70 = arith.constant dense<0.000000e+00> : vector<4x80xf32>
    %83 = tpu.matmul %80, %82, %cst_70 {dimension_numbers = #tpu.dot_dimension_numbers<[1], [0], [0], [1], [0, 0, 1, 1], [], []>} : vector<4x160xf32>, vector<160x80xf32>, vector<4x80xf32> -> vector<4x80xf32>
    %c1_71 = arith.constant 1 : index
    %c0_72 = arith.constant 0 : index
    %c0_73 = arith.constant 0 : index
    %84 = vector.load %arg9[%c1_71, %c0_72, %c0_73] : memref<2x160x80xf32, #tpu.memory_space<vmem>>, vector<1x160x80xf32>
    %85 = vector.shape_cast %84 : vector<1x160x80xf32> to vector<160x80xf32>
    %cst_74 = arith.constant dense<0.000000e+00> : vector<4x80xf32>
    %86 = tpu.matmul %80, %85, %cst_74 {dimension_numbers = #tpu.dot_dimension_numbers<[1], [0], [0], [1], [0, 0, 1, 1], [], []>} : vector<4x160xf32>, vector<160x80xf32>, vector<4x80xf32> -> vector<4x80xf32>
    %87 = arith.maximumf %83, %86 : vector<4x80xf32>
    %c0_75 = arith.constant 0 : index
    %c0_76 = arith.constant 0 : index
    %88 = vector.load %arg11[%c0_75, %c0_76] : memref<1x50xf32, #tpu.memory_space<vmem>>, vector<1x50xf32>
    %89 = vector.extract_strided_slice %87 {offsets = [0, 0], sizes = [1, 80], strides = [1, 1]} : vector<4x80xf32> to vector<1x80xf32>
    %c0_77 = arith.constant 0 : index
    %c0_78 = arith.constant 0 : index
    %c0_79 = arith.constant 0 : index
    %90 = vector.load %arg10[%c0_77, %c0_78, %c0_79] : memref<4x80x50xf32, #tpu.memory_space<vmem>>, vector<1x80x50xf32>
    %91 = vector.shape_cast %90 : vector<1x80x50xf32> to vector<80x50xf32>
    %cst_80 = arith.constant dense<0.000000e+00> : vector<1x50xf32>
    %92 = tpu.matmul %89, %91, %cst_80 {dimension_numbers = #tpu.dot_dimension_numbers<[1], [0], [0], [1], [0, 0, 1, 1], [], []>} : vector<1x80xf32>, vector<80x50xf32>, vector<1x50xf32> -> vector<1x50xf32>
    %93 = arith.addf %88, %92 : vector<1x50xf32>
    %94 = vector.extract_strided_slice %87 {offsets = [1, 0], sizes = [1, 80], strides = [1, 1]} : vector<4x80xf32> to vector<1x80xf32>
    %c1_81 = arith.constant 1 : index
    %c0_82 = arith.constant 0 : index
    %c0_83 = arith.constant 0 : index
    %95 = vector.load %arg10[%c1_81, %c0_82, %c0_83] : memref<4x80x50xf32, #tpu.memory_space<vmem>>, vector<1x80x50xf32>
    %96 = vector.shape_cast %95 : vector<1x80x50xf32> to vector<80x50xf32>
    %cst_84 = arith.constant dense<0.000000e+00> : vector<1x50xf32>
    %97 = tpu.matmul %94, %96, %cst_84 {dimension_numbers = #tpu.dot_dimension_numbers<[1], [0], [0], [1], [0, 0, 1, 1], [], []>} : vector<1x80xf32>, vector<80x50xf32>, vector<1x50xf32> -> vector<1x50xf32>
    %98 = arith.addf %93, %97 : vector<1x50xf32>
    %99 = vector.extract_strided_slice %87 {offsets = [2, 0], sizes = [1, 80], strides = [1, 1]} : vector<4x80xf32> to vector<1x80xf32>
    %c2_85 = arith.constant 2 : index
    %c0_86 = arith.constant 0 : index
    %c0_87 = arith.constant 0 : index
    %100 = vector.load %arg10[%c2_85, %c0_86, %c0_87] : memref<4x80x50xf32, #tpu.memory_space<vmem>>, vector<1x80x50xf32>
    %101 = vector.shape_cast %100 : vector<1x80x50xf32> to vector<80x50xf32>
    %cst_88 = arith.constant dense<0.000000e+00> : vector<1x50xf32>
    %102 = tpu.matmul %99, %101, %cst_88 {dimension_numbers = #tpu.dot_dimension_numbers<[1], [0], [0], [1], [0, 0, 1, 1], [], []>} : vector<1x80xf32>, vector<80x50xf32>, vector<1x50xf32> -> vector<1x50xf32>
    %103 = arith.addf %98, %102 : vector<1x50xf32>
    %104 = vector.extract_strided_slice %87 {offsets = [3, 0], sizes = [1, 80], strides = [1, 1]} : vector<4x80xf32> to vector<1x80xf32>
    %c3_89 = arith.constant 3 : index
    %c0_90 = arith.constant 0 : index
    %c0_91 = arith.constant 0 : index
    %105 = vector.load %arg10[%c3_89, %c0_90, %c0_91] : memref<4x80x50xf32, #tpu.memory_space<vmem>>, vector<1x80x50xf32>
    %106 = vector.shape_cast %105 : vector<1x80x50xf32> to vector<80x50xf32>
    %cst_92 = arith.constant dense<0.000000e+00> : vector<1x50xf32>
    %107 = tpu.matmul %104, %106, %cst_92 {dimension_numbers = #tpu.dot_dimension_numbers<[1], [0], [0], [1], [0, 0, 1, 1], [], []>} : vector<1x80xf32>, vector<80x50xf32>, vector<1x50xf32> -> vector<1x50xf32>
    %108 = arith.addf %103, %107 : vector<1x50xf32>
    %c0_93 = arith.constant 0 : index
    %c0_94 = arith.constant 0 : index
    %109 = vector.load %arg12[%c0_93, %c0_94] : memref<50x10xf32, #tpu.memory_space<vmem>>, vector<50x10xf32>
    %cst_95 = arith.constant dense<0.000000e+00> : vector<1x10xf32>
    %110 = tpu.matmul %108, %109, %cst_95 {dimension_numbers = #tpu.dot_dimension_numbers<[1], [0], [0], [1], [0, 0, 1, 1], [], []>} : vector<1x50xf32>, vector<50x10xf32>, vector<1x10xf32> -> vector<1x10xf32>
    %c0_96 = arith.constant 0 : index
    %c0_97 = arith.constant 0 : index
    %111 = vector.load %arg13[%c0_96, %c0_97] : memref<1x10xf32, #tpu.memory_space<vmem>>, vector<1x10xf32>
    %112 = arith.addf %110, %111 : vector<1x10xf32>
    %c0_98 = arith.constant 0 : index
    %c0_99 = arith.constant 0 : index
    %113 = vector.load %arg14[%c0_98, %c0_99] : memref<2x10xf32, #tpu.memory_space<vmem>>, vector<1x10xf32>
    tpu.vector_store %arg14[%c0_98, %c0_99], %112 {strides = array<i32>} : memref<2x10xf32, #tpu.memory_space<vmem>>, vector<1x10xf32>,
    %c1_100 = arith.constant 1 : index
    %c0_101 = arith.constant 0 : index
    %c0_102 = arith.constant 0 : index
    %114 = vector.load %arg1[%c1_100, %c0_101, %c0_102] : memref<2x28x28xf32, #tpu.memory_space<vmem>>, vector<1x28x28xf32>
    %115 = vector.shape_cast %114 : vector<1x28x28xf32> to vector<28x28xf32>
    %116 = vector.extract_strided_slice %115 {offsets = [0, 0], sizes = [24, 28], strides = [1, 1]} : vector<28x28xf32> to vector<24x28xf32>
    %c0_103 = arith.constant 0 : index
    %c0_104 = arith.constant 0 : index
    %c0_105 = arith.constant 0 : index
    %117 = vector.load %arg2[%c0_103, %c0_104, %c0_105] : memref<5x28x240xf32, #tpu.memory_space<vmem>>, vector<1x28x240xf32>
    %118 = vector.shape_cast %117 : vector<1x28x240xf32> to vector<28x240xf32>
    %cst_106 = arith.constant dense<0.000000e+00> : vector<24x240xf32>
    %119 = tpu.matmul %116, %118, %cst_106 {dimension_numbers = #tpu.dot_dimension_numbers<[1], [0], [0], [1], [0, 0, 1, 1], [], []>} : vector<24x28xf32>, vector<28x240xf32>, vector<24x240xf32> -> vector<24x240xf32>
    %120 = vector.extract_strided_slice %115 {offsets = [1, 0], sizes = [24, 28], strides = [1, 1]} : vector<28x28xf32> to vector<24x28xf32>
    %c1_107 = arith.constant 1 : index
    %c0_108 = arith.constant 0 : index
    %c0_109 = arith.constant 0 : index
    %121 = vector.load %arg2[%c1_107, %c0_108, %c0_109] : memref<5x28x240xf32, #tpu.memory_space<vmem>>, vector<1x28x240xf32>
    %122 = vector.shape_cast %121 : vector<1x28x240xf32> to vector<28x240xf32>
    %cst_110 = arith.constant dense<0.000000e+00> : vector<24x240xf32>
    %123 = tpu.matmul %120, %122, %cst_110 {dimension_numbers = #tpu.dot_dimension_numbers<[1], [0], [0], [1], [0, 0, 1, 1], [], []>} : vector<24x28xf32>, vector<28x240xf32>, vector<24x240xf32> -> vector<24x240xf32>
    %124 = arith.addf %119, %123 : vector<24x240xf32>
    %125 = vector.extract_strided_slice %115 {offsets = [2, 0], sizes = [24, 28], strides = [1, 1]} : vector<28x28xf32> to vector<24x28xf32>
    %c2_111 = arith.constant 2 : index
    %c0_112 = arith.constant 0 : index
    %c0_113 = arith.constant 0 : index
    %126 = vector.load %arg2[%c2_111, %c0_112, %c0_113] : memref<5x28x240xf32, #tpu.memory_space<vmem>>, vector<1x28x240xf32>
    %127 = vector.shape_cast %126 : vector<1x28x240xf32> to vector<28x240xf32>
    %cst_114 = arith.constant dense<0.000000e+00> : vector<24x240xf32>
    %128 = tpu.matmul %125, %127, %cst_114 {dimension_numbers = #tpu.dot_dimension_numbers<[1], [0], [0], [1], [0, 0, 1, 1], [], []>} : vector<24x28xf32>, vector<28x240xf32>, vector<24x240xf32> -> vector<24x240xf32>
    %129 = arith.addf %124, %128 : vector<24x240xf32>
    %130 = vector.extract_strided_slice %115 {offsets = [3, 0], sizes = [24, 28], strides = [1, 1]} : vector<28x28xf32> to vector<24x28xf32>
    %c3_115 = arith.constant 3 : index
    %c0_116 = arith.constant 0 : index
    %c0_117 = arith.constant 0 : index
    %131 = vector.load %arg2[%c3_115, %c0_116, %c0_117] : memref<5x28x240xf32, #tpu.memory_space<vmem>>, vector<1x28x240xf32>
    %132 = vector.shape_cast %131 : vector<1x28x240xf32> to vector<28x240xf32>
    %cst_118 = arith.constant dense<0.000000e+00> : vector<24x240xf32>
    %133 = tpu.matmul %130, %132, %cst_118 {dimension_numbers = #tpu.dot_dimension_numbers<[1], [0], [0], [1], [0, 0, 1, 1], [], []>} : vector<24x28xf32>, vector<28x240xf32>, vector<24x240xf32> -> vector<24x240xf32>
    %134 = arith.addf %129, %133 : vector<24x240xf32>
    %135 = vector.extract_strided_slice %115 {offsets = [4, 0], sizes = [24, 28], strides = [1, 1]} : vector<28x28xf32> to vector<24x28xf32>
    %c4_119 = arith.constant 4 : index
    %c0_120 = arith.constant 0 : index
    %c0_121 = arith.constant 0 : index
    %136 = vector.load %arg2[%c4_119, %c0_120, %c0_121] : memref<5x28x240xf32, #tpu.memory_space<vmem>>, vector<1x28x240xf32>
    %137 = vector.shape_cast %136 : vector<1x28x240xf32> to vector<28x240xf32>
    %cst_122 = arith.constant dense<0.000000e+00> : vector<24x240xf32>
    %138 = tpu.matmul %135, %137, %cst_122 {dimension_numbers = #tpu.dot_dimension_numbers<[1], [0], [0], [1], [0, 0, 1, 1], [], []>} : vector<24x28xf32>, vector<28x240xf32>, vector<24x240xf32> -> vector<24x240xf32>
    %139 = arith.addf %134, %138 : vector<24x240xf32>
    %c0_123 = arith.constant 0 : index
    %c0_124 = arith.constant 0 : index
    %140 = vector.load %arg3[%c0_123, %c0_124] : memref<1x240xf32, #tpu.memory_space<vmem>>, vector<1x240xf32>
    %141 = vector.broadcast %140 : vector<1x240xf32> to vector<24x240xf32>
    %142 = arith.addf %139, %141 : vector<24x240xf32>
    %cst_125 = arith.constant 0.000000e+00 : f32
    %143 = vector.broadcast %cst_125 : f32 to vector<24x240xf32>
    %144 = arith.maximumf %142, %143 : vector<24x240xf32>
    %c0_126 = arith.constant 0 : index
    %c0_127 = arith.constant 0 : index
    %c0_128 = arith.constant 0 : index
    %145 = vector.load %arg4[%c0_126, %c0_127, %c0_128] : memref<2x12x24xf32, #tpu.memory_space<vmem>>, vector<1x12x24xf32>
    %146 = vector.shape_cast %145 : vector<1x12x24xf32> to vector<12x24xf32>
    %cst_129 = arith.constant dense<0.000000e+00> : vector<12x240xf32>
    %147 = tpu.matmul %146, %144, %cst_129 {dimension_numbers = #tpu.dot_dimension_numbers<[1], [0], [0], [1], [0, 0, 1, 1], [], []>} : vector<12x24xf32>, vector<24x240xf32>, vector<12x240xf32> -> vector<12x240xf32>
    %c1_130 = arith.constant 1 : index
    %c0_131 = arith.constant 0 : index
    %c0_132 = arith.constant 0 : index
    %148 = vector.load %arg4[%c1_130, %c0_131, %c0_132] : memref<2x12x24xf32, #tpu.memory_space<vmem>>, vector<1x12x24xf32>
    %149 = vector.shape_cast %148 : vector<1x12x24xf32> to vector<12x24xf32>
    %cst_133 = arith.constant dense<0.000000e+00> : vector<12x240xf32>
    %150 = tpu.matmul %149, %144, %cst_133 {dimension_numbers = #tpu.dot_dimension_numbers<[1], [0], [0], [1], [0, 0, 1, 1], [], []>} : vector<12x24xf32>, vector<24x240xf32>, vector<12x240xf32> -> vector<12x240xf32>
    %151 = arith.maximumf %147, %150 : vector<12x240xf32>
    %c0_134 = arith.constant 0 : index
    %c0_135 = arith.constant 0 : index
    %c0_136 = arith.constant 0 : index
    %152 = vector.load %arg5[%c0_134, %c0_135, %c0_136] : memref<2x240x120xf32, #tpu.memory_space<vmem>>, vector<1x240x120xf32>
    %153 = vector.shape_cast %152 : vector<1x240x120xf32> to vector<240x120xf32>
    %cst_137 = arith.constant dense<0.000000e+00> : vector<12x120xf32>
    %154 = tpu.matmul %151, %153, %cst_137 {dimension_numbers = #tpu.dot_dimension_numbers<[1], [0], [0], [1], [0, 0, 1, 1], [], []>} : vector<12x240xf32>, vector<240x120xf32>, vector<12x120xf32> -> vector<12x120xf32>
    %c1_138 = arith.constant 1 : index
    %c0_139 = arith.constant 0 : index
    %c0_140 = arith.constant 0 : index
    %155 = vector.load %arg5[%c1_138, %c0_139, %c0_140] : memref<2x240x120xf32, #tpu.memory_space<vmem>>, vector<1x240x120xf32>
    %156 = vector.shape_cast %155 : vector<1x240x120xf32> to vector<240x120xf32>
    %cst_141 = arith.constant dense<0.000000e+00> : vector<12x120xf32>
    %157 = tpu.matmul %151, %156, %cst_141 {dimension_numbers = #tpu.dot_dimension_numbers<[1], [0], [0], [1], [0, 0, 1, 1], [], []>} : vector<12x240xf32>, vector<240x120xf32>, vector<12x120xf32> -> vector<12x120xf32>
    %158 = arith.maximumf %154, %157 : vector<12x120xf32>
    %159 = vector.extract_strided_slice %158 {offsets = [0, 0], sizes = [8, 120], strides = [1, 1]} : vector<12x120xf32> to vector<8x120xf32>
    %c0_142 = arith.constant 0 : index
    %c0_143 = arith.constant 0 : index
    %c0_144 = arith.constant 0 : index
    %160 = vector.load %arg6[%c0_142, %c0_143, %c0_144] : memref<5x120x160xf32, #tpu.memory_space<vmem>>, vector<1x120x160xf32>
    %161 = vector.shape_cast %160 : vector<1x120x160xf32> to vector<120x160xf32>
    %cst_145 = arith.constant dense<0.000000e+00> : vector<8x160xf32>
    %162 = tpu.matmul %159, %161, %cst_145 {dimension_numbers = #tpu.dot_dimension_numbers<[1], [0], [0], [1], [0, 0, 1, 1], [], []>} : vector<8x120xf32>, vector<120x160xf32>, vector<8x160xf32> -> vector<8x160xf32>
    %163 = vector.extract_strided_slice %158 {offsets = [1, 0], sizes = [8, 120], strides = [1, 1]} : vector<12x120xf32> to vector<8x120xf32>
    %c1_146 = arith.constant 1 : index
    %c0_147 = arith.constant 0 : index
    %c0_148 = arith.constant 0 : index
    %164 = vector.load %arg6[%c1_146, %c0_147, %c0_148] : memref<5x120x160xf32, #tpu.memory_space<vmem>>, vector<1x120x160xf32>
    %165 = vector.shape_cast %164 : vector<1x120x160xf32> to vector<120x160xf32>
    %cst_149 = arith.constant dense<0.000000e+00> : vector<8x160xf32>
    %166 = tpu.matmul %163, %165, %cst_149 {dimension_numbers = #tpu.dot_dimension_numbers<[1], [0], [0], [1], [0, 0, 1, 1], [], []>} : vector<8x120xf32>, vector<120x160xf32>, vector<8x160xf32> -> vector<8x160xf32>
    %167 = arith.addf %162, %166 : vector<8x160xf32>
    %168 = vector.extract_strided_slice %158 {offsets = [2, 0], sizes = [8, 120], strides = [1, 1]} : vector<12x120xf32> to vector<8x120xf32>
    %c2_150 = arith.constant 2 : index
    %c0_151 = arith.constant 0 : index
    %c0_152 = arith.constant 0 : index
    %169 = vector.load %arg6[%c2_150, %c0_151, %c0_152] : memref<5x120x160xf32, #tpu.memory_space<vmem>>, vector<1x120x160xf32>
    %170 = vector.shape_cast %169 : vector<1x120x160xf32> to vector<120x160xf32>
    %cst_153 = arith.constant dense<0.000000e+00> : vector<8x160xf32>
    %171 = tpu.matmul %168, %170, %cst_153 {dimension_numbers = #tpu.dot_dimension_numbers<[1], [0], [0], [1], [0, 0, 1, 1], [], []>} : vector<8x120xf32>, vector<120x160xf32>, vector<8x160xf32> -> vector<8x160xf32>
    %172 = arith.addf %167, %171 : vector<8x160xf32>
    %173 = vector.extract_strided_slice %158 {offsets = [3, 0], sizes = [8, 120], strides = [1, 1]} : vector<12x120xf32> to vector<8x120xf32>
    %c3_154 = arith.constant 3 : index
    %c0_155 = arith.constant 0 : index
    %c0_156 = arith.constant 0 : index
    %174 = vector.load %arg6[%c3_154, %c0_155, %c0_156] : memref<5x120x160xf32, #tpu.memory_space<vmem>>, vector<1x120x160xf32>
    %175 = vector.shape_cast %174 : vector<1x120x160xf32> to vector<120x160xf32>
    %cst_157 = arith.constant dense<0.000000e+00> : vector<8x160xf32>
    %176 = tpu.matmul %173, %175, %cst_157 {dimension_numbers = #tpu.dot_dimension_numbers<[1], [0], [0], [1], [0, 0, 1, 1], [], []>} : vector<8x120xf32>, vector<120x160xf32>, vector<8x160xf32> -> vector<8x160xf32>
    %177 = arith.addf %172, %176 : vector<8x160xf32>
    %178 = vector.extract_strided_slice %158 {offsets = [4, 0], sizes = [8, 120], strides = [1, 1]} : vector<12x120xf32> to vector<8x120xf32>
    %c4_158 = arith.constant 4 : index
    %c0_159 = arith.constant 0 : index
    %c0_160 = arith.constant 0 : index
    %179 = vector.load %arg6[%c4_158, %c0_159, %c0_160] : memref<5x120x160xf32, #tpu.memory_space<vmem>>, vector<1x120x160xf32>
    %180 = vector.shape_cast %179 : vector<1x120x160xf32> to vector<120x160xf32>
    %cst_161 = arith.constant dense<0.000000e+00> : vector<8x160xf32>
    %181 = tpu.matmul %178, %180, %cst_161 {dimension_numbers = #tpu.dot_dimension_numbers<[1], [0], [0], [1], [0, 0, 1, 1], [], []>} : vector<8x120xf32>, vector<120x160xf32>, vector<8x160xf32> -> vector<8x160xf32>
    %182 = arith.addf %177, %181 : vector<8x160xf32>
    %c0_162 = arith.constant 0 : index
    %c0_163 = arith.constant 0 : index
    %183 = vector.load %arg7[%c0_162, %c0_163] : memref<1x160xf32, #tpu.memory_space<vmem>>, vector<1x160xf32>
    %184 = vector.broadcast %183 : vector<1x160xf32> to vector<8x160xf32>
    %185 = arith.addf %182, %184 : vector<8x160xf32>
    %cst_164 = arith.constant 0.000000e+00 : f32
    %186 = vector.broadcast %cst_164 : f32 to vector<8x160xf32>
    %187 = arith.maximumf %185, %186 : vector<8x160xf32>
    %c0_165 = arith.constant 0 : index
    %c0_166 = arith.constant 0 : index
    %c0_167 = arith.constant 0 : index
    %188 = vector.load %arg8[%c0_165, %c0_166, %c0_167] : memref<2x4x8xf32, #tpu.memory_space<vmem>>, vector<1x4x8xf32>
    %189 = vector.shape_cast %188 : vector<1x4x8xf32> to vector<4x8xf32>
    %cst_168 = arith.constant dense<0.000000e+00> : vector<4x160xf32>
    %190 = tpu.matmul %189, %187, %cst_168 {dimension_numbers = #tpu.dot_dimension_numbers<[1], [0], [0], [1], [0, 0, 1, 1], [], []>} : vector<4x8xf32>, vector<8x160xf32>, vector<4x160xf32> -> vector<4x160xf32>
    %c1_169 = arith.constant 1 : index
    %c0_170 = arith.constant 0 : index
    %c0_171 = arith.constant 0 : index
    %191 = vector.load %arg8[%c1_169, %c0_170, %c0_171] : memref<2x4x8xf32, #tpu.memory_space<vmem>>, vector<1x4x8xf32>
    %192 = vector.shape_cast %191 : vector<1x4x8xf32> to vector<4x8xf32>
    %cst_172 = arith.constant dense<0.000000e+00> : vector<4x160xf32>
    %193 = tpu.matmul %192, %187, %cst_172 {dimension_numbers = #tpu.dot_dimension_numbers<[1], [0], [0], [1], [0, 0, 1, 1], [], []>} : vector<4x8xf32>, vector<8x160xf32>, vector<4x160xf32> -> vector<4x160xf32>
    %194 = arith.maximumf %190, %193 : vector<4x160xf32>
    %c0_173 = arith.constant 0 : index
    %c0_174 = arith.constant 0 : index
    %c0_175 = arith.constant 0 : index
    %195 = vector.load %arg9[%c0_173, %c0_174, %c0_175] : memref<2x160x80xf32, #tpu.memory_space<vmem>>, vector<1x160x80xf32>
    %196 = vector.shape_cast %195 : vector<1x160x80xf32> to vector<160x80xf32>
    %cst_176 = arith.constant dense<0.000000e+00> : vector<4x80xf32>
    %197 = tpu.matmul %194, %196, %cst_176 {dimension_numbers = #tpu.dot_dimension_numbers<[1], [0], [0], [1], [0, 0, 1, 1], [], []>} : vector<4x160xf32>, vector<160x80xf32>, vector<4x80xf32> -> vector<4x80xf32>
    %c1_177 = arith.constant 1 : index
    %c0_178 = arith.constant 0 : index
    %c0_179 = arith.constant 0 : index
    %198 = vector.load %arg9[%c1_177, %c0_178, %c0_179] : memref<2x160x80xf32, #tpu.memory_space<vmem>>, vector<1x160x80xf32>
    %199 = vector.shape_cast %198 : vector<1x160x80xf32> to vector<160x80xf32>
    %cst_180 = arith.constant dense<0.000000e+00> : vector<4x80xf32>
    %200 = tpu.matmul %194, %199, %cst_180 {dimension_numbers = #tpu.dot_dimension_numbers<[1], [0], [0], [1], [0, 0, 1, 1], [], []>} : vector<4x160xf32>, vector<160x80xf32>, vector<4x80xf32> -> vector<4x80xf32>
    %201 = arith.maximumf %197, %200 : vector<4x80xf32>
    %c0_181 = arith.constant 0 : index
    %c0_182 = arith.constant 0 : index
    %202 = vector.load %arg11[%c0_181, %c0_182] : memref<1x50xf32, #tpu.memory_space<vmem>>, vector<1x50xf32>
    %203 = vector.extract_strided_slice %201 {offsets = [0, 0], sizes = [1, 80], strides = [1, 1]} : vector<4x80xf32> to vector<1x80xf32>
    %c0_183 = arith.constant 0 : index
    %c0_184 = arith.constant 0 : index
    %c0_185 = arith.constant 0 : index
    %204 = vector.load %arg10[%c0_183, %c0_184, %c0_185] : memref<4x80x50xf32, #tpu.memory_space<vmem>>, vector<1x80x50xf32>
    %205 = vector.shape_cast %204 : vector<1x80x50xf32> to vector<80x50xf32>
    %cst_186 = arith.constant dense<0.000000e+00> : vector<1x50xf32>
    %206 = tpu.matmul %203, %205, %cst_186 {dimension_numbers = #tpu.dot_dimension_numbers<[1], [0], [0], [1], [0, 0, 1, 1], [], []>} : vector<1x80xf32>, vector<80x50xf32>, vector<1x50xf32> -> vector<1x50xf32>
    %207 = arith.addf %202, %206 : vector<1x50xf32>
    %208 = vector.extract_strided_slice %201 {offsets = [1, 0], sizes = [1, 80], strides = [1, 1]} : vector<4x80xf32> to vector<1x80xf32>
    %c1_187 = arith.constant 1 : index
    %c0_188 = arith.constant 0 : index
    %c0_189 = arith.constant 0 : index
    %209 = vector.load %arg10[%c1_187, %c0_188, %c0_189] : memref<4x80x50xf32, #tpu.memory_space<vmem>>, vector<1x80x50xf32>
    %210 = vector.shape_cast %209 : vector<1x80x50xf32> to vector<80x50xf32>
    %cst_190 = arith.constant dense<0.000000e+00> : vector<1x50xf32>
    %211 = tpu.matmul %208, %210, %cst_190 {dimension_numbers = #tpu.dot_dimension_numbers<[1], [0], [0], [1], [0, 0, 1, 1], [], []>} : vector<1x80xf32>, vector<80x50xf32>, vector<1x50xf32> -> vector<1x50xf32>
    %212 = arith.addf %207, %211 : vector<1x50xf32>
    %213 = vector.extract_strided_slice %201 {offsets = [2, 0], sizes = [1, 80], strides = [1, 1]} : vector<4x80xf32> to vector<1x80xf32>
    %c2_191 = arith.constant 2 : index
    %c0_192 = arith.constant 0 : index
    %c0_193 = arith.constant 0 : index
    %214 = vector.load %arg10[%c2_191, %c0_192, %c0_193] : memref<4x80x50xf32, #tpu.memory_space<vmem>>, vector<1x80x50xf32>
    %215 = vector.shape_cast %214 : vector<1x80x50xf32> to vector<80x50xf32>
    %cst_194 = arith.constant dense<0.000000e+00> : vector<1x50xf32>
    %216 = tpu.matmul %213, %215, %cst_194 {dimension_numbers = #tpu.dot_dimension_numbers<[1], [0], [0], [1], [0, 0, 1, 1], [], []>} : vector<1x80xf32>, vector<80x50xf32>, vector<1x50xf32> -> vector<1x50xf32>
    %217 = arith.addf %212, %216 : vector<1x50xf32>
    %218 = vector.extract_strided_slice %201 {offsets = [3, 0], sizes = [1, 80], strides = [1, 1]} : vector<4x80xf32> to vector<1x80xf32>
    %c3_195 = arith.constant 3 : index
    %c0_196 = arith.constant 0 : index
    %c0_197 = arith.constant 0 : index
    %219 = vector.load %arg10[%c3_195, %c0_196, %c0_197] : memref<4x80x50xf32, #tpu.memory_space<vmem>>, vector<1x80x50xf32>
    %220 = vector.shape_cast %219 : vector<1x80x50xf32> to vector<80x50xf32>
    %cst_198 = arith.constant dense<0.000000e+00> : vector<1x50xf32>
    %221 = tpu.matmul %218, %220, %cst_198 {dimension_numbers = #tpu.dot_dimension_numbers<[1], [0], [0], [1], [0, 0, 1, 1], [], []>} : vector<1x80xf32>, vector<80x50xf32>, vector<1x50xf32> -> vector<1x50xf32>
    %222 = arith.addf %217, %221 : vector<1x50xf32>
    %c0_199 = arith.constant 0 : index
    %c0_200 = arith.constant 0 : index
    %223 = vector.load %arg12[%c0_199, %c0_200] : memref<50x10xf32, #tpu.memory_space<vmem>>, vector<50x10xf32>
    %cst_201 = arith.constant dense<0.000000e+00> : vector<1x10xf32>
    %224 = tpu.matmul %222, %223, %cst_201 {dimension_numbers = #tpu.dot_dimension_numbers<[1], [0], [0], [1], [0, 0, 1, 1], [], []>} : vector<1x50xf32>, vector<50x10xf32>, vector<1x10xf32> -> vector<1x10xf32>
    %c0_202 = arith.constant 0 : index
    %c0_203 = arith.constant 0 : index
    %225 = vector.load %arg13[%c0_202, %c0_203] : memref<1x10xf32, #tpu.memory_space<vmem>>, vector<1x10xf32>
    %226 = arith.addf %224, %225 : vector<1x10xf32>
    %c1_204 = arith.constant 1 : index
    %c0_205 = arith.constant 0 : index
    %227 = vector.load %arg14[%c1_204, %c0_205] : memref<2x10xf32, #tpu.memory_space<vmem>>, vector<1x10xf32>
    tpu.vector_store %arg14[%c1_204, %c0_205], %226 {strides = array<i32>} : memref<2x10xf32, #tpu.memory_space<vmem>>, vector<1x10xf32>,
    return
  }
  func.func @transform_0(%arg0: i32) -> (i32, i32, i32) {
    %c0_i32 = arith.constant 0 : i32
    %c0_i32_0 = arith.constant 0 : i32
    %c0_i32_1 = arith.constant 0 : i32
    %c0_i32_2 = arith.constant 0 : i32
    return %c0_i32, %c0_i32_0, %c0_i32_1 : i32, i32, i32
  }
  func.func @transform_1(%arg0: i32) -> (i32, i32, i32) {
    %c0_i32 = arith.constant 0 : i32
    %c0_i32_0 = arith.constant 0 : i32
    %c0_i32_1 = arith.constant 0 : i32
    %c0_i32_2 = arith.constant 0 : i32
    return %c0_i32, %c0_i32_0, %c0_i32_1 : i32, i32, i32
  }
  func.func @transform_2(%arg0: i32) -> (i32, i32) {
    %c0_i32 = arith.constant 0 : i32
    %c0_i32_0 = arith.constant 0 : i32
    %c0_i32_1 = arith.constant 0 : i32
    return %c0_i32, %c0_i32_0 : i32, i32
  }
  func.func @transform_3(%arg0: i32) -> (i32, i32, i32) {
    %c0_i32 = arith.constant 0 : i32
    %c0_i32_0 = arith.constant 0 : i32
    %c0_i32_1 = arith.constant 0 : i32
    %c0_i32_2 = arith.constant 0 : i32
    return %c0_i32, %c0_i32_0, %c0_i32_1 : i32, i32, i32
  }
  func.func @transform_4(%arg0: i32) -> (i32, i32, i32) {
    %c0_i32 = arith.constant 0 : i32
    %c0_i32_0 = arith.constant 0 : i32
    %c0_i32_1 = arith.constant 0 : i32
    %c0_i32_2 = arith.constant 0 : i32
    return %c0_i32, %c0_i32_0, %c0_i32_1 : i32, i32, i32
  }
  func.func @transform_5(%arg0: i32) -> (i32, i32, i32) {
    %c0_i32 = arith.constant 0 : i32
    %c0_i32_0 = arith.constant 0 : i32
    %c0_i32_1 = arith.constant 0 : i32
    %c0_i32_2 = arith.constant 0 : i32
    return %c0_i32, %c0_i32_0, %c0_i32_1 : i32, i32, i32
  }
  func.func @transform_6(%arg0: i32) -> (i32, i32) {
    %c0_i32 = arith.constant 0 : i32
    %c0_i32_0 = arith.constant 0 : i32
    %c0_i32_1 = arith.constant 0 : i32
    return %c0_i32, %c0_i32_0 : i32, i32
  }
  func.func @transform_7(%arg0: i32) -> (i32, i32, i32) {
    %c0_i32 = arith.constant 0 : i32
    %c0_i32_0 = arith.constant 0 : i32
    %c0_i32_1 = arith.constant 0 : i32
    %c0_i32_2 = arith.constant 0 : i32
    return %c0_i32, %c0_i32_0, %c0_i32_1 : i32, i32, i32
  }
  func.func @transform_8(%arg0: i32) -> (i32, i32, i32) {
    %c0_i32 = arith.constant 0 : i32
    %c0_i32_0 = arith.constant 0 : i32
    %c0_i32_1 = arith.constant 0 : i32
    %c0_i32_2 = arith.constant 0 : i32
    return %c0_i32, %c0_i32_0, %c0_i32_1 : i32, i32, i32
  }
  func.func @transform_9(%arg0: i32) -> (i32, i32, i32) {
    %c0_i32 = arith.constant 0 : i32
    %c0_i32_0 = arith.constant 0 : i32
    %c0_i32_1 = arith.constant 0 : i32
    %c0_i32_2 = arith.constant 0 : i32
    return %c0_i32, %c0_i32_0, %c0_i32_1 : i32, i32, i32
  }
  func.func @transform_10(%arg0: i32) -> (i32, i32) {
    %c0_i32 = arith.constant 0 : i32
    %c0_i32_0 = arith.constant 0 : i32
    %c0_i32_1 = arith.constant 0 : i32
    return %c0_i32, %c0_i32_0 : i32, i32
  }
  func.func @transform_11(%arg0: i32) -> (i32, i32) {
    %c0_i32 = arith.constant 0 : i32
    %c0_i32_0 = arith.constant 0 : i32
    %c0_i32_1 = arith.constant 0 : i32
    return %c0_i32, %c0_i32_0 : i32, i32
  }
  func.func @transform_12(%arg0: i32) -> (i32, i32) {
    %c0_i32 = arith.constant 0 : i32
    %c0_i32_0 = arith.constant 0 : i32
    %c0_i32_1 = arith.constant 0 : i32
    return %c0_i32, %c0_i32_0 : i32, i32
  }
  func.func @transform_13(%arg0: i32) -> (i32, i32) {
    %c0_i32 = arith.constant 0 : i32
    %c0_i32_0 = arith.constant 0 : i32
    %c0_i32_1 = arith.constant 0 : i32
    return %c0_i32, %c0_i32_0 : i32, i32
  }
}

</mosaic_0001>

<bundles_post_ra>
// kernel: net_forward.1
= control target key start
LH: loop header
LB: loop body
LE: loop exit
PB: predicated region body
PF: predicated region fallthrough
CT: control target
= control target key end

     0   :  { %vm85_vm0 = vcmask 1043456   ;;  %v6514_v7 = vmov 0.0   ;;  %vm6515_vm1 = vmmov 1   ;;  %vm70_vm3 = vcmask 1046528   ;;  %s9196_s0 = inlined_call_operand.vmem [shape: f32[2,28,28], index: 0, kind: input, shape index: {}]   ;;  %s9197_s1 = inlined_call_operand.vmem [shape: f32[5,28,240], index: 1, kind: input, shape index: {}]   ;;  %s9198_s2 = inlined_call_operand.vmem [shape: f32[1,240], index: 2, kind: input, shape index: {}]   ;;  %s9199_s3 = inlined_call_operand.vmem [shape: f32[2,12,24], index: 3, kind: input, shape index: {}]   ;;  %s9200_s4 = inlined_call_operand.vmem [shape: f32[2,240,120], index: 4, kind: input, shape index: {}]   ;;  %s9201_s5 = inlined_call_operand.vmem [shape: f32[5,120,160], index: 5, kind: input, shape index: {}]   ;;  %s9202_s6 = inlined_call_operand.vmem [shape: f32[1,160], index: 6, kind: input, shape index: {}]   ;;  %s9203_s7 = inlined_call_operand.vmem [shape: f32[2,4,8], index: 7, kind: input, shape index: {}]   ;;  %s9204_s8 = inlined_call_operand.vmem [shape: f32[2,160,80], index: 8, kind: input, shape index: {}]   ;;  %s9205_s9 = inlined_call_operand.vmem [shape: f32[4,80,50], index: 9, kind: input, shape index: {}]   ;;  %s9206_s10 = inlined_call_operand.vmem [shape: f32[1,50], index: 10, kind: input, shape index: {}]   ;;  %s9207_s11 = inlined_call_operand.vmem [shape: f32[50,10], index: 11, kind: input, shape index: {}]   ;;  %s9208_s12 = inlined_call_operand.vmem [shape: f32[1,10], index: 12, kind: input, shape index: {}]   ;;  %s9209_s13 = inlined_call_operand.hbm [shape: f32[2,10], index: 13, kind: output, shape index: {}]  }
   0x1   :  { %v4678_v0 = vld [vmem:[%s9197_s1 + $0x48] sm:$0xff]  ;;  %v4680_v1 = vld [vmem:[%s9197_s1 + $0x58] sm:$0xff]  ;;  %v4677_v2 = vld [vmem:[%s9197_s1 + $0x40] sm:$0xff]  ;;  %156 = vmatprep.mubr.f32.mxu0 %v6514_v7  ;;  %168 = vmatprep.mubr.f32.mxu1 %v6514_v7  ;;  %vm78_vm4 = vcmask 228352  }
   0x2   :  { %v5569_v3 = vpack.c.bf16 %v4680_v1, %v4678_v0  ;;  %v4679_v4 = vld [vmem:[%s9197_s1 + $0x50] sm:$0xff]  ;;  %v4682_v5 = vld [vmem:[%s9197_s1 + $0x68] sm:$0xff]  ;;  %v4684_v6 = vld [vmem:[%s9197_s1 + $0x78] sm:$0xf] }
   0x3   :  { %v5571_v8 = vpack.c.bf16 %v4679_v4, %v4677_v2  ;;  %v5573_v9 = vpack.c.bf16 %v4684_v6, %v4682_v5  ;;  %vm6610_vm2 = vmpackc.low %vm85_vm0, %vm6515_vm1  ;;  %v4681_v11 = vld [vmem:[%s9197_s1 + $0x60] sm:$0xff]  ;;  %v4683_v12 = vld [vmem:[%s9197_s1 + $0x70] sm:$0xf] }
   0x4   :  { %5570 = vmatprep.subr.bf16.mxu0 %v5569_v3  ;;  %v6623_v13 = vld [vmem:[%s9196_s0] sm:$0xff]  ;;  %v6628_v14 = vld [vmem:[%s9196_s0 + $0x8] sm:$0xff]  ;;  %6403 = vmatprep.subr.bf16.mxu1 %v5569_v3  ;;  %v5576_v16 = vpack.c.bf16 %v4683_v12, %v4681_v11  ;;  %v52_v19 = vld [vmem:[%s9197_s1 + $0x18] sm:$0xff] }
   0x5   :  { %v50_v15 = vld [vmem:[%s9197_s1 + $0x8] sm:$0xff]  ;;  %5572 = vmatpush1.bf16.msra.mxu0 %v5571_v8  ;;  %v71_v17 = vrot.slane %v6623_v13, 1  ;;  %v72_v18 = vrot.slane %v6628_v14, 1  ;;  %6405 = vmatpush1.bf16.msra.mxu1 %v5571_v8  ;;  %v49_v21 = vld [vmem:[%s9197_s1] sm:$0xff]  ;;  %v51_v22 = vld [vmem:[%s9197_s1 + $0x10] sm:$0xff] }
   0x6   :  { %5575 = vmatprep.subr.msk.bf16.mxu0 %vm6610_vm2, %v5573_v9  ;;  %v5579_v20 = vpack.c.bf16 %v52_v19, %v50_v15  ;;  %v6649_v23 = vld [vmem:[%s9196_s0 + $0x10] sm:$0xff]  ;;  %6404 = vmatprep.subr.msk.bf16.mxu1 %vm6610_vm2, %v5573_v9  ;;  %v54_v24 = vld [vmem:[%s9197_s1 + $0x28] sm:$0xff]  ;;  %v56_v25 = vld [vmem:[%s9197_s1 + $0x38] sm:$0xf]  ;;  %v5581_v27 = vpack.c.bf16 %v51_v22, %v49_v21 }
   0x7   :  { %v73_v26 = vsel %vm70_vm3, %v71_v17, %v72_v18  ;;  %v74_v28 = vrot.slane %v6649_v23, 1  ;;  %v5583_v29 = vpack.c.bf16 %v56_v25, %v54_v24  ;;  %v53_v30 = vld [vmem:[%s9197_s1 + $0x20] sm:$0xff]  ;;  %v55_v31 = vld [vmem:[%s9197_s1 + $0x30] sm:$0xf]  ;;  %v4696_v32 = vld [vmem:[%s9197_s1 + $0x88] sm:$0xff] }
   0x8   :  { %v4698_v33 = vld [vmem:[%s9197_s1 + $0x98] sm:$0xff]  ;;  %v5586_v36 = vpack.c.bf16 %v55_v31, %v53_v30  ;;  %v4695_v39 = vld [vmem:[%s9197_s1 + $0x80] sm:$0xff]  ;;  %v4697_v40 = vld [vmem:[%s9197_s1 + $0x90] sm:$0xff] }
   0x9   :  { %5578 = vmatpush1.bf16.msk.msra.mxu0 %vm6610_vm2, %v5576_v16  ;;  %6406 = vmatpush1.bf16.msk.msra.mxu1 %vm6610_vm2, %v5576_v16  ;;  %v6681_v34 = vld [vmem:[%s9196_s0 + $0x18] sm:$0xf]  ;;  %v75_v35 = vsel %vm70_vm3, %v72_v18, %v74_v28  ;;  %v5589_v38 = vpack.c.bf16 %v4698_v33, %v4696_v32  ;;  %v4700_v41 = vld [vmem:[%s9197_s1 + $0xa8] sm:$0xff] }
   0xa   :  { %5580 = vmatprep.subr.bf16.mxu0 %v5579_v20  ;;  %v76_v37 = vrot.slane %v6681_v34, 1  ;;  %v4702_v42 = vld [vmem:[%s9197_s1 + $0xb8] sm:$0xf] }
   0xc   :  { %4687 = vmatmul.mubr.msk.f32.vlgmr.msra.gmra.mrb[0].mxu0 %vm78_vm4, %v73_v26  ;;  %v77_v43 = vsel %vm70_vm3, %v74_v28, %v76_v37 }
   0xd   :  { %5582 = vmatpush1.bf16.msra.mxu0 %v5581_v27  ;;  %162 = vmatprep.mubr.f32.mxu0 %v6514_v7 }
   0xe   :  { %5585 = vmatprep.subr.msk.bf16.mxu0 %vm6610_vm2, %v5583_v29  ;;  %4689 = vmatmul.mubr.msk.f32.vlgmr.msra.gmra.mrb[0].mxu1 %vm78_vm4, %v77_v43 }
  0x10   :  { %4688 = vmatmul.mubr.msk.f32.gmra.mrb[2].mxu0 %vm78_vm4, %v75_v35 }
  0x11   :  { %18 = vsyncpa [#allocation3], 0  ;;  %5588 = vmatpush1.bf16.msk.msra.mxu0 %vm6610_vm2, %v5586_v36  ;;  %251 = vmatprep.mubr.f32.mxu0 %v6514_v7  ;;  %v5591_v44 = vpack.c.bf16 %v4697_v40, %v4695_v39  ;;  %v5593_v45 = vpack.c.bf16 %v4702_v42, %v4700_v41  ;;  %v4699_v46 = vld [vmem:[%s9197_s1 + $0xa0] sm:$0xff]  ;;  %v4701_v47 = vld [vmem:[%s9197_s1 + $0xb0] sm:$0xf]  ;;  %v280_v52 = vrot.slane %v6623_v13, 2 }
  0x12   :  { %5590 = vmatprep.subr.bf16.mxu0 %v5589_v38  ;;  %720 = vmatprep.mubr.f32.mxu1 %v6514_v7  ;;  %v4709_v48 = vld [vmem:[%s9197_s1 + $0xc8] sm:$0xff]  ;;  %v4711_v49 = vld [vmem:[%s9197_s1 + $0xd8] sm:$0xff]  ;;  %v5596_v50 = vpack.c.bf16 %v4701_v47, %v4699_v46  ;;  %v281_v53 = vrot.slane %v6628_v14, 2  ;;  %vm279_vm5 = vcmask 1045504   ;;  %v4708_v54 = vld [vmem:[%s9197_s1 + $0xc0] sm:$0xff]  ;;  %v283_v59 = vrot.slane %v6649_v23, 2 }
  0x13   :  { %v5599_v51 = vpack.c.bf16 %v4711_v49, %v4709_v48  ;;  %v4710_v55 = vld [vmem:[%s9197_s1 + $0xd0] sm:$0xff]  ;;  %v4713_v56 = vld [vmem:[%s9197_s1 + $0xe8] sm:$0xff]  ;;  %v4715_v57 = vld [vmem:[%s9197_s1 + $0xf8] sm:$0xf]  ;;  %v285_v3 = vrot.slane %v6681_v34, 2  ;;  %v398_v8 = vrot.slane %v6623_v13, 3 }
  0x14   :  { %4692 = vmatmul.mubr.msk.f32.vlgmr.msra.gmra.mrb[0].mxu0 %vm78_vm4, %v6623_v13  ;;  %v282_v58 = vsel %vm279_vm5, %v280_v52, %v281_v53  ;;  %v5601_v60 = vpack.c.bf16 %v4710_v55, %v4708_v54  ;;  %v5603_v61 = vpack.c.bf16 %v4715_v57, %v4713_v56  ;;  %v4712_v62 = vld [vmem:[%s9197_s1 + $0xe0] sm:$0xff]  ;;  %v4714_v63 = vld [vmem:[%s9197_s1 + $0xf0] sm:$0xf]  ;;  %v4722_v0 = vld [vmem:[%s9197_s1 + $0x108] sm:$0xff]  ;;  %v284_v2 = vsel %vm279_vm5, %v281_v53, %v283_v59  ;;  %s6518_s16 = smov [#allocation2]  }
  0x15   :  { %257 = vmatprep.mubr.f32.mxu0 %v6514_v7  ;;  %5592 = vmatpush1.bf16.msra.mxu0 %v5591_v44  ;;  %v4724_v1 = vld [vmem:[%s9197_s1 + $0x118] sm:$0xff]  ;;  %v5606_v4 = vpack.c.bf16 %v4714_v63, %v4712_v62  ;;  %v286_v6 = vsel %vm279_vm5, %v283_v59, %v285_v3  ;;  %v399_v9 = vrot.slane %v6628_v14, 3  ;;  %vm397_vm6 = vcmask 1044480   ;;  %v4721_v11 = vld [vmem:[%s9197_s1 + $0x100] sm:$0xff]  ;;  %v4723_v12 = vld [vmem:[%s9197_s1 + $0x110] sm:$0xff]  ;;  %s4669_s17 = sshll.u32 %s6518_s16, 4  ;;  %s4670_s17 = int_to_ptr.vmem [resolvable:$true] %s4669_s17 }
  0x16   :  { %5595 = vmatprep.subr.msk.bf16.mxu0 %vm6610_vm2, %v5593_v45  ;;  %v5609_v5 = vpack.c.bf16 %v4724_v1, %v4722_v0  ;;  %v4726_v15 = vld [vmem:[%s9197_s1 + $0x128] sm:$0xff]  ;;  %v4728_v16 = vld [vmem:[%s9197_s1 + $0x138] sm:$0xf]  ;;  %v401_v18 = vrot.slane %v6649_v23, 3  ;;  %v5611_v19 = vpack.c.bf16 %v4723_v12, %v4721_v11  ;;  %v4725_v21 = vld [vmem:[%s9197_s1 + $0x120] sm:$0xff]  ;;  %v403_v25 = vrot.slane %v6681_v34, 3  ;;  %p6495_p1 = scmp.lt.s32.totalorder %s4670_s17, %s4670_s17 }
  0x17   :  { %v400_v17 = vsel %vm397_vm6, %v398_v8, %v399_v9  ;;  %v5613_v20 = vpack.c.bf16 %v4728_v16, %v4726_v15  ;;  %v4727_v22 = vld [vmem:[%s9197_s1 + $0x130] sm:$0xf]  ;;  %v515_v28 = vrot.slane %v6623_v13, 4  ;;  %v516_v29 = vrot.slane %v6628_v14, 4  ;;  %v4743_v35 = vld [vmem:[%s9200_s4 + $0xf8] sm:$0xff]  ;;  %v4744_v36 = vld [vmem:[%s9200_s4 + $0x100] sm:$0xff] }
  0x18   :  { %4693 = vmatmul.mubr.msk.f32.gmra.mrb[2].mxu0 %vm78_vm4, %v6628_v14  ;;  %v402_v24 = vsel %vm397_vm6, %v399_v9, %v401_v18  ;;  %v5616_v26 = vpack.c.bf16 %v4727_v22, %v4725_v21  ;;  %v404_v27 = vsel %vm397_vm6, %v401_v18, %v403_v25  ;;  %v518_v31 = vrot.slane %v6649_v23, 4  ;;  %v4742_v14 = vld [vmem:[%s9200_s4 + $0xf0] sm:$0xff]  ;;  %v4745_v37 = vld [vmem:[%s9200_s4 + $0x108] sm:$0xff]  ;;  %v4747_v40 = vld [vmem:[%s9200_s4 + $0x118] sm:$0xff] }
  0x19   :  { %263 = vmatprep.mubr.f32.mxu0 %v6514_v7  ;;  %5598 = vmatpush1.bf16.msk.msra.mxu0 %vm6610_vm2, %v5596_v50  ;;  %v517_v30 = vsel %vm85_vm0, %v515_v28, %v516_v29  ;;  %v520_v33 = vrot.slane %v6681_v34, 4  ;;  %v5673_v34 = vpack.c.bf16 %v4743_v35, %v4742_v14  ;;  %v5676_v38 = vpack.c.bf16 %v4745_v37, %v4744_v36  ;;  %v4746_v39 = vld [vmem:[%s9200_s4 + $0x110] sm:$0xff]  ;;  %v4748_v42 = vld [vmem:[%s9200_s4 + $0x120] sm:$0xff]  ;;  %v4749_v43 = vld [vmem:[%s9200_s4 + $0x128] sm:$0xff] }
  0x1a   :  { %5600 = vmatprep.subr.bf16.mxu0 %v5599_v51  ;;  %v519_v32 = vsel %vm85_vm0, %v516_v29, %v518_v31  ;;  %v5679_v41 = vpack.c.bf16 %v4747_v40, %v4746_v39  ;;  %v5682_v44 = vpack.c.bf16 %v4749_v43, %v4748_v42  ;;  %v4750_v45 = vld [vmem:[%s9200_s4 + $0x130] sm:$0xff]  ;;  %v4751_v46 = vld [vmem:[%s9200_s4 + $0x138] sm:$0xff]  ;;  %v4752_v48 = vld [vmem:[%s9200_s4 + $0x140] sm:$0xff]  ;;  %v625_v8 = vlaneseq }
  0x1b   :  { %v521_v13 = vsel %vm85_vm0, %v518_v31, %v520_v33  ;;  %v5685_v47 = vpack.c.bf16 %v4751_v46, %v4750_v45  ;;  %v4753_v49 = vld [vmem:[%s9200_s4 + $0x148] sm:$0xff]  ;;  %v4754_v51 = vld [vmem:[%s9200_s4 + $0x150] sm:$0xff]  ;;  %v4755_v52 = vld [vmem:[%s9200_s4 + $0x158] sm:$0xff]  ;;  %vm649_vm7 = vcmask 195584   ;;  %vm853_vm8 = vcmask 916480  }
  0x1c   :  { %4694 = vmatmul.mubr.msk.f32.gmra.mrb[4].mxu0 %vm78_vm4, %v6649_v23  ;;  %v6516_v23 = vmov 0.0|0.0   ;;  %v5688_v50 = vpack.c.bf16 %v4753_v49, %v4752_v48  ;;  %v5691_v53 = vpack.c.bf16 %v4755_v52, %v4754_v51  ;;  %v4756_v54 = vld [vmem:[%s9200_s4 + $0x160] sm:$0xff]  ;;  %v4757_v55 = vld [vmem:[%s9200_s4 + $0x168] sm:$0xff]  ;;  %v4758_v57 = vld [vmem:[%s9200_s4 + $0x170] sm:$0xff]  ;;  %v626_v9 = vshrl.u32 %v625_v8, 7 }
  0x1d   :  { %363 = vmatprep.mubr.f32.mxu0 %v6514_v7  ;;  %v5694_v56 = vpack.c.bf16 %v4757_v55, %v4756_v54  ;;  %v4762_v63 = vld [vmem:[%s9200_s4 + $0x190] sm:$0xff]  ;;  %v4763_v0 = vld [vmem:[%s9200_s4 + $0x198] sm:$0xff]  ;;  %v4765_v3 = vld [vmem:[%s9200_s4 + $0x1a8] sm:$0xff]  ;;  %vm1109_vm9 = vcmask 982016   ;;  %vm1600_vm10 = vcmask 64512   ;;  %vm1773_vm11 = vcmask 261120  }
  0x1e   :  { %v5703_v1 = vpack.c.bf16 %v4763_v0, %v4762_v63  ;;  %v6905_v11 = vsub.s32 0, %v626_v9  ;;  %v623_v12 = vld [vmem:[%s9198_s2] sm:$0x3]  ;;  %v6910_v15 = vsub.s32 1, %v626_v9  ;;  %v648_v40 = vld [vmem:[%s9199_s3 + $0x8] sm:$0xf] }
  0x1f   :  { %v647_v39 = vld [vmem:[%s9199_s3] sm:$0xff]  ;;  %v824_v42 = vld [vmem:[%s9200_s4 + $0x8] sm:$0xff]  ;;  %v4736_v43 = vld [vmem:[%s9199_s3 + $0x10] sm:$0xff]  ;;  %vm6517_vm12 = vmmov 0   ;;  %vm1950_vm13 = vcmask 654336   ;;  %vm2292_vm14 = vcmask 1041408  }
  0x20   :  { %4705 = vmatmul.mubr.msk.f32.vlgmr.msra.gmra.mrb[0].mxu0 %vm78_vm4, %v282_v58  ;;  %v4759_v58 = vld [vmem:[%s9200_s4 + $0x178] sm:$0xff]  ;;  %v628_v16 = vrot.slane %v623_v12, %v6905_v11  ;;  %v632_v18 = vrot.slane %v623_v12, %v6910_v15  ;;  %v825_v45 = vld [vmem:[%s9200_s4 + $0x10] sm:$0xff]  ;;  %v827_v49 = vld [vmem:[%s9200_s4 + $0x20] sm:$0xff]  ;;  %vm2288_vm15 = vcmask 408576   ;;  %vm2366_vm1 = vcmask 73728  }
  0x21   :  { %369 = vmatprep.mubr.f32.mxu0 %v6514_v7  ;;  %5602 = vmatpush1.bf16.msra.mxu0 %v5601_v60  ;;  %v5697_v59 = vpack.c.bf16 %v4759_v58, %v4758_v57  ;;  %v4760_v60 = vld [vmem:[%s9200_s4 + $0x180] sm:$0xff]  ;;  %v826_v46 = vld [vmem:[%s9200_s4 + $0x18] sm:$0xff]  ;;  %v829_v52 = vld [vmem:[%s9200_s4 + $0x30] sm:$0xff] }
  0x22   :  { %5605 = vmatprep.subr.msk.bf16.mxu0 %vm6610_vm2, %v5603_v61  ;;  %v4761_v61 = vld [vmem:[%s9200_s4 + $0x188] sm:$0xff]  ;;  %v5631_v48 = vpack.c.bf16 %v826_v46, %v825_v45  ;;  %v831_v55 = vld [vmem:[%s9200_s4 + $0x40] sm:$0xff]  ;;  %v833_v58 = vld [vmem:[%s9200_s4 + $0x50] sm:$0xff] }
  0x23   :  { %v5700_v62 = vpack.c.bf16 %v4761_v61, %v4760_v60  ;;  %v835_v61 = vld [vmem:[%s9200_s4 + $0x60] sm:$0xff]  ;;  %v837_v0 = vld [vmem:[%s9200_s4 + $0x70] sm:$0xff]  ;;  %v842_v8 = vld [vmem:[%s9200_s4 + $0x98] sm:$0xff] }
  0x24   :  { %4706 = vmatmul.mubr.msk.f32.gmra.mrb[2].mxu0 %vm78_vm4, %v284_v2  ;;  %v4764_v2 = vld [vmem:[%s9200_s4 + $0x1a0] sm:$0xff]  ;;  %v4774_v45 = vld [vmem:[%s9201_s5 + $0xf0] sm:$0xff] }
  0x25   :  { %375 = vmatprep.mubr.f32.mxu0 %v6514_v7  ;;  %5608 = vmatpush1.bf16.msk.msra.mxu0 %vm6610_vm2, %v5606_v4  ;;  %v5706_v4 = vpack.c.bf16 %v4765_v3, %v4764_v2  ;;  %v839_v3 = vld [vmem:[%s9200_s4 + $0x80] sm:$0xff] }
  0x26   :  { %5610 = vmatprep.subr.bf16.mxu0 %v5609_v5  ;;  %v843_v12 = vld [vmem:[%s9200_s4 + $0xa0] sm:$0xff] }
  0x27   :  { %v4776_v46 = vld [vmem:[%s9201_s5 + $0x100] sm:$0xff] }
  0x28   :  { %4707 = vmatmul.mubr.msk.f32.gmra.mrb[4].mxu0 %vm78_vm4, %v286_v6 }
  0x29   :  { %481 = vmatprep.mubr.f32.mxu0 %v6514_v7 }
  0x2c   :  { %4718 = vmatmul.mubr.msk.f32.vlgmr.msra.gmra.mrb[0].mxu0 %vm78_vm4, %v400_v17 }
  0x2d   :  { %487 = vmatprep.mubr.f32.mxu0 %v6514_v7  ;;  %5612 = vmatpush1.bf16.msra.mxu0 %v5611_v19 }
  0x2e   :  { %5615 = vmatprep.subr.msk.bf16.mxu0 %vm6610_vm2, %v5613_v20 }
  0x30   :  { %4719 = vmatmul.mubr.msk.f32.gmra.mrb[2].mxu0 %vm78_vm4, %v402_v24 }
  0x31   :  { %493 = vmatprep.mubr.f32.mxu0 %v6514_v7  ;;  %5618 = vmatpush1.bf16.msk.msra.mxu0 %vm6610_vm2, %v5616_v26 }
  0x32   :  { %5672 = vmatprep.subr.bf16.mxu0 %v6516_v23 }
  0x34   :  { %4720 = vmatmul.mubr.msk.f32.gmra.mrb[4].mxu0 %vm78_vm4, %v404_v27 }
  0x35   :  { %598 = vmatprep.mubr.f32.mxu0 %v6514_v7 }
  0x38   :  { %4731 = vmatmul.mubr.msk.f32.vlgmr.msra.gmra.mrb[0].mxu0 %vm78_vm4, %v517_v30 }
  0x39   :  { %604 = vmatprep.mubr.f32.mxu0 %v6514_v7  ;;  %5674 = vmatpush1.bf16.msra.mxu0 %v5673_v34 }
  0x3a   :  { %5675 = vmatprep.subr.bf16.mxu0 %v6516_v23 }
  0x3c   :  { %4732 = vmatmul.mubr.msk.f32.gmra.mrb[2].mxu0 %vm78_vm4, %v519_v32 }
  0x3d   :  { %610 = vmatprep.mubr.f32.mxu0 %v6514_v7  ;;  %5677 = vmatpush1.bf16.msra.mxu0 %v5676_v38 }
  0x3e   :  { %5678 = vmatprep.subr.bf16.mxu0 %v6516_v23 }
  0x40   :  { %4733 = vmatmul.mubr.msk.f32.gmra.mrb[4].mxu0 %vm78_vm4, %v521_v13 }
  0x41   :  { %5680 = vmatpush1.bf16.msra.mxu0 %v5679_v41  ;;  %v823_v41 = vld [vmem:[%s9200_s4] sm:$0xff] }
  0x42   :  { %5681 = vmatprep.subr.bf16.mxu0 %v6516_v23 }
  0x45   :  { %5683 = vmatpush1.bf16.msra.mxu0 %v5682_v44  ;;  %v5628_v44 = vpack.c.bf16 %v824_v42, %v823_v41 }
  0x46   :  { %5684 = vmatprep.subr.bf16.mxu0 %v6516_v23 }
  0x49   :  { %5686 = vmatpush1.bf16.msra.mxu0 %v5685_v47  ;;  %v4737_v47 = vld [vmem:[%s9199_s3 + $0x18] sm:$0xf] }
  0x4a   :  { %5687 = vmatprep.subr.bf16.mxu0 %v6516_v23 }
  0x4d   :  { %5689 = vmatpush1.bf16.msra.mxu0 %v5688_v50  ;;  %v828_v50 = vld [vmem:[%s9200_s4 + $0x28] sm:$0xff] }
  0x4e   :  { %5690 = vmatprep.subr.bf16.mxu0 %v6516_v23  ;;  %v5634_v51 = vpack.c.bf16 %v828_v50, %v827_v49  ;;  %v4781_v49 = vld [vmem:[%s9201_s5 + $0x128] sm:$0xff] }
  0x51   :  { %5692 = vmatpush1.bf16.msra.mxu0 %v5691_v53  ;;  %v830_v53 = vld [vmem:[%s9200_s4 + $0x38] sm:$0xff] }
  0x52   :  { %5693 = vmatprep.subr.bf16.mxu0 %v6516_v23  ;;  %v5637_v54 = vpack.c.bf16 %v830_v53, %v829_v52  ;;  %v5719_v53 = vpack.c.bf16 %v4776_v46, %v4774_v45 }
  0x55   :  { %5695 = vmatpush1.bf16.msra.mxu0 %v5694_v56  ;;  %v832_v56 = vld [vmem:[%s9200_s4 + $0x48] sm:$0xff] }
  0x56   :  { %5696 = vmatprep.subr.bf16.mxu0 %v6516_v23  ;;  %v5640_v57 = vpack.c.bf16 %v832_v56, %v831_v55  ;;  %v4778_v55 = vld [vmem:[%s9201_s5 + $0x110] sm:$0xff]  ;;  %v4780_v56 = vld [vmem:[%s9201_s5 + $0x120] sm:$0xff] }
  0x59   :  { %5698 = vmatpush1.bf16.msra.mxu0 %v5697_v59  ;;  %v834_v59 = vld [vmem:[%s9200_s4 + $0x58] sm:$0xff] }
  0x5a   :  { %5699 = vmatprep.subr.bf16.mxu0 %v6516_v23  ;;  %v5643_v60 = vpack.c.bf16 %v834_v59, %v833_v58  ;;  %v4783_v58 = vld [vmem:[%s9201_s5 + $0x138] sm:$0xff]  ;;  %v4785_v59 = vld [vmem:[%s9201_s5 + $0x148] sm:$0xff] }
  0x5d   :  { %5701 = vmatpush1.bf16.msra.mxu0 %v5700_v62  ;;  %v836_v62 = vld [vmem:[%s9200_s4 + $0x68] sm:$0xff] }
  0x5e   :  { %5702 = vmatprep.subr.bf16.mxu0 %v6516_v23  ;;  %v5646_v63 = vpack.c.bf16 %v836_v62, %v835_v61 }
  0x61   :  { %5704 = vmatpush1.bf16.msra.mxu0 %v5703_v1  ;;  %v838_v1 = vld [vmem:[%s9200_s4 + $0x78] sm:$0xff] }
  0x62   :  { %5705 = vmatprep.subr.bf16.mxu0 %v6516_v23  ;;  %v5649_v2 = vpack.c.bf16 %v838_v1, %v837_v0  ;;  %v5725_v0 = vpack.c.bf16 %v4785_v59, %v4783_v58  ;;  %v4782_v1 = vld [vmem:[%s9201_s5 + $0x130] sm:$0xff] }
  0x65   :  { %5707 = vmatpush1.bf16.msra.mxu0 %v5706_v4  ;;  %v840_v4 = vld [vmem:[%s9200_s4 + $0x88] sm:$0xff] }
  0x66   :  { %5708 = vmatprep.subr.bf16.mxu0 %v6516_v23 }
  0xe1   :  { %v170_v5 = vpop.f32.mrb[0].mxu1 }
  0xe2   :  { %v172_v6 = vpop.f32.mrb[1].mxu1 }
 0x10b   :  { %v600_v17 = vpop.f32.mrb[0].mxu0 }
 0x10c   :  { %v602_v19 = vpop.f32.mrb[1].mxu0  ;;  %v635_v20 = vadd.f32 %v628_v16, %v600_v17 }
 0x10d   :  { %v636_v21 = vadd.f32 %v632_v18, %v602_v19  ;;  %v846_v19 = vld [vmem:[%s9200_s4 + $0xb8] sm:$0xff] }
 0x10e   :  { %v641_v27 = vmax.f32 %v635_v20, 0.0 }
 0x10f   :  { %v606_v22 = vpop.f32.mrb[2].mxu0  ;;  %v642_v29 = vmax.f32 %v636_v21, 0.0  ;;  %v847_v21 = vld [vmem:[%s9200_s4 + $0xc0] sm:$0xff] }
 0x110   :  { %v637_v24 = vadd.f32 %v628_v16, %v606_v22  ;;  %v608_v25 = vpop.f32.mrb[3].mxu0  ;;  %v848_v22 = vld [vmem:[%s9200_s4 + $0xc8] sm:$0xff] }
 0x111   :  { %v638_v26 = vadd.f32 %v632_v18, %v608_v25  ;;  %v5664_v25 = vpack.c.bf16 %v848_v22, %v847_v21  ;;  %v4795_v21 = vld [vmem:[%s9201_s5 + $0x198] sm:$0xff]  ;;  %v4797_v22 = vld [vmem:[%s9201_s5 + $0x1a8] sm:$0xff] }
 0x112   :  { %v643_v28 = vmax.f32 %v637_v24, 0.0  ;;  %v4766_v24 = vld [vmem:[%s9200_s4 + $0x1b0] sm:$0xff] }
 0x113   :  { %v644_v30 = vmax.f32 %v638_v26, 0.0  ;;  %v612_v31 = vpop.f32.mrb[4].mxu0  ;;  %v4767_v26 = vld [vmem:[%s9200_s4 + $0x1b8] sm:$0xff] }
 0x114   :  { %v5621_v32 = vpack.c.bf16 %v643_v28, %v641_v27  ;;  %v6407_v33 = vadd.f32 %v612_v31, %v170_v5  ;;  %v614_v13 = vpop.f32.mrb[5].mxu0  ;;  %v5652_v5 = vpack.c.bf16 %v840_v4, %v839_v3  ;;  %v5709_v27 = vpack.c.bf16 %v4767_v26, %v4766_v24  ;;  %v849_v28 = vld [vmem:[%s9200_s4 + $0xd0] sm:$0xff]  ;;  %v4787_v3 = vld [vmem:[%s9201_s5 + $0x158] sm:$0xff]  ;;  %v4789_v4 = vld [vmem:[%s9201_s5 + $0x168] sm:$0xff] }
 0x115   :  { %v5619_v14 = vpack.c.bf16 %v644_v30, %v642_v29  ;;  %v6408_v35 = vadd.f32 %v614_v13, %v172_v6  ;;  %v841_v6 = vld [vmem:[%s9200_s4 + $0x90] sm:$0xff]  ;;  %v850_v29 = vld [vmem:[%s9200_s4 + $0xd8] sm:$0xff]  ;;  %v4768_v30 = vld [vmem:[%s9200_s4 + $0x1c0] sm:$0xff] }
 0x116   :  { %v639_v34 = vadd.f32 %v6407_v33, %v628_v16  ;;  %v5655_v9 = vpack.c.bf16 %v842_v8, %v841_v6  ;;  %v844_v16 = vld [vmem:[%s9200_s4 + $0xa8] sm:$0xff]  ;;  %5710 = vmatpush1.bf16.msra.mxu0 %v5709_v27  ;;  %v5667_v31 = vpack.c.bf16 %v850_v29, %v849_v28  ;;  %v851_v13 = vld [vmem:[%s9200_s4 + $0xe0] sm:$0xff]  ;;  %v5729_v6 = vpack.c.bf16 %v4789_v4, %v4787_v3  ;;  %v4786_v8 = vld [vmem:[%s9201_s5 + $0x150] sm:$0xff] }
 0x117   :  { %v640_v36 = vadd.f32 %v6408_v35, %v632_v18  ;;  %5620 = vmatprep.subr.bf16.mxu1 %v5619_v14  ;;  %v5658_v17 = vpack.c.bf16 %v844_v16, %v843_v12  ;;  %v845_v18 = vld [vmem:[%s9200_s4 + $0xb0] sm:$0xff]  ;;  %5711 = vmatprep.subr.bf16.mxu0 %v6516_v23  ;;  %v4791_v12 = vld [vmem:[%s9201_s5 + $0x178] sm:$0xff]  ;;  %v4793_v16 = vld [vmem:[%s9201_s5 + $0x188] sm:$0xff] }
 0x118   :  { %5622 = vmatpush1.bf16.msra.mxu1 %v5621_v32  ;;  %v645_v38 = vmax.f32 %v639_v34, 0.0  ;;  %v5661_v20 = vpack.c.bf16 %v846_v19, %v845_v18  ;;  %v4770_v35 = vld [vmem:[%s9200_s4 + $0x1d0] sm:$0xff]  ;;  %v5733_v18 = vpack.c.bf16 %v4793_v16, %v4791_v12  ;;  %v4796_v27 = vld [vmem:[%s9201_s5 + $0x1a0] sm:$0xff]  ;;  %v4799_v29 = vld [vmem:[%s9201_s5 + $0x1b8] sm:$0xff] }
 0x119   :  { %v646_v37 = vmax.f32 %v640_v36, 0.0  ;;  %v4771_v36 = vld [vmem:[%s9200_s4 + $0x1d8] sm:$0xff]  ;;  %v4790_v19 = vld [vmem:[%s9201_s5 + $0x170] sm:$0xff]  ;;  %v1056_v16 = vld [vmem:[%s9201_s5 + $0x68] sm:$0xff] }
 0x11a   :  { %v4794_v26 = vld [vmem:[%s9201_s5 + $0x190] sm:$0xff] }
 0x11b   :  { %660 = vmatprep.subr.mxu1 %v646_v37  ;;  %v5739_v28 = vpack.c.bf16 %v4796_v27, %v4794_v26  ;;  %v1053_v12 = vld [vmem:[%s9201_s5 + $0x50] sm:$0xff]  ;;  %v1059_v27 = vld [vmem:[%s9201_s5 + $0x80] sm:$0xff] }
 0x11c   :  { %661 = vmatpush1.msra.mxu1 %v645_v38 }
 0x11d   :  { %4734 = vmatmul.mubr.msk.f32.vlgmr.msra.gmra.mrb[2].mxu1 %vm649_vm7, %v647_v39  ;;  %5624 = vmatprep.subr.bf16.mxu1 %v5619_v14  ;;  %v852_v14 = vld [vmem:[%s9200_s4 + $0xe8] sm:$0xff] }
 0x11e   :  { %5626 = vmatpush1.bf16.msra.mxu1 %v5621_v32  ;;  %726 = vmatprep.mubr.f32.mxu1 %v6514_v7  ;;  %v4769_v32 = vld [vmem:[%s9200_s4 + $0x1c8] sm:$0xff]  ;;  %v5670_v34 = vpack.c.bf16 %v852_v14, %v851_v13  ;;  %v4803_v14 = vld [vmem:[%s9201_s5 + $0x1d8] sm:$0xff] }
 0x11f   :  { %746 = vmatprep.subr.mxu1 %v646_v37  ;;  %v5712_v33 = vpack.c.bf16 %v4769_v32, %v4768_v30  ;;  %v5715_v37 = vpack.c.bf16 %v4771_v36, %v4770_v35  ;;  %v4777_v39 = vld [vmem:[%s9201_s5 + $0x108] sm:$0xff]  ;;  %v4798_v32 = vld [vmem:[%s9201_s5 + $0x1b0] sm:$0xff] }
 0x120   :  { %v4801_v30 = vld [vmem:[%s9201_s5 + $0x1c8] sm:$0xff]  ;;  %v4802_v36 = vld [vmem:[%s9201_s5 + $0x1d0] sm:$0xff] }
 0x121   :  { %4735 = vmatmul.mubr.msk.f32.gmra.mrb[4].mxu1 %vm649_vm7, %v648_v40  ;;  %5713 = vmatpush1.bf16.msra.mxu0 %v5712_v33  ;;  %v4800_v33 = vld [vmem:[%s9201_s5 + $0x1c0] sm:$0xff]  ;;  %v1044_v35 = vld [vmem:[%s9201_s5 + $0x8] sm:$0xff] }
 0x122   :  { %747 = vmatpush1.msra.mxu1 %v645_v38  ;;  %806 = vmatprep.mubr.f32.mxu1 %v6514_v7  ;;  %v4775_v38 = vld [vmem:[%s9201_s5 + $0xf8] sm:$0xff]  ;;  %v5743_v13 = vpack.c.bf16 %v4800_v33, %v4798_v32  ;;  %v1063_v33 = vld [vmem:[%s9201_s5 + $0xa0] sm:$0xff] }
 0x123   :  { %5627 = vmatprep.subr.bf16.mxu1 %v6516_v23  ;;  %5714 = vmatprep.subr.bf16.mxu0 %v6516_v23  ;;  %v5717_v40 = vpack.c.bf16 %v4777_v39, %v4775_v38 }
 0x125   :  { %4738 = vmatmul.mubr.msk.f32.vlgmr.msra.gmra.mrb[6].mxu1 %vm649_vm7, %v4736_v43  ;;  %5716 = vmatpush1.bf16.msra.mxu0 %v5715_v37 }
 0x126   :  { %812 = vmatprep.mubr.f32.mxu1 %v6514_v7  ;;  %5629 = vmatpush1.bf16.msra.mxu1 %v5628_v44 }
 0x127   :  { %5630 = vmatprep.subr.bf16.mxu1 %v6516_v23 }
 0x129   :  { %4739 = vmatmul.mubr.msk.f32.gmra.mrb[8].mxu1 %vm649_vm7, %v4737_v47 }
 0x12a   :  { %5632 = vmatpush1.bf16.msra.mxu1 %v5631_v48  ;;  %v4779_v48 = vld [vmem:[%s9201_s5 + $0x118] sm:$0xff] }
 0x12b   :  { %5633 = vmatprep.subr.bf16.mxu1 %v6516_v23 }
 0x12e   :  { %5635 = vmatpush1.bf16.msra.mxu1 %v5634_v51 }
 0x12f   :  { %5636 = vmatprep.subr.bf16.mxu1 %v6516_v23 }
 0x132   :  { %5638 = vmatpush1.bf16.msra.mxu1 %v5637_v54  ;;  %v5721_v54 = vpack.c.bf16 %v4781_v49, %v4779_v48 }
 0x133   :  { %5639 = vmatprep.subr.bf16.mxu1 %v6516_v23 }
 0x136   :  { %5641 = vmatpush1.bf16.msra.mxu1 %v5640_v57 }
 0x137   :  { %5642 = vmatprep.subr.bf16.mxu1 %v6516_v23 }
 0x13a   :  { %5644 = vmatpush1.bf16.msra.mxu1 %v5643_v60 }
 0x13b   :  { %5645 = vmatprep.subr.bf16.mxu1 %v6516_v23 }
 0x13e   :  { %5647 = vmatpush1.bf16.msra.mxu1 %v5646_v63  ;;  %v5723_v63 = vpack.c.bf16 %v4780_v56, %v4778_v55 }
 0x13f   :  { %5648 = vmatprep.subr.bf16.mxu1 %v6516_v23 }
 0x142   :  { %5650 = vmatpush1.bf16.msra.mxu1 %v5649_v2  ;;  %v4784_v2 = vld [vmem:[%s9201_s5 + $0x140] sm:$0xff] }
 0x143   :  { %5651 = vmatprep.subr.bf16.mxu1 %v6516_v23 }
 0x146   :  { %5653 = vmatpush1.bf16.msra.mxu1 %v5652_v5  ;;  %v5727_v5 = vpack.c.bf16 %v4784_v2, %v4782_v1  ;;  %v1052_v1 = vld [vmem:[%s9201_s5 + $0x48] sm:$0xff]  ;;  %v1054_v2 = vld [vmem:[%s9201_s5 + $0x58] sm:$0xff] }
 0x147   :  { %5654 = vmatprep.subr.bf16.mxu1 %v6516_v23 }
 0x14a   :  { %5656 = vmatpush1.bf16.msra.mxu1 %v5655_v9  ;;  %v4788_v9 = vld [vmem:[%s9201_s5 + $0x160] sm:$0xff] }
 0x14b   :  { %5657 = vmatprep.subr.bf16.mxu1 %v6516_v23 }
 0x14e   :  { %5659 = vmatpush1.bf16.msra.mxu1 %v5658_v17  ;;  %v5731_v17 = vpack.c.bf16 %v4788_v9, %v4786_v8  ;;  %v5753_v8 = vpack.c.bf16 %v1054_v2, %v1052_v1  ;;  %v1051_v9 = vld [vmem:[%s9201_s5 + $0x40] sm:$0xff]  ;;  %v4823_v1 = vld [vmem:[%s9201_s5 + $0x268] sm:$0xff]  ;;  %v4825_v2 = vld [vmem:[%s9201_s5 + $0x278] sm:$0xff] }
 0x14f   :  { %5660 = vmatprep.subr.bf16.mxu1 %v6516_v23 }
 0x152   :  { %5662 = vmatpush1.bf16.msra.mxu1 %v5661_v20  ;;  %v4792_v20 = vld [vmem:[%s9201_s5 + $0x180] sm:$0xff] }
 0x153   :  { %5663 = vmatprep.subr.bf16.mxu1 %v6516_v23  ;;  %v5735_v24 = vpack.c.bf16 %v4792_v20, %v4790_v19  ;;  %v1055_v20 = vld [vmem:[%s9201_s5 + $0x60] sm:$0xff] }
 0x156   :  { %5665 = vmatpush1.bf16.msra.mxu1 %v5664_v25  ;;  %v5737_v25 = vpack.c.bf16 %v4797_v22, %v4795_v21  ;;  %v1057_v21 = vld [vmem:[%s9201_s5 + $0x70] sm:$0xff]  ;;  %v1060_v22 = vld [vmem:[%s9201_s5 + $0x88] sm:$0xff] }
 0x157   :  { %5666 = vmatprep.subr.bf16.mxu1 %v6516_v23 }
 0x15a   :  { %5668 = vmatpush1.bf16.msra.mxu1 %v5667_v31  ;;  %v5741_v31 = vpack.c.bf16 %v4801_v30, %v4799_v29  ;;  %v1064_v29 = vld [vmem:[%s9201_s5 + $0xa8] sm:$0xff]  ;;  %v1066_v30 = vld [vmem:[%s9201_s5 + $0xb8] sm:$0xff] }
 0x15b   :  { %5669 = vmatprep.subr.bf16.mxu1 %v6516_v23  ;;  %v5765_v32 = vpack.c.bf16 %v1066_v30, %v1064_v29  ;;  %v4835_v30 = vld [vmem:[%s9201_s5 + $0x2c8] sm:$0xff] }
 0x15e   :  { %5671 = vmatpush1.bf16.msra.mxu1 %v5670_v34  ;;  %v1046_v34 = vld [vmem:[%s9201_s5 + $0x18] sm:$0xff] }
 0x15f   :  { %5718 = vmatprep.subr.bf16.mxu1 %v5717_v40  ;;  %v5745_v37 = vpack.c.bf16 %v1046_v34, %v1044_v35  ;;  %v1070_v35 = vld [vmem:[%s9201_s5 + $0xd8] sm:$0xff] }
 0x1f0   :  { %v722_v41 = vpop.f32.mrb[2].mxu1 }
 0x1f1   :  { %v724_v42 = vpop.f32.mrb[3].mxu1 }
 0x1f4   :  { %v728_v43 = vpop.f32.mrb[4].mxu1 }
 0x1f5   :  { %v730_v44 = vpop.f32.mrb[5].mxu1 }
 0x1f8   :  { %v808_v47 = vpop.f32.mrb[6].mxu1 }
 0x1f9   :  { %v819_v50 = vmax.f32 %v722_v41, %v808_v47  ;;  %v810_v51 = vpop.f32.mrb[7].mxu1 }
 0x1fa   :  { %v820_v52 = vmax.f32 %v724_v42, %v810_v51  ;;  %v1048_v51 = vld [vmem:[%s9201_s5 + $0x28] sm:$0xff] }
 0x1fc   :  { %v814_v57 = vpop.f32.mrb[8].mxu1  ;;  %4740 = vmatprep.mubr.msk.f32.mxu1 %vm853_vm8, %v820_v52  ;;  %4772 = vmatprep.mubr.msk.f32.mxu0 %vm853_vm8, %v820_v52  ;;  %v1050_v52 = vld [vmem:[%s9201_s5 + $0x38] sm:$0xff] }
 0x1fd   :  { %v821_v60 = vmax.f32 %v728_v43, %v814_v57  ;;  %v816_v61 = vpop.f32.mrb[9].mxu1  ;;  %925 = vmatmul.mubr.f32.vlgmr.msra.gmra.mrb[10].mxu1 %v819_v50  ;;  %1031 = vmatmul.mubr.f32.vlgmr.msra.gmra.mrb[6].mxu0 %v819_v50  ;;  %v1043_v43 = vld [vmem:[%s9201_s5] sm:$0xff] }
 0x1fe   :  { %v822_v62 = vmax.f32 %v730_v44, %v816_v61  ;;  %5720 = vmatpush1.bf16.msra.mxu1 %v5719_v53  ;;  %v1045_v44 = vld [vmem:[%s9201_s5 + $0x10] sm:$0xff]  ;;  %v5749_v61 = vpack.c.bf16 %v1050_v52, %v1048_v51  ;;  %v4810_v52 = vld [vmem:[%s9201_s5 + $0x200] sm:$0xff] }
 0x1ff   :  { %5722 = vmatprep.subr.bf16.mxu1 %v5721_v54  ;;  %v5747_v50 = vpack.c.bf16 %v1045_v44, %v1043_v43  ;;  %v4809_v43 = vld [vmem:[%s9201_s5 + $0x1f8] sm:$0xff]  ;;  %v4806_v44 = vld [vmem:[%s9201_s5 + $0x1e0] sm:$0xff] }
 0x200   :  { %4741 = vmatprep.mubr.msk.f32.mxu1 %vm853_vm8, %v822_v62  ;;  %4773 = vmatprep.mubr.msk.f32.mxu0 %vm853_vm8, %v822_v62  ;;  %v1047_v62 = vld [vmem:[%s9201_s5 + $0x20] sm:$0xff] }
 0x201   :  { %930 = vmatmul.mubr.f32.gmra.mrb[12].mxu1 %v821_v60  ;;  %1036 = vmatmul.mubr.f32.gmra.mrb[8].mxu0 %v821_v60 }
 0x202   :  { %5724 = vmatpush1.bf16.msra.mxu1 %v5723_v63  ;;  %1176 = vmatprep.mubr.f32.mxu1 %v6514_v7  ;;  %v1049_v63 = vld [vmem:[%s9201_s5 + $0x30] sm:$0xff] }
 0x203   :  { %5726 = vmatprep.subr.bf16.mxu1 %v5725_v0  ;;  %1668 = vmatprep.mubr.f32.mxu0 %v6514_v7 }
 0x206   :  { %5728 = vmatpush1.bf16.msra.mxu1 %v5727_v5 }
 0x207   :  { %5730 = vmatprep.subr.bf16.mxu1 %v5729_v6  ;;  %v5751_v6 = vpack.c.bf16 %v1049_v63, %v1047_v62  ;;  %v4818_v63 = vld [vmem:[%s9201_s5 + $0x240] sm:$0xff] }
 0x20a   :  { %5732 = vmatpush1.bf16.msra.mxu1 %v5731_v17  ;;  %v1058_v17 = vld [vmem:[%s9201_s5 + $0x78] sm:$0xff] }
 0x20b   :  { %5734 = vmatprep.subr.bf16.mxu1 %v5733_v18  ;;  %v5755_v18 = vpack.c.bf16 %v1053_v12, %v1051_v9  ;;  %v5757_v19 = vpack.c.bf16 %v1058_v17, %v1056_v16  ;;  %v4822_v9 = vld [vmem:[%s9201_s5 + $0x260] sm:$0xff]  ;;  %v4824_v12 = vld [vmem:[%s9201_s5 + $0x270] sm:$0xff]  ;;  %v4827_v16 = vld [vmem:[%s9201_s5 + $0x288] sm:$0xff] }
 0x20c   :  { %v4829_v17 = vld [vmem:[%s9201_s5 + $0x298] sm:$0xff] }
 0x20e   :  { %5736 = vmatpush1.bf16.msra.mxu1 %v5735_v24  ;;  %v1062_v24 = vld [vmem:[%s9201_s5 + $0x98] sm:$0xff] }
 0x20f   :  { %5738 = vmatprep.subr.bf16.mxu1 %v5737_v25  ;;  %v5759_v25 = vpack.c.bf16 %v1057_v21, %v1055_v20  ;;  %v5761_v26 = vpack.c.bf16 %v1062_v24, %v1060_v22  ;;  %v4826_v20 = vld [vmem:[%s9201_s5 + $0x280] sm:$0xff]  ;;  %v4828_v21 = vld [vmem:[%s9201_s5 + $0x290] sm:$0xff]  ;;  %v4831_v22 = vld [vmem:[%s9201_s5 + $0x2a8] sm:$0xff] }
 0x210   :  { %v4833_v24 = vld [vmem:[%s9201_s5 + $0x2b8] sm:$0xff] }
 0x212   :  { %5740 = vmatpush1.bf16.msra.mxu1 %v5739_v28  ;;  %v1061_v28 = vld [vmem:[%s9201_s5 + $0x90] sm:$0xff] }
 0x213   :  { %5742 = vmatprep.subr.bf16.mxu1 %v5741_v31  ;;  %v5763_v31 = vpack.c.bf16 %v1061_v28, %v1059_v27  ;;  %v4830_v27 = vld [vmem:[%s9201_s5 + $0x2a0] sm:$0xff]  ;;  %v4832_v28 = vld [vmem:[%s9201_s5 + $0x2b0] sm:$0xff] }
 0x214   :  { %v5799_v29 = vpack.c.bf16 %v4832_v28, %v4830_v27  ;;  %v4872_v28 = vld [vmem:[%s9201_s5 + $0x3e0] sm:$0xff] }
 0x216   :  { %5744 = vmatpush1.bf16.msra.mxu1 %v5743_v13  ;;  %v1065_v13 = vld [vmem:[%s9201_s5 + $0xb0] sm:$0xff] }
 0x217   :  { %1140 = vmatprep.subr.mxu1 %v4803_v14  ;;  %v1068_v14 = vld [vmem:[%s9201_s5 + $0xc8] sm:$0xff]  ;;  %v5767_v34 = vpack.c.bf16 %v1065_v13, %v1063_v33  ;;  %v4837_v33 = vld [vmem:[%s9201_s5 + $0x2d0] sm:$0xff]  ;;  %v4839_v13 = vld [vmem:[%s9201_s5 + $0x2e0] sm:$0xff] }
 0x21a   :  { %1141 = vmatpush1.msra.mxu1 %v4802_v36  ;;  %v5769_v36 = vpack.c.bf16 %v1070_v35, %v1068_v14  ;;  %v4842_v14 = vld [vmem:[%s9201_s5 + $0x2f8] sm:$0xff]  ;;  %v4844_v35 = vld [vmem:[%s9201_s5 + $0x308] sm:$0xff] }
 0x21b   :  { %5746 = vmatprep.subr.bf16.mxu1 %v5745_v37  ;;  %v1067_v37 = vld [vmem:[%s9201_s5 + $0xc0] sm:$0xff] }
 0x2d0   :  { %v926_v38 = vpop.f32.mrb[10].mxu1  ;;  %v1032_v39 = vpop.f32.mrb[6].mxu0 }
 0x2d1   :  { %v7160_v40 = vmax.f32 %v926_v38, %v1032_v39  ;;  %v928_v41 = vpop.f32.mrb[11].mxu1  ;;  %v1034_v42 = vpop.f32.mrb[7].mxu0  ;;  %v1069_v38 = vld [vmem:[%s9201_s5 + $0xd0] sm:$0xff] }
 0x2d2   :  { %v5771_v39 = vpack.c.bf16 %v1069_v38, %v1067_v37  ;;  %v1072_v41 = vld [vmem:[%s9201_s5 + $0xe8] sm:$0xff]  ;;  %v5803_v37 = vpack.c.bf16 %v4839_v13, %v4837_v33  ;;  %v5805_v38 = vpack.c.bf16 %v4844_v35, %v4842_v14  ;;  %v4876_v13 = vld [vmem:[%s9201_s5 + $0x400] sm:$0xff]  ;;  %v4878_v14 = vld [vmem:[%s9201_s5 + $0x410] sm:$0xff] }
 0x2d3   :  { %v1106_v53 = vrot.slane %v7160_v40, 1  ;;  %v1287_v54 = vrot.slane %v7160_v40, 2  ;;  %v1396_v55 = vrot.slane %v7160_v40, 3  ;;  %v1505_v56 = vrot.slane %v7160_v40, 4  ;;  %v4807_v42 = vld [vmem:[%s9201_s5 + $0x1e8] sm:$0xff] }
 0x2d4   :  { %v931_v45 = vpop.f32.mrb[12].mxu1  ;;  %v1037_v46 = vpop.f32.mrb[8].mxu0  ;;  %v4881_v35 = vld [vmem:[%s9201_s5 + $0x428] sm:$0xff] }
 0x2d5   :  { %v1042_v47 = vmax.f32 %v931_v45, %v1037_v46  ;;  %v933_v48 = vpop.f32.mrb[13].mxu1  ;;  %v1039_v49 = vpop.f32.mrb[9].mxu0  ;;  %v4808_v45 = vld [vmem:[%s9201_s5 + $0x1f0] sm:$0xff]  ;;  %v4811_v46 = vld [vmem:[%s9201_s5 + $0x208] sm:$0xff] }
 0x2d6   :  { %v1071_v48 = vld [vmem:[%s9201_s5 + $0xe0] sm:$0xff]  ;;  %v5773_v49 = vpack.c.bf16 %v4809_v43, %v4807_v42  ;;  %v4846_v42 = vld [vmem:[%s9201_s5 + $0x318] sm:$0xff]  ;;  %v4848_v43 = vld [vmem:[%s9201_s5 + $0x328] sm:$0xff] }
 0x2d7   :  { %v1107_v57 = vrot.slane %v1042_v47, 1  ;;  %v1288_v58 = vrot.slane %v1042_v47, 2  ;;  %v1397_v59 = vrot.slane %v1042_v47, 3  ;;  %v1506_v60 = vrot.slane %v1042_v47, 4  ;;  %v4813_v47 = vld [vmem:[%s9201_s5 + $0x218] sm:$0xff] }
 0x2d8   :  { %v5777_v51 = vpack.c.bf16 %v4813_v47, %v4811_v46  ;;  %v4845_v46 = vld [vmem:[%s9201_s5 + $0x310] sm:$0xff]  ;;  %v4847_v47 = vld [vmem:[%s9201_s5 + $0x320] sm:$0xff] }
 0x2d9   :  { %v1108_v0 = vsel %vm70_vm3, %v1106_v53, %v1107_v57  ;;  %v7192_v3 = vsel %vm279_vm5, %v1287_v54, %v1288_v58  ;;  %v7195_v4 = vsel %vm397_vm6, %v1396_v55, %v1397_v59  ;;  %v7198_v5 = vsel %vm85_vm0, %v1505_v56, %v1506_v60  ;;  %v4812_v53 = vld [vmem:[%s9201_s5 + $0x210] sm:$0xff]  ;;  %v4815_v54 = vld [vmem:[%s9201_s5 + $0x228] sm:$0xff]  ;;  %v4817_v55 = vld [vmem:[%s9201_s5 + $0x238] sm:$0xff] }
 0x2da   :  { %4804 = vmatmul.mubr.msk.f32.vlgmr.msra.gmra.mrb[14].mxu1 %vm1109_vm9, %v1108_v0  ;;  %v5779_v56 = vpack.c.bf16 %v4812_v53, %v4810_v52  ;;  %v5781_v57 = vpack.c.bf16 %v4817_v55, %v4815_v54  ;;  %v4814_v58 = vld [vmem:[%s9201_s5 + $0x220] sm:$0xff]  ;;  %v4816_v59 = vld [vmem:[%s9201_s5 + $0x230] sm:$0xff]  ;;  %v4819_v60 = vld [vmem:[%s9201_s5 + $0x248] sm:$0xff] }
 0x2db   :  { %5748 = vmatpush1.bf16.msra.mxu1 %v5747_v50  ;;  %1249 = vmatprep.mubr.f32.mxu1 %v6514_v7  ;;  %v5775_v50 = vpack.c.bf16 %v4808_v45, %v4806_v44  ;;  %v4820_v0 = vld [vmem:[%s9201_s5 + $0x250] sm:$0xff]  ;;  %v5809_v45 = vpack.c.bf16 %v4848_v43, %v4846_v42  ;;  %v4851_v52 = vld [vmem:[%s9201_s5 + $0x340] sm:$0xff]  ;;  %v4854_v53 = vld [vmem:[%s9201_s5 + $0x358] sm:$0xff] }
 0x2dc   :  { %5750 = vmatprep.subr.bf16.mxu1 %v5749_v61  ;;  %v5783_v61 = vpack.c.bf16 %v4816_v59, %v4814_v58  ;;  %v4856_v54 = vld [vmem:[%s9201_s5 + $0x368] sm:$0xff]  ;;  %v4855_v58 = vld [vmem:[%s9201_s5 + $0x360] sm:$0xff]  ;;  %v4858_v59 = vld [vmem:[%s9201_s5 + $0x378] sm:$0xff] }
 0x2df   :  { %5752 = vmatpush1.bf16.msra.mxu1 %v5751_v6  ;;  %v5787_v6 = vpack.c.bf16 %v4820_v0, %v4818_v63  ;;  %v4859_v63 = vld [vmem:[%s9201_s5 + $0x380] sm:$0xff]  ;;  %v4862_v0 = vld [vmem:[%s9201_s5 + $0x398] sm:$0xff] }
 0x2e0   :  { %5754 = vmatprep.subr.bf16.mxu1 %v5753_v8  ;;  %v5789_v8 = vpack.c.bf16 %v4825_v2, %v4823_v1  ;;  %v4864_v1 = vld [vmem:[%s9201_s5 + $0x3a8] sm:$0xff] }
 0x2e3   :  { %5756 = vmatpush1.bf16.msra.mxu1 %v5755_v18  ;;  %v5791_v18 = vpack.c.bf16 %v4824_v12, %v4822_v9  ;;  %v4863_v9 = vld [vmem:[%s9201_s5 + $0x3a0] sm:$0xff] }
 0x2e4   :  { %5758 = vmatprep.subr.bf16.mxu1 %v5757_v19  ;;  %v5793_v19 = vpack.c.bf16 %v4829_v17, %v4827_v16  ;;  %v4866_v16 = vld [vmem:[%s9201_s5 + $0x3b8] sm:$0xff]  ;;  %v4869_v17 = vld [vmem:[%s9201_s5 + $0x3c8] sm:$0xff] }
 0x2e7   :  { %5760 = vmatpush1.bf16.msra.mxu1 %v5759_v25  ;;  %v5795_v25 = vpack.c.bf16 %v4828_v21, %v4826_v20  ;;  %v4870_v20 = vld [vmem:[%s9201_s5 + $0x3d0] sm:$0xff]  ;;  %v4873_v21 = vld [vmem:[%s9201_s5 + $0x3e8] sm:$0xff] }
 0x2e8   :  { %5762 = vmatprep.subr.bf16.mxu1 %v5761_v26  ;;  %v5797_v26 = vpack.c.bf16 %v4833_v24, %v4831_v22  ;;  %v4875_v22 = vld [vmem:[%s9201_s5 + $0x3f8] sm:$0xff]  ;;  %v4865_v24 = vld [vmem:[%s9201_s5 + $0x3b0] sm:$0xff] }
 0x2e9   :  { %v5833_v27 = vpack.c.bf16 %v4875_v22, %v4873_v21  ;;  %v1758_v21 = vld [vmem:[%s9204_s8 + $0x28] sm:$0xff] }
 0x2eb   :  { %5764 = vmatpush1.bf16.msra.mxu1 %v5763_v31  ;;  %v4838_v31 = vld [vmem:[%s9201_s5 + $0x2d8] sm:$0xff] }
 0x2ec   :  { %5766 = vmatprep.subr.bf16.mxu1 %v5765_v32  ;;  %v4840_v32 = vld [vmem:[%s9201_s5 + $0x2e8] sm:$0xff] }
 0x2ef   :  { %5768 = vmatpush1.bf16.msra.mxu1 %v5767_v34  ;;  %v4834_v34 = vld [vmem:[%s9201_s5 + $0x2c0] sm:$0xff] }
 0x2f0   :  { %5770 = vmatprep.subr.bf16.mxu1 %v5769_v36  ;;  %v5801_v36 = vpack.c.bf16 %v4840_v32, %v4838_v31  ;;  %v4879_v31 = vld [vmem:[%s9201_s5 + $0x418] sm:$0xff] }
 0x2f3   :  { %5772 = vmatpush1.bf16.msra.mxu1 %v5771_v39  ;;  %v4841_v39 = vld [vmem:[%s9201_s5 + $0x2f0] sm:$0xff] }
 0x2f4   :  { %1213 = vmatprep.subr.mxu1 %v1072_v41  ;;  %v4843_v41 = vld [vmem:[%s9201_s5 + $0x300] sm:$0xff] }
 0x2f5   :  { %v5807_v44 = vpack.c.bf16 %v4843_v41, %v4841_v39  ;;  %v4885_v39 = vld [vmem:[%s9201_s5 + $0x448] sm:$0xff]  ;;  %v4887_v41 = vld [vmem:[%s9201_s5 + $0x458] sm:$0xff] }
 0x2f6   :  { %v5845_v43 = vpack.c.bf16 %v4887_v41, %v4885_v39  ;;  %v1771_v39 = vld [vmem:[%s9204_s8 + $0x90] sm:$0xff]  ;;  %v1772_v41 = vld [vmem:[%s9204_s8 + $0x98] sm:$0xff] }
 0x2f7   :  { %1214 = vmatpush1.msra.mxu1 %v1071_v48  ;;  %v4850_v48 = vld [vmem:[%s9201_s5 + $0x338] sm:$0xff] }
 0x2f8   :  { %4805 = vmatmul.mubr.msk.f32.vlgmr.msra.gmra.mrb[14].mxu1 %vm1109_vm9, %v7160_v40  ;;  %5774 = vmatprep.subr.bf16.mxu1 %v5773_v49  ;;  %v4821_v40 = vld [vmem:[%s9201_s5 + $0x258] sm:$0xff]  ;;  %v5811_v49 = vpack.c.bf16 %v4847_v47, %v4845_v46  ;;  %v4889_v46 = vld [vmem:[%s9201_s5 + $0x468] sm:$0xff] }
 0x2f9   :  { %5776 = vmatpush1.bf16.msra.mxu1 %v5775_v50  ;;  %1356 = vmatprep.mubr.f32.mxu1 %v6514_v7  ;;  %v5785_v62 = vpack.c.bf16 %v4821_v40, %v4819_v60  ;;  %v4860_v60 = vld [vmem:[%s9201_s5 + $0x388] sm:$0xff]  ;;  %v4891_v47 = vld [vmem:[%s9201_s5 + $0x478] sm:$0xff] }
 0x2fa   :  { %5778 = vmatprep.subr.bf16.mxu1 %v5777_v51  ;;  %v4849_v51 = vld [vmem:[%s9201_s5 + $0x330] sm:$0xff] }
 0x2fb   :  { %v5815_v55 = vpack.c.bf16 %v4851_v52, %v4849_v51  ;;  %v4893_v51 = vld [vmem:[%s9201_s5 + $0x488] sm:$0xff]  ;;  %v4895_v52 = vld [vmem:[%s9201_s5 + $0x498] sm:$0xff] }
 0x2fd   :  { %5780 = vmatpush1.bf16.msra.mxu1 %v5779_v56  ;;  %v5817_v56 = vpack.c.bf16 %v4856_v54, %v4854_v53  ;;  %v5853_v54 = vpack.c.bf16 %v4895_v52, %v4893_v51  ;;  %v4905_v51 = vld [vmem:[%s9204_s8 + $0xb0] sm:$0xff]  ;;  %v4906_v52 = vld [vmem:[%s9204_s8 + $0xb8] sm:$0xff] }
 0x2fe   :  { %5782 = vmatprep.subr.bf16.mxu1 %v5781_v57  ;;  %v4853_v57 = vld [vmem:[%s9201_s5 + $0x350] sm:$0xff] }
 0x2ff   :  { %v5819_v40 = vpack.c.bf16 %v4855_v58, %v4853_v57  ;;  %v4897_v58 = vld [vmem:[%s9201_s5 + $0x4a8] sm:$0xff] }
 0x301   :  { %5784 = vmatpush1.bf16.msra.mxu1 %v5783_v61  ;;  %v5821_v61 = vpack.c.bf16 %v4860_v60, %v4858_v59  ;;  %v4896_v59 = vld [vmem:[%s9201_s5 + $0x4a0] sm:$0xff] }
 0x302   :  { %5786 = vmatprep.subr.bf16.mxu1 %v5785_v62  ;;  %v4857_v62 = vld [vmem:[%s9201_s5 + $0x370] sm:$0xff]  ;;  %v1583_v60 = vld [vmem:[%s9202_s6] sm:$0x3] }
 0x303   :  { %v5823_v2 = vpack.c.bf16 %v4859_v63, %v4857_v62 }
 0x305   :  { %5788 = vmatpush1.bf16.msra.mxu1 %v5787_v6  ;;  %v5825_v6 = vpack.c.bf16 %v4864_v1, %v4862_v0 }
 0x306   :  { %5790 = vmatprep.subr.bf16.mxu1 %v5789_v8  ;;  %v4861_v8 = vld [vmem:[%s9201_s5 + $0x390] sm:$0xff] }
 0x307   :  { %v5827_v12 = vpack.c.bf16 %v4863_v9, %v4861_v8  ;;  %v1753_v8 = vld [vmem:[%s9204_s8] sm:$0xff]  ;;  %v1754_v9 = vld [vmem:[%s9204_s8 + $0x8] sm:$0xff] }
 0x309   :  { %5792 = vmatpush1.bf16.msra.mxu1 %v5791_v18  ;;  %v4871_v18 = vld [vmem:[%s9201_s5 + $0x3d8] sm:$0xff] }
 0x30a   :  { %5794 = vmatprep.subr.bf16.mxu1 %v5793_v19  ;;  %v4868_v19 = vld [vmem:[%s9201_s5 + $0x3c0] sm:$0xff] }
 0x30d   :  { %5796 = vmatpush1.bf16.msra.mxu1 %v5795_v25  ;;  %v5829_v25 = vpack.c.bf16 %v4871_v18, %v4869_v17  ;;  %v1755_v17 = vld [vmem:[%s9204_s8 + $0x10] sm:$0xff]  ;;  %v1756_v18 = vld [vmem:[%s9204_s8 + $0x18] sm:$0xff] }
 0x30e   :  { %5798 = vmatprep.subr.bf16.mxu1 %v5797_v26  ;;  %v5831_v26 = vpack.c.bf16 %v4870_v20, %v4868_v19  ;;  %v5861_v19 = vpack.c.bf16 %v1756_v18, %v1755_v17  ;;  %v1757_v20 = vld [vmem:[%s9204_s8 + $0x20] sm:$0xff]  ;;  %v4921_v18 = vld [vmem:[%s9204_s8 + $0x130] sm:$0xff] }
 0x30f   :  { %v5864_v22 = vpack.c.bf16 %v1758_v21, %v1757_v20  ;;  %v1940_v21 = vld [vmem:[%s9205_s9] sm:$0xff] }
 0x311   :  { %5800 = vmatpush1.bf16.msra.mxu1 %v5799_v29  ;;  %v4874_v29 = vld [vmem:[%s9201_s5 + $0x3f0] sm:$0xff] }
 0x312   :  { %1320 = vmatprep.subr.mxu1 %v4835_v30  ;;  %v4877_v30 = vld [vmem:[%s9201_s5 + $0x408] sm:$0xff]  ;;  %v5835_v32 = vpack.c.bf16 %v4874_v29, %v4872_v28 }
 0x313   :  { %v5837_v33 = vpack.c.bf16 %v4879_v31, %v4877_v30  ;;  %v1762_v28 = vld [vmem:[%s9204_s8 + $0x48] sm:$0xff]  ;;  %v1763_v30 = vld [vmem:[%s9204_s8 + $0x50] sm:$0xff]  ;;  %v1764_v31 = vld [vmem:[%s9204_s8 + $0x58] sm:$0xff] }
 0x315   :  { %1321 = vmatpush1.msra.mxu1 %v4834_v34  ;;  %v5839_v34 = vpack.c.bf16 %v4878_v14, %v4876_v13  ;;  %v1766_v13 = vld [vmem:[%s9204_s8 + $0x68] sm:$0xff] }
 0x316   :  { %4836 = vmatmul.mubr.msk.f32.vlgmr.msra.gmra.mrb[14].mxu1 %vm1109_vm9, %v7192_v3  ;;  %5802 = vmatprep.subr.bf16.mxu1 %v5801_v36  ;;  %v4852_v3 = vld [vmem:[%s9201_s5 + $0x348] sm:$0xff] }
 0x317   :  { %5804 = vmatpush1.bf16.msra.mxu1 %v5803_v37  ;;  %1465 = vmatprep.mubr.f32.mxu1 %v6514_v7  ;;  %v5813_v50 = vpack.c.bf16 %v4852_v3, %v4850_v48  ;;  %v4880_v37 = vld [vmem:[%s9201_s5 + $0x420] sm:$0xff]  ;;  %v5849_v3 = vpack.c.bf16 %v4891_v47, %v4889_v46  ;;  %v4904_v46 = vld [vmem:[%s9204_s8 + $0xa8] sm:$0xff] }
 0x318   :  { %5806 = vmatprep.subr.bf16.mxu1 %v5805_v38  ;;  %v4882_v38 = vld [vmem:[%s9201_s5 + $0x430] sm:$0xff] }
 0x319   :  { %v5843_v42 = vpack.c.bf16 %v4882_v38, %v4880_v37  ;;  %v1770_v37 = vld [vmem:[%s9204_s8 + $0x88] sm:$0xff] }
 0x31b   :  { %5808 = vmatpush1.bf16.msra.mxu1 %v5807_v44  ;;  %v4884_v44 = vld [vmem:[%s9201_s5 + $0x440] sm:$0xff] }
 0x31c   :  { %5810 = vmatprep.subr.bf16.mxu1 %v5809_v45  ;;  %v4886_v45 = vld [vmem:[%s9201_s5 + $0x450] sm:$0xff] }
 0x31d   :  { %v5847_v48 = vpack.c.bf16 %v4886_v45, %v4884_v44  ;;  %v4903_v45 = vld [vmem:[%s9204_s8 + $0xa0] sm:$0xff] }
 0x31f   :  { %5812 = vmatpush1.bf16.msra.mxu1 %v5811_v49  ;;  %v4888_v49 = vld [vmem:[%s9201_s5 + $0x460] sm:$0xff] }
 0x320   :  { %5814 = vmatprep.subr.bf16.mxu1 %v5813_v50  ;;  %v4890_v50 = vld [vmem:[%s9201_s5 + $0x470] sm:$0xff] }
 0x321   :  { %v5851_v53 = vpack.c.bf16 %v4890_v50, %v4888_v49  ;;  %v5888_v50 = vpack.c.bf16 %v4904_v46, %v4903_v45  ;;  %v4925_v46 = vld [vmem:[%s9205_s9 + $0x50] sm:$0xff] }
 0x323   :  { %5816 = vmatpush1.bf16.msra.mxu1 %v5815_v55  ;;  %v4892_v55 = vld [vmem:[%s9201_s5 + $0x480] sm:$0xff] }
 0x324   :  { %5818 = vmatprep.subr.bf16.mxu1 %v5817_v56  ;;  %v4894_v56 = vld [vmem:[%s9201_s5 + $0x490] sm:$0xff] }
 0x325   :  { %v5855_v57 = vpack.c.bf16 %v4894_v56, %v4892_v55  ;;  %v4908_v55 = vld [vmem:[%s9204_s8 + $0xc8] sm:$0xff] }
 0x327   :  { %5820 = vmatpush1.bf16.msra.mxu1 %v5819_v40  ;;  %v1588_v40 = vrot.slane %v1583_v60, %v6905_v11 }
 0x328   :  { %5822 = vmatprep.subr.bf16.mxu1 %v5821_v61  ;;  %v1592_v61 = vrot.slane %v1583_v60, %v6910_v15  ;;  %v4911_v60 = vld [vmem:[%s9204_s8 + $0xe0] sm:$0xff] }
 0x32b   :  { %5824 = vmatpush1.bf16.msra.mxu1 %v5823_v2 }
 0x32c   :  { %5826 = vmatprep.subr.bf16.mxu1 %v5825_v6 }
 0x32f   :  { %5828 = vmatpush1.bf16.msra.mxu1 %v5827_v12  ;;  %v4900_v12 = vld [vmem:[%s9203_s7 + $0x4] sm:$0xf] }
 0x330   :  { %1429 = vmatprep.subr.mxu1 %v4866_v16  ;;  %v5858_v16 = vpack.c.bf16 %v1754_v9, %v1753_v8  ;;  %v4918_v8 = vld [vmem:[%s9204_s8 + $0x118] sm:$0xff] }
 0x333   :  { %1430 = vmatpush1.msra.mxu1 %v4865_v24  ;;  %v1759_v24 = vld [vmem:[%s9204_s8 + $0x30] sm:$0xff] }
 0x334   :  { %4867 = vmatmul.mubr.msk.f32.vlgmr.msra.gmra.mrb[14].mxu1 %vm1109_vm9, %v7195_v4  ;;  %5830 = vmatprep.subr.bf16.mxu1 %v5829_v25  ;;  %v4883_v4 = vld [vmem:[%s9201_s5 + $0x438] sm:$0xff] }
 0x335   :  { %5832 = vmatpush1.bf16.msra.mxu1 %v5831_v26  ;;  %1574 = vmatprep.mubr.f32.mxu1 %v6514_v7  ;;  %v5841_v36 = vpack.c.bf16 %v4883_v4, %v4881_v35  ;;  %v1760_v25 = vld [vmem:[%s9204_s8 + $0x38] sm:$0xff]  ;;  %v1767_v35 = vld [vmem:[%s9204_s8 + $0x70] sm:$0xff] }
 0x336   :  { %5834 = vmatprep.subr.bf16.mxu1 %v5833_v27  ;;  %v5867_v26 = vpack.c.bf16 %v1760_v25, %v1759_v24  ;;  %v1761_v27 = vld [vmem:[%s9204_s8 + $0x40] sm:$0xff]  ;;  %v1768_v4 = vld [vmem:[%s9204_s8 + $0x78] sm:$0xff]  ;;  %v1942_v24 = vld [vmem:[%s9205_s9 + $0x10] sm:$0xff] }
 0x337   :  { %v5870_v29 = vpack.c.bf16 %v1762_v28, %v1761_v27  ;;  %v1944_v28 = vld [vmem:[%s9205_s9 + $0x20] sm:$0xff] }
 0x339   :  { %5836 = vmatpush1.bf16.msra.mxu1 %v5835_v32  ;;  %v5873_v32 = vpack.c.bf16 %v1764_v31, %v1763_v30  ;;  %v1946_v31 = vld [vmem:[%s9205_s9 + $0x30] sm:$0xff] }
 0x33a   :  { %5838 = vmatprep.subr.bf16.mxu1 %v5837_v33  ;;  %v1765_v33 = vld [vmem:[%s9204_s8 + $0x60] sm:$0xff] }
 0x33b   :  { %v5876_v14 = vpack.c.bf16 %v1766_v13, %v1765_v33  ;;  %v1948_v13 = vld [vmem:[%s9205_s9 + $0x40] sm:$0xff] }
 0x33d   :  { %5840 = vmatpush1.bf16.msra.mxu1 %v5839_v34  ;;  %v5879_v34 = vpack.c.bf16 %v1768_v4, %v1767_v35  ;;  %v2280_v4 = vld [vmem:[%s9207_s11] sm:$0xff] }
 0x33e   :  { %5842 = vmatprep.subr.bf16.mxu1 %v5841_v36  ;;  %v1769_v36 = vld [vmem:[%s9204_s8 + $0x80] sm:$0xff] }
 0x33f   :  { %v5882_v38 = vpack.c.bf16 %v1770_v37, %v1769_v36  ;;  %v2282_v36 = vld [vmem:[%s9207_s11 + $0x10] sm:$0xff] }
 0x341   :  { %5844 = vmatpush1.bf16.msra.mxu1 %v5843_v42  ;;  %v5885_v42 = vpack.c.bf16 %v1772_v41, %v1771_v39  ;;  %v2284_v41 = vld [vmem:[%s9207_s11 + $0x20] sm:$0xff] }
 0x342   :  { %5846 = vmatprep.subr.bf16.mxu1 %v5845_v43 }
 0x345   :  { %5848 = vmatpush1.bf16.msra.mxu1 %v5847_v48 }
 0x346   :  { %5850 = vmatprep.subr.bf16.mxu1 %v5849_v3 }
 0x349   :  { %5852 = vmatpush1.bf16.msra.mxu1 %v5851_v53  ;;  %v5891_v53 = vpack.c.bf16 %v4906_v52, %v4905_v51  ;;  %v4927_v51 = vld [vmem:[%s9205_s9 + $0x60] sm:$0xff]  ;;  %v4928_v52 = vld [vmem:[%s9205_s9 + $0x68] sm:$0xff] }
 0x34a   :  { %5854 = vmatprep.subr.bf16.mxu1 %v5853_v54  ;;  %v4907_v54 = vld [vmem:[%s9204_s8 + $0xc0] sm:$0xff] }
 0x34b   :  { %v5894_v56 = vpack.c.bf16 %v4908_v55, %v4907_v54  ;;  %v4929_v54 = vld [vmem:[%s9205_s9 + $0x70] sm:$0xff]  ;;  %v4930_v55 = vld [vmem:[%s9205_s9 + $0x78] sm:$0xff] }
 0x34d   :  { %5856 = vmatpush1.bf16.msra.mxu1 %v5855_v57  ;;  %v4909_v57 = vld [vmem:[%s9204_s8 + $0xd0] sm:$0xff] }
 0x34e   :  { %1538 = vmatprep.subr.mxu1 %v4897_v58  ;;  %v4910_v58 = vld [vmem:[%s9204_s8 + $0xd8] sm:$0xff] }
 0x351   :  { %1539 = vmatpush1.msra.mxu1 %v4896_v59  ;;  %v5897_v59 = vpack.c.bf16 %v4910_v58, %v4909_v57  ;;  %v4931_v57 = vld [vmem:[%s9205_s9 + $0x80] sm:$0xff]  ;;  %v4932_v58 = vld [vmem:[%s9205_s9 + $0x88] sm:$0xff] }
 0x352   :  { %4898 = vmatmul.mubr.msk.f32.vlgmr.msra.gmra.mrb[14].mxu1 %vm1109_vm9, %v7198_v5  ;;  %5977 = vmatprep.subr.bf16.mxu1 %v6516_v23  ;;  %v1599_v5 = vld [vmem:[%s9203_s7] sm:$0xf] }
 0x353   :  { %5457 = vmatprep.mubr.msk.f32.mxu1 %vm6517_vm12, %v6514_v7 }
 0x425   :  { %v1576_v62 = vpop.f32.mrb[14].mxu1 }
 0x426   :  { %v1595_v63 = vadd.f32 %v1588_v40, %v1576_v62  ;;  %v1578_v0 = vpop.f32.mrb[15].mxu1  ;;  %v4912_v40 = vld [vmem:[%s9204_s8 + $0xe8] sm:$0xff]  ;;  %v4913_v62 = vld [vmem:[%s9204_s8 + $0xf0] sm:$0xff] }
 0x427   :  { %v1596_v1 = vadd.f32 %v1592_v61, %v1578_v0  ;;  %v5900_v61 = vpack.c.bf16 %v4912_v40, %v4911_v60  ;;  %v4933_v60 = vld [vmem:[%s9205_s9 + $0x90] sm:$0xff]  ;;  %v4934_v40 = vld [vmem:[%s9205_s9 + $0x98] sm:$0xff] }
 0x428   :  { %v1597_v6 = vmax.f32 %v1595_v63, 0.0  ;;  %v4914_v63 = vld [vmem:[%s9204_s8 + $0xf8] sm:$0xff] }
 0x429   :  { %v1598_v2 = vmax.f32 %v1596_v1, 0.0  ;;  %v5903_v0 = vpack.c.bf16 %v4914_v63, %v4913_v62  ;;  %v4915_v1 = vld [vmem:[%s9204_s8 + $0x100] sm:$0xff]  ;;  %v4937_v63 = vld [vmem:[%s9205_s9 + $0xa8] sm:$0xff] }
 0x42a   :  { %v4936_v62 = vld [vmem:[%s9205_s9 + $0xa0] sm:$0xff] }
 0x42b   :  { %1604 = vmatprep.subr.mxu0 %v1598_v2 }
 0x42c   :  { %1605 = vmatpush1.msra.mxu0 %v1597_v6 }
 0x42d   :  { %4899 = vmatmul.mubr.msk.f32.vlgmr.msra.gmra.mrb[10].mxu0 %vm1600_vm10, %v1599_v5  ;;  %1680 = vmatprep.subr.mxu0 %v1598_v2  ;;  %v4916_v2 = vld [vmem:[%s9204_s8 + $0x108] sm:$0xff]  ;;  %v4917_v5 = vld [vmem:[%s9204_s8 + $0x110] sm:$0xff] }
 0x42e   :  { %1681 = vmatpush1.msra.mxu0 %v1597_v6  ;;  %1744 = vmatprep.mubr.f32.mxu0 %v6514_v7  ;;  %v5906_v6 = vpack.c.bf16 %v4916_v2, %v4915_v1  ;;  %v5909_v9 = vpack.c.bf16 %v4918_v8, %v4917_v5  ;;  %v4938_v2 = vld [vmem:[%s9205_s9 + $0xb0] sm:$0xff]  ;;  %v4940_v8 = vld [vmem:[%s9205_s9 + $0xc0] sm:$0xff] }
 0x42f   :  { %5857 = vmatprep.subr.bf16.mxu0 %v6516_v23 }
 0x431   :  { %4901 = vmatmul.mubr.msk.f32.vlgmr.msra.gmra.mrb[12].mxu0 %vm1600_vm10, %v4900_v12  ;;  %v4919_v12 = vld [vmem:[%s9204_s8 + $0x120] sm:$0xff] }
 0x432   :  { %5859 = vmatpush1.bf16.msra.mxu0 %v5858_v16  ;;  %v4920_v16 = vld [vmem:[%s9204_s8 + $0x128] sm:$0xff] }
 0x433   :  { %5860 = vmatprep.subr.bf16.mxu0 %v6516_v23  ;;  %v5912_v17 = vpack.c.bf16 %v4920_v16, %v4919_v12  ;;  %v4942_v16 = vld [vmem:[%s9205_s9 + $0xd0] sm:$0xff] }
 0x436   :  { %5862 = vmatpush1.bf16.msra.mxu0 %v5861_v19  ;;  %v4922_v19 = vld [vmem:[%s9204_s8 + $0x138] sm:$0xff] }
 0x437   :  { %5863 = vmatprep.subr.bf16.mxu0 %v6516_v23  ;;  %v5915_v20 = vpack.c.bf16 %v4922_v19, %v4921_v18  ;;  %v4944_v19 = vld [vmem:[%s9205_s9 + $0xe0] sm:$0xff] }
 0x43a   :  { %5865 = vmatpush1.bf16.msra.mxu0 %v5864_v22  ;;  %v1941_v22 = vld [vmem:[%s9205_s9 + $0x8] sm:$0xff] }
 0x43b   :  { %5866 = vmatprep.subr.bf16.mxu0 %v6516_v23  ;;  %v5918_v25 = vpack.c.bf16 %v1941_v22, %v1940_v21  ;;  %v4947_v22 = vld [vmem:[%s9205_s9 + $0xf0] sm:$0xff] }
 0x43e   :  { %5868 = vmatpush1.bf16.msra.mxu0 %v5867_v26  ;;  %v1943_v26 = vld [vmem:[%s9205_s9 + $0x18] sm:$0xff] }
 0x43f   :  { %5869 = vmatprep.subr.bf16.mxu0 %v6516_v23  ;;  %v5921_v27 = vpack.c.bf16 %v1943_v26, %v1942_v24  ;;  %v4948_v24 = vld [vmem:[%s9205_s9 + $0xf8] sm:$0xff] }
 0x442   :  { %5871 = vmatpush1.bf16.msra.mxu0 %v5870_v29  ;;  %v1945_v29 = vld [vmem:[%s9205_s9 + $0x28] sm:$0xff] }
 0x443   :  { %5872 = vmatprep.subr.bf16.mxu0 %v6516_v23  ;;  %v5924_v30 = vpack.c.bf16 %v1945_v29, %v1944_v28  ;;  %v4950_v28 = vld [vmem:[%s9205_s9 + $0x108] sm:$0xff] }
 0x446   :  { %5874 = vmatpush1.bf16.msra.mxu0 %v5873_v32  ;;  %v1947_v32 = vld [vmem:[%s9205_s9 + $0x38] sm:$0xff] }
 0x447   :  { %5875 = vmatprep.subr.bf16.mxu0 %v6516_v23  ;;  %v5927_v33 = vpack.c.bf16 %v1947_v32, %v1946_v31  ;;  %v4952_v31 = vld [vmem:[%s9205_s9 + $0x118] sm:$0xff] }
 0x44a   :  { %5877 = vmatpush1.bf16.msra.mxu0 %v5876_v14  ;;  %v1949_v14 = vld [vmem:[%s9205_s9 + $0x48] sm:$0xff] }
 0x44b   :  { %5878 = vmatprep.subr.bf16.mxu0 %v6516_v23  ;;  %v5930_v35 = vpack.c.bf16 %v1949_v14, %v1948_v13  ;;  %v4954_v13 = vld [vmem:[%s9205_s9 + $0x128] sm:$0xff] }
 0x44e   :  { %5880 = vmatpush1.bf16.msra.mxu0 %v5879_v34  ;;  %v2281_v34 = vld [vmem:[%s9207_s11 + $0x8] sm:$0xff] }
 0x44f   :  { %5881 = vmatprep.subr.bf16.mxu0 %v6516_v23  ;;  %v5978_v37 = vpack.c.bf16 %v2281_v34, %v2280_v4  ;;  %v4956_v4 = vld [vmem:[%s9205_s9 + $0x138] sm:$0xff] }
 0x451   :  { %5979 = vmatpush3.bf16.msra.mxu1 %v5978_v37  ;;  %v4965_v37 = vld [vmem:[%s9197_s1 + $0x48] sm:$0xff] }
 0x452   :  { %5883 = vmatpush1.bf16.msra.mxu0 %v5882_v38  ;;  %v2283_v38 = vld [vmem:[%s9207_s11 + $0x18] sm:$0xff]  ;;  %5980 = vmatprep.subr.bf16.mxu1 %v6516_v23 }
 0x453   :  { %5884 = vmatprep.subr.bf16.mxu0 %v6516_v23  ;;  %v5981_v39 = vpack.c.bf16 %v2283_v38, %v2282_v36  ;;  %v4967_v38 = vld [vmem:[%s9197_s1 + $0x58] sm:$0xff] }
 0x455   :  { %5982 = vmatpush3.bf16.msra.mxu1 %v5981_v39  ;;  %v2286_v39 = vld [vmem:[%s9207_s11 + $0x30] sm:$0x3] }
 0x456   :  { %5886 = vmatpush1.bf16.msra.mxu0 %v5885_v42  ;;  %v2285_v42 = vld [vmem:[%s9207_s11 + $0x28] sm:$0xff]  ;;  %5983 = vmatprep.subr.bf16.mxu1 %v6516_v23 }
 0x457   :  { %5887 = vmatprep.subr.bf16.mxu0 %v6516_v23 }
 0x500   :  { %v1670_v43 = vpop.f32.mrb[10].mxu0 }
 0x501   :  { %v1672_v44 = vpop.f32.mrb[11].mxu0 }
 0x504   :  { %v1746_v47 = vpop.f32.mrb[12].mxu0 }
 0x505   :  { %v1751_v48 = vmax.f32 %v1670_v43, %v1746_v47  ;;  %v1748_v3 = vpop.f32.mrb[13].mxu0  ;;  %v5984_v43 = vpack.c.bf16 %v2285_v42, %v2284_v41  ;;  %v4926_v47 = vld [vmem:[%s9205_s9 + $0x58] sm:$0xff]  ;;  %v5986_v41 = vpack.c.bf16 %v4967_v38, %v4965_v37  ;;  %v4964_v42 = vld [vmem:[%s9197_s1 + $0x40] sm:$0xff]  ;;  %v5000_v37 = vld [vmem:[%s9197_s1 + $0xe8] sm:$0xff] }
 0x506   :  { %v1752_v49 = vmax.f32 %v1672_v44, %v1748_v3  ;;  %v5933_v3 = vpack.c.bf16 %v4926_v47, %v4925_v46  ;;  %v4971_v46 = vld [vmem:[%s9197_s1 + $0x78] sm:$0xf] }
 0x507   :  { %5985 = vmatpush3.bf16.msra.mxu1 %v5984_v43  ;;  %v4966_v43 = vld [vmem:[%s9197_s1 + $0x50] sm:$0xff]  ;;  %v5002_v38 = vld [vmem:[%s9197_s1 + $0xf8] sm:$0xf] }
 0x508   :  { %4902 = vmatprep.mubr.msk.f32.mxu0 %vm1773_vm11, %v1752_v49  ;;  %5455 = vmatprep.subr.mxu1 %v6514_v7 }
 0x509   :  { %1842 = vmatmul.mubr.f32.vlgmr.msra.gmra.mrb[14].mxu0 %v1751_v48 }
 0x50a   :  { %5889 = vmatpush1.bf16.msra.mxu0 %v5888_v50  ;;  %4923 = vmatprep.mubr.msk.f32.mxu0 %vm1773_vm11, %v1752_v49 }
 0x50b   :  { %5890 = vmatprep.subr.bf16.mxu0 %v6516_v23  ;;  %5456 = vmatpush3.msk.msra.mxu1 %vm2292_vm14, %v2286_v39 }
 0x50c   :  { %5987 = vmatprep.subr.bf16.mxu1 %v5986_v41 }
 0x50e   :  { %5892 = vmatpush1.bf16.msra.mxu0 %v5891_v53  ;;  %v5936_v53 = vpack.c.bf16 %v4928_v52, %v4927_v51  ;;  %v4970_v52 = vld [vmem:[%s9197_s1 + $0x70] sm:$0xf] }
 0x50f   :  { %5893 = vmatprep.subr.bf16.mxu0 %v6516_v23 }
 0x512   :  { %5895 = vmatpush1.bf16.msra.mxu0 %v5894_v56  ;;  %v5939_v56 = vpack.c.bf16 %v4930_v55, %v4929_v54  ;;  %v7921_v54 = vld [vmem:[%s9196_s0 + $0x28] sm:$0xff] }
 0x513   :  { %5896 = vmatprep.subr.bf16.mxu0 %v6516_v23  ;;  %v2374_v55 = vld [vmem:[%s9197_s1 + $0x8] sm:$0xff] }
 0x516   :  { %5898 = vmatpush1.bf16.msra.mxu0 %v5897_v59  ;;  %v5942_v59 = vpack.c.bf16 %v4932_v58, %v4931_v57 }
 0x517   :  { %5899 = vmatprep.subr.bf16.mxu0 %v6516_v23 }
 0x51a   :  { %5901 = vmatpush1.bf16.msra.mxu0 %v5900_v61  ;;  %v5945_v61 = vpack.c.bf16 %v4934_v40, %v4933_v60  ;;  %v7938_v60 = vld [vmem:[%s9196_s0 + $0x30] sm:$0xff] }
 0x51b   :  { %5902 = vmatprep.subr.bf16.mxu0 %v6516_v23  ;;  %v2601_v41 = vrot.slane %v7938_v60, 2 }
 0x51e   :  { %5904 = vmatpush1.bf16.msra.mxu0 %v5903_v0  ;;  %v5948_v0 = vpack.c.bf16 %v4937_v63, %v4936_v62  ;;  %v2375_v62 = vld [vmem:[%s9197_s1 + $0x10] sm:$0xff]  ;;  %v2378_v63 = vld [vmem:[%s9197_s1 + $0x28] sm:$0xff] }
 0x51f   :  { %5905 = vmatprep.subr.bf16.mxu0 %v6516_v23 }
 0x522   :  { %5907 = vmatpush1.bf16.msra.mxu0 %v5906_v6  ;;  %v4939_v6 = vld [vmem:[%s9205_s9 + $0xb8] sm:$0xff] }
 0x523   :  { %5908 = vmatprep.subr.bf16.mxu0 %v6516_v23  ;;  %v5951_v5 = vpack.c.bf16 %v4939_v6, %v4938_v2  ;;  %v2396_v2 = vrot.slane %v7938_v60, 1 }
 0x526   :  { %5910 = vmatpush1.bf16.msra.mxu0 %v5909_v9  ;;  %v4941_v9 = vld [vmem:[%s9205_s9 + $0xc8] sm:$0xff] }
 0x527   :  { %5911 = vmatprep.subr.bf16.mxu0 %v6516_v23  ;;  %v5954_v12 = vpack.c.bf16 %v4941_v9, %v4940_v8  ;;  %v2377_v9 = vld [vmem:[%s9197_s1 + $0x20] sm:$0xff] }
 0x52a   :  { %5913 = vmatpush1.bf16.msra.mxu0 %v5912_v17  ;;  %v4943_v17 = vld [vmem:[%s9205_s9 + $0xd8] sm:$0xff] }
 0x52b   :  { %5914 = vmatprep.subr.bf16.mxu0 %v6516_v23  ;;  %v5957_v18 = vpack.c.bf16 %v4943_v17, %v4942_v16  ;;  %v4983_v16 = vld [vmem:[%s9197_s1 + $0x88] sm:$0xff]  ;;  %v4985_v17 = vld [vmem:[%s9197_s1 + $0x98] sm:$0xff] }
 0x52e   :  { %5916 = vmatpush1.bf16.msra.mxu0 %v5915_v20  ;;  %v4945_v20 = vld [vmem:[%s9205_s9 + $0xe8] sm:$0xff] }
 0x52f   :  { %5917 = vmatprep.subr.bf16.mxu0 %v6516_v23  ;;  %v5960_v21 = vpack.c.bf16 %v4945_v20, %v4944_v19 }
 0x531   :  { %1933 = vmatmul.mubr.f32.vlgmr.msra.gmra.mrb[16].mxu0 %v1751_v48 }
 0x532   :  { %5919 = vmatpush3.bf16.msra.mxu0 %v5918_v25  ;;  %5371 = vmatprep.mubr.msk.f32.mxu0 %vm6517_vm12, %v6514_v7  ;;  %v5963_v25 = vpack.c.bf16 %v4948_v24, %v4947_v22  ;;  %v4982_v24 = vld [vmem:[%s9197_s1 + $0x80] sm:$0xff] }
 0x533   :  { %5920 = vmatprep.subr.bf16.mxu0 %v6516_v23 }
 0x536   :  { %5922 = vmatpush3.bf16.msra.mxu0 %v5921_v27  ;;  %v4949_v27 = vld [vmem:[%s9205_s9 + $0x100] sm:$0xff] }
 0x537   :  { %5923 = vmatprep.subr.bf16.mxu0 %v6516_v23  ;;  %v5966_v29 = vpack.c.bf16 %v4950_v28, %v4949_v27  ;;  %v4989_v27 = vld [vmem:[%s9197_s1 + $0xb8] sm:$0xf] }
 0x53a   :  { %5925 = vmatpush3.bf16.msra.mxu0 %v5924_v30  ;;  %v4951_v30 = vld [vmem:[%s9205_s9 + $0x110] sm:$0xff] }
 0x53b   :  { %5926 = vmatprep.subr.bf16.mxu0 %v6516_v23  ;;  %v5969_v32 = vpack.c.bf16 %v4952_v31, %v4951_v30  ;;  %v4986_v30 = vld [vmem:[%s9197_s1 + $0xa0] sm:$0xff]  ;;  %v4988_v31 = vld [vmem:[%s9197_s1 + $0xb0] sm:$0xf] }
 0x53e   :  { %5928 = vmatpush3.bf16.msra.mxu0 %v5927_v33  ;;  %v4953_v33 = vld [vmem:[%s9205_s9 + $0x120] sm:$0xff] }
 0x53f   :  { %5929 = vmatprep.subr.bf16.mxu0 %v6516_v23  ;;  %v5972_v14 = vpack.c.bf16 %v4954_v13, %v4953_v33  ;;  %v4998_v33 = vld [vmem:[%s9197_s1 + $0xd8] sm:$0xff]  ;;  %v6013_v13 = vpack.c.bf16 %v4988_v31, %v4986_v30  ;;  %v3144_v30 = vld [vmem:[%s9200_s4 + $0x40] sm:$0xff]  ;;  %v3145_v31 = vld [vmem:[%s9200_s4 + $0x48] sm:$0xff] }
 0x542   :  { %5931 = vmatpush3.bf16.msra.mxu0 %v5930_v35  ;;  %v4955_v35 = vld [vmem:[%s9205_s9 + $0x130] sm:$0xff] }
 0x543   :  { %5932 = vmatprep.subr.bf16.mxu0 %v6516_v23  ;;  %v5975_v34 = vpack.c.bf16 %v4956_v4, %v4955_v35  ;;  %v2599_v4 = vrot.slane %v7921_v54, 2 }
 0x5dc   :  { %v1843_v44 = vpop.f32.mrb[14].mxu0 }
 0x5dd   :  { %v1845_v45 = vpop.f32.mrb[15].mxu0 }
 0x5de   :  { %v4969_v45 = vld [vmem:[%s9197_s1 + $0x68] sm:$0xff] }
 0x5df   :  { %v5990_v51 = vpack.c.bf16 %v4971_v46, %v4969_v45  ;;  %v5001_v45 = vld [vmem:[%s9197_s1 + $0xf0] sm:$0xf]  ;;  %v5009_v46 = vld [vmem:[%s9197_s1 + $0x108] sm:$0xff] }
 0x604   :  { %v1934_v48 = vpop.f32.mrb[16].mxu0 }
 0x605   :  { %v7767_v49 = vmax.f32 %v1843_v44, %v1934_v48  ;;  %v1936_v50 = vpop.f32.mrb[17].mxu0  ;;  %v1939_v44 = vld [vmem:[%s9206_s10] sm:$0x1]  ;;  %v5988_v48 = vpack.c.bf16 %v4966_v43, %v4964_v42  ;;  %v6020_v43 = vpack.c.bf16 %v5002_v38, %v5000_v37  ;;  %v3151_v37 = vld [vmem:[%s9200_s4 + $0x78] sm:$0xff] }
 0x607   :  { %5372 = vmatmul.mubr.msk.f32.vlgmr.msra.gmra.mrb[18].mxu0 %vm1950_vm13, %v7767_v49  ;;  %v2036_v1 = vrot.slane %v7767_v49, 1  ;;  %v2121_v26 = vrot.slane %v7767_v49, 2  ;;  %v2206_v36 = vrot.slane %v7767_v49, 3 }
 0x608   :  { %5934 = vmatpush3.bf16.msra.mxu0 %v5933_v3  ;;  %5394 = vmatprep.mubr.msk.f32.mxu0 %vm6517_vm12, %v6514_v7  ;;  %v4968_v3 = vld [vmem:[%s9197_s1 + $0x60] sm:$0xff] }
 0x609   :  { %5935 = vmatprep.subr.bf16.mxu0 %v6516_v23  ;;  %v5993_v57 = vpack.c.bf16 %v4970_v52, %v4968_v3 }
 0x60c   :  { %5937 = vmatpush3.bf16.msra.mxu0 %v5936_v53  ;;  %v7916_v53 = vld [vmem:[%s9196_s0 + $0x20] sm:$0xff] }
 0x60d   :  { %5938 = vmatprep.subr.bf16.mxu0 %v6516_v23  ;;  %v2393_v58 = vrot.slane %v7916_v53, 1  ;;  %v2598_v35 = vrot.slane %v7916_v53, 2  ;;  %v2714_v52 = vrot.slane %v7916_v53, 3 }
 0x60f   :  { %v2600_v39 = vsel %vm279_vm5, %v2598_v35, %v2599_v4  ;;  %v3148_v35 = vld [vmem:[%s9200_s4 + $0x60] sm:$0xff] }
 0x610   :  { %5940 = vmatpush3.bf16.msra.mxu0 %v5939_v56  ;;  %v2376_v56 = vld [vmem:[%s9197_s1 + $0x18] sm:$0xff] }
 0x611   :  { %5941 = vmatprep.subr.bf16.mxu0 %v6516_v23  ;;  %v5996_v40 = vpack.c.bf16 %v2376_v56, %v2374_v55  ;;  %v2715_v55 = vrot.slane %v7921_v54, 3  ;;  %v5008_v56 = vld [vmem:[%s9197_s1 + $0x100] sm:$0xff] }
 0x614   :  { %5943 = vmatpush3.bf16.msra.mxu0 %v5942_v59  ;;  %v2394_v59 = vrot.slane %v7921_v54, 1 }
 0x615   :  { %5944 = vmatprep.subr.bf16.mxu0 %v6516_v23 }
 0x618   :  { %5946 = vmatpush3.bf16.msra.mxu0 %v5945_v61  ;;  %v2373_v61 = vld [vmem:[%s9197_s1] sm:$0xff] }
 0x619   :  { %5947 = vmatprep.subr.bf16.mxu0 %v6516_v23  ;;  %v5998_v6 = vpack.c.bf16 %v2375_v62, %v2373_v61  ;;  %v2717_v61 = vrot.slane %v7938_v60, 3 }
 0x61b   :  { %5395 = vmatmul.mubr.msk.f32.vlgmr.msra.gmra.mrb[18].mxu0 %vm1950_vm13, %v2036_v1  ;;  %v2395_v1 = vsel %vm70_vm3, %v2393_v58, %v2394_v59  ;;  %v5013_v58 = vld [vmem:[%s9197_s1 + $0x128] sm:$0xff] }
 0x61c   :  { %5949 = vmatpush3.bf16.msra.mxu0 %v5948_v0  ;;  %5417 = vmatprep.mubr.msk.f32.mxu0 %vm6517_vm12, %v6514_v7  ;;  %v2380_v0 = vld [vmem:[%s9197_s1 + $0x38] sm:$0xf] }
 0x61d   :  { %5950 = vmatprep.subr.bf16.mxu0 %v6516_v23  ;;  %v6000_v8 = vpack.c.bf16 %v2380_v0, %v2378_v63  ;;  %v5012_v0 = vld [vmem:[%s9197_s1 + $0x120] sm:$0xff] }
 0x620   :  { %5952 = vmatpush3.bf16.msra.mxu0 %v5951_v5  ;;  %v7959_v5 = vld [vmem:[%s9196_s0 + $0x38] sm:$0xf] }
 0x621   :  { %5953 = vmatprep.subr.bf16.mxu0 %v6516_v23  ;;  %v2398_v19 = vrot.slane %v7959_v5, 1  ;;  %v2603_v3 = vrot.slane %v7959_v5, 2 }
 0x623   :  { %v2399_v22 = vsel %vm70_vm3, %v2396_v2, %v2398_v19  ;;  %v3137_v19 = vld [vmem:[%s9200_s4 + $0x8] sm:$0xff] }
 0x624   :  { %5955 = vmatpush3.bf16.msra.mxu0 %v5954_v12  ;;  %v2379_v12 = vld [vmem:[%s9197_s1 + $0x30] sm:$0xf] }
 0x625   :  { %5956 = vmatprep.subr.bf16.mxu0 %v6516_v23  ;;  %v6003_v20 = vpack.c.bf16 %v2379_v12, %v2377_v9  ;;  %v2830_v12 = vrot.slane %v7916_v53, 4 }
 0x628   :  { %5958 = vmatpush3.bf16.msra.mxu0 %v5957_v18  ;;  %v2397_v18 = vsel %vm70_vm3, %v2394_v59, %v2396_v2  ;;  %v5015_v59 = vld [vmem:[%s9197_s1 + $0x138] sm:$0xf]  ;;  %v2718_v2 = vsel %vm397_vm6, %v2715_v55, %v2717_v61 }
 0x629   :  { %5959 = vmatprep.subr.bf16.mxu0 %v6516_v23  ;;  %v6030_v63 = vpack.c.bf16 %v5015_v59, %v5013_v58 }
 0x62c   :  { %5961 = vmatpush3.bf16.msra.mxu0 %v5960_v21  ;;  %v6006_v21 = vpack.c.bf16 %v4985_v17, %v4983_v16  ;;  %v2831_v16 = vrot.slane %v7921_v54, 4 }
 0x62d   :  { %5962 = vmatprep.subr.bf16.mxu0 %v6516_v23 }
 0x62e   :  { %v2832_v17 = vsel %vm85_vm0, %v2830_v12, %v2831_v16 }
 0x62f   :  { %5418 = vmatmul.mubr.msk.f32.vlgmr.msra.gmra.mrb[18].mxu0 %vm1950_vm13, %v2121_v26  ;;  %v4987_v26 = vld [vmem:[%s9197_s1 + $0xa8] sm:$0xff] }
 0x630   :  { %5964 = vmatpush3.bf16.msra.mxu0 %v5963_v25  ;;  %5440 = vmatprep.mubr.msk.f32.mxu0 %vm6517_vm12, %v6514_v7  ;;  %v4984_v25 = vld [vmem:[%s9197_s1 + $0x90] sm:$0xff] }
 0x631   :  { %5965 = vmatprep.subr.bf16.mxu0 %v6516_v23  ;;  %v6008_v28 = vpack.c.bf16 %v4984_v25, %v4982_v24  ;;  %v3140_v24 = vld [vmem:[%s9200_s4 + $0x20] sm:$0xff]  ;;  %v3141_v25 = vld [vmem:[%s9200_s4 + $0x28] sm:$0xff] }
 0x634   :  { %5967 = vmatpush3.bf16.msra.mxu0 %v5966_v29  ;;  %v6010_v29 = vpack.c.bf16 %v4989_v27, %v4987_v26  ;;  %v6051_v26 = vpack.c.bf16 %v3141_v25, %v3140_v24  ;;  %v3142_v27 = vld [vmem:[%s9200_s4 + $0x30] sm:$0xff]  ;;  %v5030_v24 = vld [vmem:[%s9200_s4 + $0xf8] sm:$0xff] }
 0x635   :  { %5968 = vmatprep.subr.bf16.mxu0 %v6516_v23  ;;  %v5023_v25 = vld [vmem:[%s9199_s3 + $0x10] sm:$0xff] }
 0x638   :  { %5970 = vmatpush3.bf16.msra.mxu0 %v5969_v32  ;;  %v4996_v32 = vld [vmem:[%s9197_s1 + $0xc8] sm:$0xff] }
 0x639   :  { %5971 = vmatprep.subr.bf16.mxu0 %v6516_v23 }
 0x63c   :  { %5973 = vmatpush3.bf16.msra.mxu0 %v5972_v14  ;;  %v6016_v14 = vpack.c.bf16 %v4998_v33, %v4996_v32  ;;  %v6057_v32 = vpack.c.bf16 %v3145_v31, %v3144_v30  ;;  %v3146_v33 = vld [vmem:[%s9200_s4 + $0x50] sm:$0xff] }
 0x63d   :  { %5974 = vmatprep.subr.bf16.mxu0 %v6516_v23  ;;  %v5033_v31 = vld [vmem:[%s9200_s4 + $0x110] sm:$0xff] }
 0x640   :  { %5976 = vmatpush3.bf16.msra.mxu0 %v5975_v34  ;;  %v4995_v34 = vld [vmem:[%s9197_s1 + $0xc0] sm:$0xff] }
 0x643   :  { %5441 = vmatmul.mubr.msk.f32.vlgmr.msra.gmra.mrb[18].mxu0 %vm1950_vm13, %v2206_v36  ;;  %v4997_v36 = vld [vmem:[%s9197_s1 + $0xd0] sm:$0xff] }
 0x644   :  { %3034 = vmatprep.mubr.f32.mxu0 %v6514_v7  ;;  %v6018_v42 = vpack.c.bf16 %v4997_v36, %v4995_v34  ;;  %v3150_v36 = vld [vmem:[%s9200_s4 + $0x70] sm:$0xff] }
 0x645   :  { %v6066_v38 = vpack.c.bf16 %v3151_v37, %v3150_v36  ;;  %v5039_v37 = vld [vmem:[%s9200_s4 + $0x140] sm:$0xff] }
 0x716   :  { %v2275_v47 = vpop.f32.mrb[18].mxu0 }
 0x717   :  { %v6409_v49 = vadd.f32 %v2275_v47, %v1939_v44  ;;  %v5442_v50 = vpop.f32.mrb[19].mxu0  ;;  %v4999_v44 = vld [vmem:[%s9197_s1 + $0xe0] sm:$0xff]  ;;  %v5011_v47 = vld [vmem:[%s9197_s1 + $0x118] sm:$0xff] }
 0x718   :  { %v6026_v50 = vpack.c.bf16 %v5011_v47, %v5009_v46  ;;  %v3156_v46 = vld [vmem:[%s9200_s4 + $0xa0] sm:$0xff]  ;;  %v3157_v47 = vld [vmem:[%s9200_s4 + $0xa8] sm:$0xff] }
 0x719   :  { %5458 = vmatmul.mubr.msk.f32.vlgmr.msra.gmra.mrb[16].mxu1 %vm2288_vm15, %v6409_v49  ;;  %v6023_v49 = vpack.c.bf16 %v5001_v45, %v4999_v44  ;;  %v3155_v44 = vld [vmem:[%s9200_s4 + $0x98] sm:$0xff] }
 0x71a   :  { %5989 = vmatpush1.bf16.msra.mxu1 %v5988_v48  ;;  %2476 = vmatprep.mubr.f32.mxu1 %v6514_v7  ;;  %v2602_v48 = vsel %vm279_vm5, %v2599_v4, %v2601_v41  ;;  %v3149_v4 = vld [vmem:[%s9200_s4 + $0x68] sm:$0xff] }
 0x71b   :  { %5992 = vmatprep.subr.msk.bf16.mxu1 %vm6610_vm2, %v5990_v51  ;;  %v2604_v51 = vsel %vm279_vm5, %v2601_v41, %v2603_v3  ;;  %v6063_v34 = vpack.c.bf16 %v3149_v4, %v3148_v35  ;;  %v3153_v41 = vld [vmem:[%s9200_s4 + $0x88] sm:$0xff]  ;;  %v2287_v3 = vld [vmem:[%s9208_s12] sm:$0x1]  ;;  %v5037_v4 = vld [vmem:[%s9200_s4 + $0x130] sm:$0xff] }
 0x71e   :  { %5995 = vmatpush1.bf16.msk.msra.mxu1 %vm6610_vm2, %v5993_v57  ;;  %v5010_v57 = vld [vmem:[%s9197_s1 + $0x110] sm:$0xff] }
 0x71f   :  { %5997 = vmatprep.subr.bf16.mxu1 %v5996_v40  ;;  %v2716_v40 = vsel %vm397_vm6, %v2714_v52, %v2715_v55  ;;  %v6028_v62 = vpack.c.bf16 %v5010_v57, %v5008_v56  ;;  %v2938_v57 = vld [vmem:[%s9198_s2] sm:$0x3] }
 0x720   :  { %v2943_v58 = vrot.slane %v2938_v57, %v6905_v11 }
 0x721   :  { %4974 = vmatmul.mubr.msk.f32.vlgmr.msra.gmra.mrb[18].mxu1 %vm78_vm4, %v2395_v1  ;;  %v5014_v1 = vld [vmem:[%s9197_s1 + $0x130] sm:$0xf] }
 0x722   :  { %2482 = vmatprep.mubr.f32.mxu1 %v6514_v7  ;;  %5999 = vmatpush1.bf16.msra.mxu1 %v5998_v6  ;;  %v2719_v6 = vrot.slane %v7959_v5, 3 }
 0x723   :  { %6002 = vmatprep.subr.msk.bf16.mxu1 %vm6610_vm2, %v6000_v8  ;;  %v6033_v8 = vpack.c.bf16 %v5014_v1, %v5012_v0 }
 0x724   :  { %v2720_v9 = vsel %vm397_vm6, %v2717_v61, %v2719_v6 }
 0x725   :  { %4975 = vmatmul.mubr.msk.f32.gmra.mrb[20].mxu1 %vm78_vm4, %v2397_v18  ;;  %v2833_v18 = vrot.slane %v7938_v60, 4 }
 0x726   :  { %2488 = vmatprep.mubr.f32.mxu1 %v6514_v7  ;;  %6005 = vmatpush1.bf16.msk.msra.mxu1 %vm6610_vm2, %v6003_v20 }
 0x727   :  { %6007 = vmatprep.subr.bf16.mxu1 %v6006_v21  ;;  %v2834_v10 = vsel %vm85_vm0, %v2831_v16, %v2833_v18  ;;  %v3139_v21 = vld [vmem:[%s9200_s4 + $0x18] sm:$0xff] }
 0x729   :  { %4976 = vmatmul.mubr.msk.f32.gmra.mrb[22].mxu1 %vm78_vm4, %v2399_v22 }
 0x72a   :  { %2571 = vmatprep.mubr.f32.mxu1 %v6514_v7 }
 0x72d   :  { %4979 = vmatmul.mubr.msk.f32.vlgmr.msra.gmra.mrb[18].mxu1 %vm78_vm4, %v7916_v53  ;;  %v2835_v53 = vrot.slane %v7959_v5, 4  ;;  %v3138_v5 = vld [vmem:[%s9200_s4 + $0x10] sm:$0xff] }
 0x72e   :  { %2577 = vmatprep.mubr.f32.mxu1 %v6514_v7  ;;  %6009 = vmatpush1.bf16.msra.mxu1 %v6008_v28  ;;  %v6048_v22 = vpack.c.bf16 %v3139_v21, %v3138_v5  ;;  %v3143_v28 = vld [vmem:[%s9200_s4 + $0x38] sm:$0xff]  ;;  %v2962_v5 = vld [vmem:[%s9199_s3] sm:$0xff]  ;;  %v2963_v21 = vld [vmem:[%s9199_s3 + $0x8] sm:$0xf] }
 0x72f   :  { %6012 = vmatprep.subr.msk.bf16.mxu1 %vm6610_vm2, %v6010_v29  ;;  %v6054_v29 = vpack.c.bf16 %v3143_v28, %v3142_v27  ;;  %v5031_v27 = vld [vmem:[%s9200_s4 + $0x100] sm:$0xff]  ;;  %v5032_v28 = vld [vmem:[%s9200_s4 + $0x108] sm:$0xff] }
 0x730   :  { %v6093_v30 = vpack.c.bf16 %v5032_v28, %v5031_v27  ;;  %v5063_v27 = vld [vmem:[%s9201_s5 + $0x100] sm:$0xff] }
 0x731   :  { %4980 = vmatmul.mubr.msk.f32.gmra.mrb[20].mxu1 %vm78_vm4, %v7921_v54  ;;  %v2836_v54 = vsel %vm85_vm0, %v2833_v18, %v2835_v53 }
 0x732   :  { %2583 = vmatprep.mubr.f32.mxu1 %v6514_v7  ;;  %6015 = vmatpush1.bf16.msk.msra.mxu1 %vm6610_vm2, %v6013_v13  ;;  %v3147_v13 = vld [vmem:[%s9200_s4 + $0x58] sm:$0xff] }
 0x733   :  { %6017 = vmatprep.subr.bf16.mxu1 %v6016_v14  ;;  %v6060_v14 = vpack.c.bf16 %v3147_v13, %v3146_v33  ;;  %v5035_v13 = vld [vmem:[%s9200_s4 + $0x120] sm:$0xff] }
 0x735   :  { %4981 = vmatmul.mubr.msk.f32.gmra.mrb[22].mxu1 %vm78_vm4, %v7938_v60  ;;  %v3136_v60 = vld [vmem:[%s9200_s4] sm:$0xff] }
 0x736   :  { %2681 = vmatprep.mubr.f32.mxu1 %v6514_v7  ;;  %v6045_v20 = vpack.c.bf16 %v3137_v19, %v3136_v60 }
 0x739   :  { %4992 = vmatmul.mubr.msk.f32.vlgmr.msra.gmra.mrb[18].mxu1 %vm78_vm4, %v2600_v39  ;;  %v3152_v39 = vld [vmem:[%s9200_s4 + $0x80] sm:$0xff] }
 0x73a   :  { %2687 = vmatprep.mubr.f32.mxu1 %v6514_v7  ;;  %6019 = vmatpush1.bf16.msra.mxu1 %v6018_v42  ;;  %v6069_v42 = vpack.c.bf16 %v3153_v41, %v3152_v39  ;;  %v5041_v41 = vld [vmem:[%s9200_s4 + $0x150] sm:$0xff] }
 0x73b   :  { %6022 = vmatprep.subr.msk.bf16.mxu1 %vm6610_vm2, %v6020_v43  ;;  %v3154_v43 = vld [vmem:[%s9200_s4 + $0x90] sm:$0xff] }
 0x73c   :  { %v6072_v45 = vpack.c.bf16 %v3155_v44, %v3154_v43  ;;  %v5043_v44 = vld [vmem:[%s9200_s4 + $0x160] sm:$0xff] }
 0x73d   :  { %4993 = vmatmul.mubr.msk.f32.gmra.mrb[20].mxu1 %vm78_vm4, %v2602_v48  ;;  %v6075_v48 = vpack.c.bf16 %v3157_v47, %v3156_v46  ;;  %v5045_v47 = vld [vmem:[%s9200_s4 + $0x170] sm:$0xff] }
 0x73e   :  { %2693 = vmatprep.mubr.f32.mxu1 %v6514_v7  ;;  %6025 = vmatpush1.bf16.msk.msra.mxu1 %vm6610_vm2, %v6023_v49  ;;  %v3158_v49 = vld [vmem:[%s9200_s4 + $0xb0] sm:$0xff] }
 0x73f   :  { %6027 = vmatprep.subr.bf16.mxu1 %v6026_v50  ;;  %v3159_v50 = vld [vmem:[%s9200_s4 + $0xb8] sm:$0xff] }
 0x740   :  { %v6078_v56 = vpack.c.bf16 %v3159_v50, %v3158_v49  ;;  %v5047_v49 = vld [vmem:[%s9200_s4 + $0x180] sm:$0xff]  ;;  %v5048_v50 = vld [vmem:[%s9200_s4 + $0x188] sm:$0xff] }
 0x741   :  { %4994 = vmatmul.mubr.msk.f32.gmra.mrb[22].mxu1 %vm78_vm4, %v2604_v51 }
 0x742   :  { %2797 = vmatprep.mubr.f32.mxu1 %v6514_v7 }
 0x745   :  { %5005 = vmatmul.mubr.msk.f32.vlgmr.msra.gmra.mrb[18].mxu1 %vm78_vm4, %v2716_v40  ;;  %v2947_v40 = vrot.slane %v2938_v57, %v6910_v15  ;;  %v5051_v57 = vld [vmem:[%s9200_s4 + $0x1a0] sm:$0xff] }
 0x746   :  { %2803 = vmatprep.mubr.f32.mxu1 %v6514_v7  ;;  %6029 = vmatpush1.bf16.msra.mxu1 %v6028_v62 }
 0x747   :  { %6032 = vmatprep.subr.msk.bf16.mxu1 %vm6610_vm2, %v6030_v63 }
 0x749   :  { %5006 = vmatmul.mubr.msk.f32.gmra.mrb[20].mxu1 %vm78_vm4, %v2718_v2 }
 0x74a   :  { %2809 = vmatprep.mubr.f32.mxu1 %v6514_v7  ;;  %6035 = vmatpush1.bf16.msk.msra.mxu1 %vm6610_vm2, %v6033_v8 }
 0x74b   :  { %6044 = vmatprep.subr.bf16.mxu1 %v6516_v23 }
 0x74d   :  { %5007 = vmatmul.mubr.msk.f32.gmra.mrb[22].mxu1 %vm78_vm4, %v2720_v9 }
 0x74e   :  { %2913 = vmatprep.mubr.f32.mxu1 %v6514_v7 }
 0x751   :  { %5018 = vmatmul.mubr.msk.f32.vlgmr.msra.gmra.mrb[18].mxu1 %vm78_vm4, %v2832_v17 }
 0x752   :  { %2919 = vmatprep.mubr.f32.mxu1 %v6514_v7  ;;  %6046 = vmatpush1.bf16.msra.mxu1 %v6045_v20 }
 0x753   :  { %6047 = vmatprep.subr.bf16.mxu1 %v6516_v23 }
 0x755   :  { %5019 = vmatmul.mubr.msk.f32.gmra.mrb[20].mxu1 %vm78_vm4, %v2834_v10 }
 0x756   :  { %2925 = vmatprep.mubr.f32.mxu1 %v6514_v7  ;;  %6049 = vmatpush1.bf16.msra.mxu1 %v6048_v22  ;;  %v5029_v22 = vld [vmem:[%s9200_s4 + $0xf0] sm:$0xff] }
 0x757   :  { %6050 = vmatprep.subr.bf16.mxu1 %v6516_v23 }
 0x759   :  { %5020 = vmatmul.mubr.msk.f32.gmra.mrb[22].mxu1 %vm78_vm4, %v2836_v54 }
 0x75a   :  { %6052 = vmatpush1.bf16.msra.mxu1 %v6051_v26  ;;  %v6090_v26 = vpack.c.bf16 %v5030_v24, %v5029_v22 }
 0x75b   :  { %6053 = vmatprep.subr.bf16.mxu1 %v6516_v23 }
 0x75e   :  { %6055 = vmatpush1.bf16.msra.mxu1 %v6054_v29  ;;  %v5024_v29 = vld [vmem:[%s9199_s3 + $0x18] sm:$0xf] }
 0x75f   :  { %6056 = vmatprep.subr.bf16.mxu1 %v6516_v23 }
 0x762   :  { %6058 = vmatpush1.bf16.msra.mxu1 %v6057_v32  ;;  %v5034_v32 = vld [vmem:[%s9200_s4 + $0x118] sm:$0xff] }
 0x763   :  { %6059 = vmatprep.subr.bf16.mxu1 %v6516_v23  ;;  %v6096_v33 = vpack.c.bf16 %v5034_v32, %v5033_v31 }
 0x766   :  { %6061 = vmatpush1.bf16.msra.mxu1 %v6060_v14  ;;  %v5036_v14 = vld [vmem:[%s9200_s4 + $0x128] sm:$0xff] }
 0x767   :  { %6062 = vmatprep.subr.bf16.mxu1 %v6516_v23  ;;  %v6099_v35 = vpack.c.bf16 %v5036_v14, %v5035_v13 }
 0x76a   :  { %6064 = vmatpush1.bf16.msra.mxu1 %v6063_v34  ;;  %v5038_v34 = vld [vmem:[%s9200_s4 + $0x138] sm:$0xff] }
 0x76b   :  { %6065 = vmatprep.subr.bf16.mxu1 %v6516_v23  ;;  %v6102_v36 = vpack.c.bf16 %v5038_v34, %v5037_v4  ;;  %v5067_v4 = vld [vmem:[%s9201_s5 + $0x120] sm:$0xff] }
 0x76e   :  { %6067 = vmatpush1.bf16.msra.mxu1 %v6066_v38  ;;  %v5040_v38 = vld [vmem:[%s9200_s4 + $0x148] sm:$0xff] }
 0x76f   :  { %6068 = vmatprep.subr.bf16.mxu1 %v6516_v23  ;;  %v6105_v39 = vpack.c.bf16 %v5040_v38, %v5039_v37  ;;  %v5072_v37 = vld [vmem:[%s9201_s5 + $0x148] sm:$0xff] }
 0x772   :  { %6070 = vmatpush1.bf16.msra.mxu1 %v6069_v42  ;;  %v5042_v42 = vld [vmem:[%s9200_s4 + $0x158] sm:$0xff] }
 0x773   :  { %6071 = vmatprep.subr.bf16.mxu1 %v6516_v23  ;;  %v6108_v43 = vpack.c.bf16 %v5042_v42, %v5041_v41 }
 0x776   :  { %6073 = vmatpush1.bf16.msra.mxu1 %v6072_v45  ;;  %v5044_v45 = vld [vmem:[%s9200_s4 + $0x168] sm:$0xff] }
 0x777   :  { %6074 = vmatprep.subr.bf16.mxu1 %v6516_v23  ;;  %v6111_v46 = vpack.c.bf16 %v5044_v45, %v5043_v44  ;;  %v5069_v44 = vld [vmem:[%s9201_s5 + $0x130] sm:$0xff]  ;;  %v5071_v45 = vld [vmem:[%s9201_s5 + $0x140] sm:$0xff] }
 0x77a   :  { %6076 = vmatpush1.bf16.msra.mxu1 %v6075_v48  ;;  %v5046_v48 = vld [vmem:[%s9200_s4 + $0x178] sm:$0xff] }
 0x77b   :  { %6077 = vmatprep.subr.bf16.mxu1 %v6516_v23 }
 0x77e   :  { %6079 = vmatpush1.bf16.msra.mxu1 %v6078_v56 }
 0x77f   :  { %6080 = vmatprep.subr.bf16.mxu1 %v6516_v23 }
 0x7ec   :  { %v2362_v51 = vpop.f32.mrb[16].mxu1 }
 0x7ed   :  { %v2363_v52 = vadd.f32 %v2362_v51, %v2287_v3  ;;  %v5459_v55 = vpop.f32.mrb[17].mxu1  ;;  %v6114_v3 = vpack.c.bf16 %v5046_v48, %v5045_v47  ;;  %v6117_v51 = vpack.c.bf16 %v5048_v50, %v5047_v49  ;;  %v5076_v47 = vld [vmem:[%s9201_s5 + $0x168] sm:$0xff]  ;;  %v6144_v48 = vpack.c.bf16 %v5071_v45, %v5069_v44  ;;  %v5073_v49 = vld [vmem:[%s9201_s5 + $0x150] sm:$0xff]  ;;  %v5075_v50 = vld [vmem:[%s9201_s5 + $0x160] sm:$0xff] }
 0x7ee   :  { %v5050_v55 = vld [vmem:[%s9200_s4 + $0x198] sm:$0xff] }
 0x7ef   :  { %2367 = vst.msk [vmem:[#allocation2] sm:$0x1] %vm2366_vm1, %v2363_v52  ;;  %v5049_v52 = vld [vmem:[%s9200_s4 + $0x190] sm:$0xff]  ;;  %v3365_v44 = vld [vmem:[%s9201_s5 + $0x58] sm:$0xff] }
 0x7f0   :  { %v6120_v56 = vpack.c.bf16 %v5050_v55, %v5049_v52  ;;  %v5080_v52 = vld [vmem:[%s9201_s5 + $0x188] sm:$0xff]  ;;  %v6148_v55 = vpack.c.bf16 %v5075_v50, %v5073_v49  ;;  %v3362_v49 = vld [vmem:[%s9201_s5 + $0x40] sm:$0xff]  ;;  %v3364_v50 = vld [vmem:[%s9201_s5 + $0x50] sm:$0xff] }
 0x824   :  { %v2915_v59 = vpop.f32.mrb[18].mxu1 }
 0x825   :  { %v2917_v61 = vpop.f32.mrb[19].mxu1  ;;  %v2950_v62 = vadd.f32 %v2943_v58, %v2915_v59 }
 0x826   :  { %v2951_v63 = vadd.f32 %v2947_v40, %v2917_v61  ;;  %v3161_v61 = vld [vmem:[%s9200_s4 + $0xc8] sm:$0xff] }
 0x827   :  { %v2956_v8 = vmax.f32 %v2950_v62, 0.0  ;;  %v5053_v62 = vld [vmem:[%s9200_s4 + $0x1b0] sm:$0xff] }
 0x828   :  { %v2921_v0 = vpop.f32.mrb[20].mxu1  ;;  %v2957_v12 = vmax.f32 %v2951_v63, 0.0 }
 0x829   :  { %v2952_v1 = vadd.f32 %v2943_v58, %v2921_v0  ;;  %v2923_v2 = vpop.f32.mrb[21].mxu1  ;;  %v5054_v0 = vld [vmem:[%s9200_s4 + $0x1b8] sm:$0xff] }
 0x82a   :  { %v2953_v6 = vadd.f32 %v2947_v40, %v2923_v2  ;;  %v3162_v2 = vld [vmem:[%s9200_s4 + $0xd0] sm:$0xff] }
 0x82b   :  { %v2958_v9 = vmax.f32 %v2952_v1, 0.0  ;;  %v6126_v1 = vpack.c.bf16 %v5054_v0, %v5053_v62  ;;  %v5083_v0 = vld [vmem:[%s9201_s5 + $0x1a0] sm:$0xff] }
 0x82c   :  { %v2959_v16 = vmax.f32 %v2953_v6, 0.0  ;;  %v2927_v17 = vpop.f32.mrb[22].mxu1  ;;  %v3163_v6 = vld [vmem:[%s9200_s4 + $0xd8] sm:$0xff] }
 0x82d   :  { %v6038_v18 = vpack.c.bf16 %v2958_v9, %v2956_v8  ;;  %v2929_v10 = vpop.f32.mrb[23].mxu1  ;;  %v2954_v60 = vadd.f32 %v2943_v58, %v2927_v17  ;;  %v5052_v58 = vld [vmem:[%s9200_s4 + $0x1a8] sm:$0xff]  ;;  %v5055_v8 = vld [vmem:[%s9200_s4 + $0x1c0] sm:$0xff]  ;;  %v6084_v9 = vpack.c.bf16 %v3163_v6, %v3162_v2  ;;  %v5086_v2 = vld [vmem:[%s9201_s5 + $0x1b8] sm:$0xff] }
 0x82e   :  { %v6036_v53 = vpack.c.bf16 %v2959_v16, %v2957_v12  ;;  %v2955_v54 = vadd.f32 %v2947_v40, %v2929_v10  ;;  %v6123_v59 = vpack.c.bf16 %v5052_v58, %v5051_v57  ;;  %v3160_v40 = vld [vmem:[%s9200_s4 + $0xc0] sm:$0xff]  ;;  %v5056_v12 = vld [vmem:[%s9200_s4 + $0x1c8] sm:$0xff]  ;;  %v5057_v10 = vld [vmem:[%s9200_s4 + $0x1d0] sm:$0xff] }
 0x82f   :  { %v2960_v20 = vmax.f32 %v2954_v60, 0.0  ;;  %v6081_v63 = vpack.c.bf16 %v3161_v61, %v3160_v40  ;;  %v6129_v16 = vpack.c.bf16 %v5056_v12, %v5055_v8  ;;  %v3164_v17 = vld [vmem:[%s9200_s4 + $0xe0] sm:$0xff]  ;;  %v5077_v57 = vld [vmem:[%s9201_s5 + $0x170] sm:$0xff]  ;;  %v5084_v40 = vld [vmem:[%s9201_s5 + $0x1a8] sm:$0xff] }
 0x830   :  { %v2961_v19 = vmax.f32 %v2955_v54, 0.0  ;;  %6037 = vmatprep.subr.bf16.mxu0 %v6036_v53  ;;  %v5058_v54 = vld [vmem:[%s9200_s4 + $0x1d8] sm:$0xff]  ;;  %v5079_v58 = vld [vmem:[%s9201_s5 + $0x180] sm:$0xff]  ;;  %v5088_v6 = vld [vmem:[%s9201_s5 + $0x1c8] sm:$0xff] }
 0x831   :  { %6039 = vmatpush1.bf16.msra.mxu0 %v6038_v18  ;;  %6082 = vmatpush1.bf16.msra.mxu1 %v6081_v63  ;;  %v6132_v60 = vpack.c.bf16 %v5058_v54, %v5057_v10  ;;  %v6152_v61 = vpack.c.bf16 %v5079_v58, %v5077_v57  ;;  %v5081_v63 = vld [vmem:[%s9201_s5 + $0x190] sm:$0xff]  ;;  %v6158_v8 = vpack.c.bf16 %v5088_v6, %v5086_v2  ;;  %v5087_v12 = vld [vmem:[%s9201_s5 + $0x1c0] sm:$0xff]  ;;  %v3357_v10 = vld [vmem:[%s9201_s5 + $0x18] sm:$0xff] }
 0x832   :  { %2974 = vmatprep.subr.mxu0 %v2961_v19  ;;  %6083 = vmatprep.subr.bf16.mxu1 %v6516_v23  ;;  %v3366_v57 = vld [vmem:[%s9201_s5 + $0x60] sm:$0xff]  ;;  %v3368_v58 = vld [vmem:[%s9201_s5 + $0x70] sm:$0xff]  ;;  %v3377_v2 = vld [vmem:[%s9201_s5 + $0xb8] sm:$0xff] }
 0x835   :  { %2975 = vmatpush1.msra.mxu0 %v2960_v20  ;;  %6085 = vmatpush1.bf16.msra.mxu1 %v6084_v9  ;;  %v5085_v9 = vld [vmem:[%s9201_s5 + $0x1b0] sm:$0xff] }
 0x836   :  { %5021 = vmatmul.mubr.msk.f32.vlgmr.msra.gmra.mrb[20].mxu0 %vm649_vm7, %v2962_v5  ;;  %6041 = vmatprep.subr.bf16.mxu0 %v6036_v53 }
 0x837   :  { %6043 = vmatpush1.bf16.msra.mxu0 %v6038_v18  ;;  %3040 = vmatprep.mubr.f32.mxu0 %v6514_v7  ;;  %v3165_v18 = vld [vmem:[%s9200_s4 + $0xe8] sm:$0xff] }
 0x838   :  { %3059 = vmatprep.subr.mxu0 %v2961_v19  ;;  %6086 = vmatprep.subr.bf16.mxu1 %v6516_v23  ;;  %v6087_v53 = vpack.c.bf16 %v3165_v18, %v3164_v17  ;;  %v5062_v19 = vld [vmem:[%s9201_s5 + $0xf8] sm:$0xff]  ;;  %v3355_v18 = vld [vmem:[%s9201_s5 + $0x8] sm:$0xff] }
 0x839   :  { %v5090_v17 = vld [vmem:[%s9201_s5 + $0x1d8] sm:$0xff]  ;;  %v6162_v54 = vpack.c.bf16 %v3357_v10, %v3355_v18 }
 0x83a   :  { %5022 = vmatmul.mubr.msk.f32.gmra.mrb[22].mxu0 %vm649_vm7, %v2963_v21  ;;  %6088 = vmatpush1.bf16.msra.mxu1 %v6087_v53  ;;  %v5089_v53 = vld [vmem:[%s9201_s5 + $0x1d0] sm:$0xff] }
 0x83b   :  { %3060 = vmatpush1.msra.mxu0 %v2960_v20  ;;  %3119 = vmatprep.mubr.f32.mxu0 %v6514_v7  ;;  %v5064_v20 = vld [vmem:[%s9201_s5 + $0x108] sm:$0xff] }
 0x83c   :  { %6089 = vmatprep.subr.bf16.mxu0 %v6516_v23  ;;  %v6134_v5 = vpack.c.bf16 %v5064_v20, %v5062_v19 }
 0x83e   :  { %5025 = vmatmul.mubr.msk.f32.vlgmr.msra.gmra.mrb[24].mxu0 %vm649_vm7, %v5023_v25  ;;  %6135 = vmatprep.subr.bf16.mxu1 %v6134_v5 }
 0x83f   :  { %3125 = vmatprep.mubr.f32.mxu0 %v6514_v7  ;;  %6091 = vmatpush1.bf16.msra.mxu0 %v6090_v26  ;;  %v5061_v26 = vld [vmem:[%s9201_s5 + $0xf0] sm:$0xff] }
 0x840   :  { %6092 = vmatprep.subr.bf16.mxu0 %v6516_v23  ;;  %v6136_v13 = vpack.c.bf16 %v5063_v27, %v5061_v26 }
 0x842   :  { %5026 = vmatmul.mubr.msk.f32.gmra.mrb[26].mxu0 %vm649_vm7, %v5024_v29  ;;  %v5066_v29 = vld [vmem:[%s9201_s5 + $0x118] sm:$0xff] }
 0x843   :  { %6094 = vmatpush1.bf16.msra.mxu0 %v6093_v30  ;;  %v5068_v30 = vld [vmem:[%s9201_s5 + $0x128] sm:$0xff] }
 0x844   :  { %6095 = vmatprep.subr.bf16.mxu0 %v6516_v23  ;;  %v6138_v14 = vpack.c.bf16 %v5068_v30, %v5066_v29 }
 0x847   :  { %6097 = vmatpush1.bf16.msra.mxu0 %v6096_v33 }
 0x848   :  { %6098 = vmatprep.subr.bf16.mxu0 %v6516_v23 }
 0x84b   :  { %6100 = vmatpush1.bf16.msra.mxu0 %v6099_v35  ;;  %v5065_v35 = vld [vmem:[%s9201_s5 + $0x110] sm:$0xff] }
 0x84c   :  { %6101 = vmatprep.subr.bf16.mxu0 %v6516_v23  ;;  %v6140_v42 = vpack.c.bf16 %v5067_v4, %v5065_v35 }
 0x84f   :  { %6103 = vmatpush1.bf16.msra.mxu0 %v6102_v36  ;;  %v5070_v36 = vld [vmem:[%s9201_s5 + $0x138] sm:$0xff] }
 0x850   :  { %6104 = vmatprep.subr.bf16.mxu0 %v6516_v23 }
 0x853   :  { %6106 = vmatpush1.bf16.msra.mxu0 %v6105_v39 }
 0x854   :  { %6107 = vmatprep.subr.bf16.mxu0 %v6516_v23 }
 0x857   :  { %6109 = vmatpush1.bf16.msra.mxu0 %v6108_v43  ;;  %v6142_v43 = vpack.c.bf16 %v5072_v37, %v5070_v36 }
 0x858   :  { %6110 = vmatprep.subr.bf16.mxu0 %v6516_v23 }
 0x85b   :  { %6112 = vmatpush1.bf16.msra.mxu0 %v6111_v46  ;;  %v5074_v46 = vld [vmem:[%s9201_s5 + $0x158] sm:$0xff] }
 0x85c   :  { %6113 = vmatprep.subr.bf16.mxu0 %v6516_v23 }
 0x85f   :  { %6115 = vmatpush1.bf16.msra.mxu0 %v6114_v3  ;;  %v6146_v3 = vpack.c.bf16 %v5076_v47, %v5074_v46 }
 0x860   :  { %6116 = vmatprep.subr.bf16.mxu0 %v6516_v23 }
 0x863   :  { %6118 = vmatpush1.bf16.msra.mxu0 %v6117_v51  ;;  %v5078_v51 = vld [vmem:[%s9201_s5 + $0x178] sm:$0xff] }
 0x864   :  { %6119 = vmatprep.subr.bf16.mxu0 %v6516_v23 }
 0x867   :  { %6121 = vmatpush1.bf16.msra.mxu0 %v6120_v56  ;;  %v6150_v56 = vpack.c.bf16 %v5080_v52, %v5078_v51  ;;  %v3367_v51 = vld [vmem:[%s9201_s5 + $0x68] sm:$0xff]  ;;  %v3369_v52 = vld [vmem:[%s9201_s5 + $0x78] sm:$0xff] }
 0x868   :  { %6122 = vmatprep.subr.bf16.mxu0 %v6516_v23 }
 0x86b   :  { %6124 = vmatpush1.bf16.msra.mxu0 %v6123_v59  ;;  %v5082_v59 = vld [vmem:[%s9201_s5 + $0x198] sm:$0xff] }
 0x86c   :  { %6125 = vmatprep.subr.bf16.mxu0 %v6516_v23  ;;  %v6154_v62 = vpack.c.bf16 %v5084_v40, %v5082_v59  ;;  %v3371_v59 = vld [vmem:[%s9201_s5 + $0x88] sm:$0xff]  ;;  %v3373_v40 = vld [vmem:[%s9201_s5 + $0x98] sm:$0xff] }
 0x86f   :  { %6127 = vmatpush1.bf16.msra.mxu0 %v6126_v1  ;;  %v6156_v1 = vpack.c.bf16 %v5083_v0, %v5081_v63  ;;  %v3370_v63 = vld [vmem:[%s9201_s5 + $0x80] sm:$0xff]  ;;  %v3372_v0 = vld [vmem:[%s9201_s5 + $0x90] sm:$0xff] }
 0x870   :  { %6128 = vmatprep.subr.bf16.mxu0 %v6516_v23  ;;  %v6180_v6 = vpack.c.bf16 %v3372_v0, %v3370_v63  ;;  %v5119_v63 = vld [vmem:[%s9201_s5 + $0x2b0] sm:$0xff] }
 0x873   :  { %6130 = vmatpush1.bf16.msra.mxu0 %v6129_v16  ;;  %v6160_v16 = vpack.c.bf16 %v5087_v12, %v5085_v9  ;;  %v3374_v9 = vld [vmem:[%s9201_s5 + $0xa0] sm:$0xff]  ;;  %v3376_v12 = vld [vmem:[%s9201_s5 + $0xb0] sm:$0xff] }
 0x874   :  { %6131 = vmatprep.subr.bf16.mxu0 %v6516_v23  ;;  %v6184_v18 = vpack.c.bf16 %v3376_v12, %v3374_v9  ;;  %v5126_v9 = vld [vmem:[%s9201_s5 + $0x2e0] sm:$0xff]  ;;  %v5129_v12 = vld [vmem:[%s9201_s5 + $0x2f8] sm:$0xff] }
 0x877   :  { %6133 = vmatpush1.bf16.msra.mxu0 %v6132_v60 }
 0x909   :  { %v3036_v21 = vpop.f32.mrb[20].mxu0 }
 0x90a   :  { %v3038_v22 = vpop.f32.mrb[21].mxu0 }
 0x90d   :  { %v3042_v24 = vpop.f32.mrb[22].mxu0 }
 0x90e   :  { %v3044_v25 = vpop.f32.mrb[23].mxu0 }
 0x911   :  { %v3121_v28 = vpop.f32.mrb[24].mxu0 }
 0x912   :  { %v3132_v31 = vmax.f32 %v3036_v21, %v3121_v28  ;;  %v3123_v32 = vpop.f32.mrb[25].mxu0 }
 0x913   :  { %v3133_v33 = vmax.f32 %v3038_v22, %v3123_v32  ;;  %v3354_v22 = vld [vmem:[%s9201_s5] sm:$0xff]  ;;  %v3361_v32 = vld [vmem:[%s9201_s5 + $0x38] sm:$0xff] }
 0x915   :  { %v3127_v34 = vpop.f32.mrb[26].mxu0  ;;  %5027 = vmatprep.mubr.msk.f32.mxu1 %vm853_vm8, %v3133_v33  ;;  %5059 = vmatprep.mubr.msk.f32.mxu0 %vm853_vm8, %v3133_v33 }
 0x916   :  { %v3134_v38 = vmax.f32 %v3042_v24, %v3127_v34  ;;  %v3129_v39 = vpop.f32.mrb[27].mxu0  ;;  %3237 = vmatmul.mubr.f32.vlgmr.msra.gmra.mrb[24].mxu1 %v3132_v31  ;;  %3342 = vmatmul.mubr.f32.vlgmr.msra.gmra.mrb[28].mxu0 %v3132_v31  ;;  %v3356_v24 = vld [vmem:[%s9201_s5 + $0x10] sm:$0xff]  ;;  %v3359_v31 = vld [vmem:[%s9201_s5 + $0x28] sm:$0xff] }
 0x917   :  { %v3135_v41 = vmax.f32 %v3044_v25, %v3129_v39  ;;  %6137 = vmatpush1.bf16.msra.mxu1 %v6136_v13  ;;  %v6164_v30 = vpack.c.bf16 %v3356_v24, %v3354_v22  ;;  %v3358_v39 = vld [vmem:[%s9201_s5 + $0x20] sm:$0xff]  ;;  %v5095_v24 = vld [vmem:[%s9201_s5 + $0x1f0] sm:$0xff] }
 0x918   :  { %6139 = vmatprep.subr.bf16.mxu1 %v6138_v14  ;;  %v5093_v22 = vld [vmem:[%s9201_s5 + $0x1e0] sm:$0xff] }
 0x919   :  { %5028 = vmatprep.mubr.msk.f32.mxu1 %vm853_vm8, %v3135_v41  ;;  %5060 = vmatprep.mubr.msk.f32.mxu0 %vm853_vm8, %v3135_v41  ;;  %v3360_v41 = vld [vmem:[%s9201_s5 + $0x30] sm:$0xff] }
 0x91a   :  { %3242 = vmatmul.mubr.f32.gmra.mrb[26].mxu1 %v3134_v38  ;;  %3347 = vmatmul.mubr.f32.gmra.mrb[30].mxu0 %v3134_v38  ;;  %v6166_v38 = vpack.c.bf16 %v3361_v32, %v3359_v31  ;;  %v5097_v31 = vld [vmem:[%s9201_s5 + $0x200] sm:$0xff]  ;;  %v5099_v32 = vld [vmem:[%s9201_s5 + $0x210] sm:$0xff] }
 0x91b   :  { %6141 = vmatpush1.bf16.msra.mxu1 %v6140_v42  ;;  %3485 = vmatprep.mubr.f32.mxu1 %v6514_v7 }
 0x91c   :  { %6143 = vmatprep.subr.bf16.mxu1 %v6142_v43  ;;  %3973 = vmatprep.mubr.f32.mxu0 %v6514_v7  ;;  %v3363_v43 = vld [vmem:[%s9201_s5 + $0x48] sm:$0xff] }
 0x91f   :  { %6145 = vmatpush1.bf16.msra.mxu1 %v6144_v48  ;;  %v6168_v48 = vpack.c.bf16 %v3360_v41, %v3358_v39  ;;  %v5105_v39 = vld [vmem:[%s9201_s5 + $0x240] sm:$0xff]  ;;  %v5107_v41 = vld [vmem:[%s9201_s5 + $0x250] sm:$0xff] }
 0x920   :  { %6147 = vmatprep.subr.bf16.mxu1 %v6146_v3  ;;  %v6170_v3 = vpack.c.bf16 %v3365_v44, %v3363_v43  ;;  %v5112_v43 = vld [vmem:[%s9201_s5 + $0x278] sm:$0xff]  ;;  %v6204_v44 = vpack.c.bf16 %v5107_v41, %v5105_v39  ;;  %v5151_v41 = vld [vmem:[%s9201_s5 + $0x3a8] sm:$0xff] }
 0x921   :  { %v5149_v39 = vld [vmem:[%s9201_s5 + $0x398] sm:$0xff] }
 0x923   :  { %6149 = vmatpush1.bf16.msra.mxu1 %v6148_v55  ;;  %v6172_v55 = vpack.c.bf16 %v3364_v50, %v3362_v49  ;;  %v5111_v49 = vld [vmem:[%s9201_s5 + $0x270] sm:$0xff]  ;;  %v5114_v50 = vld [vmem:[%s9201_s5 + $0x288] sm:$0xff] }
 0x924   :  { %6151 = vmatprep.subr.bf16.mxu1 %v6150_v56  ;;  %v6174_v56 = vpack.c.bf16 %v3369_v52, %v3367_v51  ;;  %v5116_v51 = vld [vmem:[%s9201_s5 + $0x298] sm:$0xff] }
 0x927   :  { %6153 = vmatpush1.bf16.msra.mxu1 %v6152_v61  ;;  %v6176_v61 = vpack.c.bf16 %v3368_v58, %v3366_v57  ;;  %v5115_v57 = vld [vmem:[%s9201_s5 + $0x290] sm:$0xff]  ;;  %v5118_v58 = vld [vmem:[%s9201_s5 + $0x2a8] sm:$0xff] }
 0x928   :  { %6155 = vmatprep.subr.bf16.mxu1 %v6154_v62  ;;  %v6178_v62 = vpack.c.bf16 %v3373_v40, %v3371_v59  ;;  %v5120_v59 = vld [vmem:[%s9201_s5 + $0x2b8] sm:$0xff] }
 0x92b   :  { %6157 = vmatpush1.bf16.msra.mxu1 %v6156_v1  ;;  %v3375_v1 = vld [vmem:[%s9201_s5 + $0xa8] sm:$0xff] }
 0x92c   :  { %6159 = vmatprep.subr.bf16.mxu1 %v6158_v8  ;;  %v6182_v8 = vpack.c.bf16 %v3377_v2, %v3375_v1  ;;  %v5122_v1 = vld [vmem:[%s9201_s5 + $0x2c8] sm:$0xff]  ;;  %v5125_v2 = vld [vmem:[%s9201_s5 + $0x2d8] sm:$0xff] }
 0x92f   :  { %6161 = vmatpush1.bf16.msra.mxu1 %v6160_v16  ;;  %v3379_v16 = vld [vmem:[%s9201_s5 + $0xc8] sm:$0xff] }
 0x930   :  { %3449 = vmatprep.subr.mxu1 %v5090_v17  ;;  %v3381_v17 = vld [vmem:[%s9201_s5 + $0xd8] sm:$0xff] }
 0x931   :  { %v6186_v10 = vpack.c.bf16 %v3381_v17, %v3379_v16  ;;  %v5131_v16 = vld [vmem:[%s9201_s5 + $0x308] sm:$0xff]  ;;  %v5121_v17 = vld [vmem:[%s9201_s5 + $0x2c0] sm:$0xff] }
 0x933   :  { %3450 = vmatpush1.msra.mxu1 %v5089_v53  ;;  %v3378_v53 = vld [vmem:[%s9201_s5 + $0xc0] sm:$0xff] }
 0x934   :  { %6163 = vmatprep.subr.bf16.mxu1 %v6162_v54  ;;  %v3380_v54 = vld [vmem:[%s9201_s5 + $0xd0] sm:$0xff] }
 0x9e9   :  { %v3238_v60 = vpop.f32.mrb[24].mxu1  ;;  %v3343_v19 = vpop.f32.mrb[28].mxu0 }
 0x9ea   :  { %v8451_v20 = vmax.f32 %v3238_v60, %v3343_v19  ;;  %v3240_v5 = vpop.f32.mrb[25].mxu1  ;;  %v3345_v21 = vpop.f32.mrb[29].mxu0  ;;  %v6188_v60 = vpack.c.bf16 %v3380_v54, %v3378_v53  ;;  %v3383_v19 = vld [vmem:[%s9201_s5 + $0xe8] sm:$0xff]  ;;  %v6222_v53 = vpack.c.bf16 %v5131_v16, %v5129_v12  ;;  %v5128_v54 = vld [vmem:[%s9201_s5 + $0x2f0] sm:$0xff] }
 0x9eb   :  { %v5094_v5 = vld [vmem:[%s9201_s5 + $0x1e8] sm:$0xff]  ;;  %v5096_v21 = vld [vmem:[%s9201_s5 + $0x1f8] sm:$0xff] }
 0x9ec   :  { %v3416_v33 = vrot.slane %v8451_v20, 1  ;;  %v3595_v13 = vrot.slane %v8451_v20, 2  ;;  %v3703_v14 = vrot.slane %v8451_v20, 3  ;;  %v3811_v35 = vrot.slane %v8451_v20, 4  ;;  %v5168_v12 = vld [vmem:[%s9201_s5 + $0x428] sm:$0xff] }
 0x9ed   :  { %v3243_v25 = vpop.f32.mrb[26].mxu1  ;;  %v3348_v26 = vpop.f32.mrb[30].mxu0 }
 0x9ee   :  { %v3353_v27 = vmax.f32 %v3243_v25, %v3348_v26  ;;  %v3245_v28 = vpop.f32.mrb[27].mxu1  ;;  %v3350_v29 = vpop.f32.mrb[31].mxu0  ;;  %v5098_v25 = vld [vmem:[%s9201_s5 + $0x208] sm:$0xff]  ;;  %v5100_v26 = vld [vmem:[%s9201_s5 + $0x218] sm:$0xff] }
 0x9ef   :  { %v6190_v28 = vpack.c.bf16 %v5096_v21, %v5094_v5  ;;  %v6192_v29 = vpack.c.bf16 %v5095_v24, %v5093_v22  ;;  %v5135_v5 = vld [vmem:[%s9201_s5 + $0x328] sm:$0xff]  ;;  %v5132_v24 = vld [vmem:[%s9201_s5 + $0x310] sm:$0xff] }
 0x9f0   :  { %v3417_v4 = vrot.slane %v3353_v27, 1  ;;  %v3596_v34 = vrot.slane %v3353_v27, 2  ;;  %v3704_v36 = vrot.slane %v3353_v27, 3  ;;  %v3812_v37 = vrot.slane %v3353_v27, 4  ;;  %v3382_v27 = vld [vmem:[%s9201_s5 + $0xe0] sm:$0xff] }
 0x9f2   :  { %v3418_v42 = vsel %vm70_vm3, %v3416_v33, %v3417_v4  ;;  %v8483_v45 = vsel %vm279_vm5, %v3595_v13, %v3596_v34  ;;  %v8486_v46 = vsel %vm397_vm6, %v3703_v14, %v3704_v36  ;;  %v8489_v47 = vsel %vm85_vm0, %v3811_v35, %v3812_v37  ;;  %v5102_v33 = vld [vmem:[%s9201_s5 + $0x228] sm:$0xff]  ;;  %v5104_v13 = vld [vmem:[%s9201_s5 + $0x238] sm:$0xff]  ;;  %v5101_v4 = vld [vmem:[%s9201_s5 + $0x220] sm:$0xff] }
 0x9f3   :  { %5091 = vmatmul.mubr.msk.f32.vlgmr.msra.gmra.mrb[28].mxu1 %vm1109_vm9, %v3418_v42  ;;  %v6196_v14 = vpack.c.bf16 %v5099_v32, %v5097_v31  ;;  %v6198_v35 = vpack.c.bf16 %v5104_v13, %v5102_v33  ;;  %v5103_v34 = vld [vmem:[%s9201_s5 + $0x230] sm:$0xff]  ;;  %v5106_v36 = vld [vmem:[%s9201_s5 + $0x248] sm:$0xff]  ;;  %v5141_v31 = vld [vmem:[%s9201_s5 + $0x358] sm:$0xff] }
 0x9f4   :  { %6165 = vmatpush1.bf16.msra.mxu1 %v6164_v30  ;;  %3558 = vmatprep.mubr.f32.mxu1 %v6514_v7  ;;  %v6194_v30 = vpack.c.bf16 %v5100_v26, %v5098_v25  ;;  %v6200_v37 = vpack.c.bf16 %v5103_v34, %v5101_v4  ;;  %v5110_v42 = vld [vmem:[%s9201_s5 + $0x268] sm:$0xff]  ;;  %v5134_v25 = vld [vmem:[%s9201_s5 + $0x320] sm:$0xff]  ;;  %v5137_v26 = vld [vmem:[%s9201_s5 + $0x338] sm:$0xff] }
 0x9f5   :  { %6167 = vmatprep.subr.bf16.mxu1 %v6166_v38  ;;  %v5143_v32 = vld [vmem:[%s9201_s5 + $0x368] sm:$0xff]  ;;  %v5145_v4 = vld [vmem:[%s9201_s5 + $0x378] sm:$0xff] }
 0x9f6   :  { %v6234_v13 = vpack.c.bf16 %v5143_v32, %v5141_v31  ;;  %v5147_v34 = vld [vmem:[%s9201_s5 + $0x388] sm:$0xff]  ;;  %v5179_v32 = vld [vmem:[%s9201_s5 + $0x480] sm:$0xff] }
 0x9f8   :  { %6169 = vmatpush1.bf16.msra.mxu1 %v6168_v48  ;;  %v6206_v48 = vpack.c.bf16 %v5112_v43, %v5110_v42  ;;  %v6242_v43 = vpack.c.bf16 %v5151_v41, %v5149_v39 }
 0x9f9   :  { %6171 = vmatprep.subr.bf16.mxu1 %v6170_v3  ;;  %v5109_v3 = vld [vmem:[%s9201_s5 + $0x260] sm:$0xff] }
 0x9fa   :  { %v6208_v52 = vpack.c.bf16 %v5111_v49, %v5109_v3  ;;  %v5153_v49 = vld [vmem:[%s9201_s5 + $0x3b8] sm:$0xff] }
 0x9fc   :  { %6173 = vmatpush1.bf16.msra.mxu1 %v6172_v55  ;;  %v6210_v55 = vpack.c.bf16 %v5116_v51, %v5114_v50  ;;  %v5156_v50 = vld [vmem:[%s9201_s5 + $0x3c8] sm:$0xff]  ;;  %v5158_v51 = vld [vmem:[%s9201_s5 + $0x3d8] sm:$0xff] }
 0x9fd   :  { %6175 = vmatprep.subr.bf16.mxu1 %v6174_v56  ;;  %v5113_v56 = vld [vmem:[%s9201_s5 + $0x280] sm:$0xff] }
 0x9fe   :  { %v6212_v40 = vpack.c.bf16 %v5115_v57, %v5113_v56  ;;  %v5160_v56 = vld [vmem:[%s9201_s5 + $0x3e8] sm:$0xff]  ;;  %v5162_v57 = vld [vmem:[%s9201_s5 + $0x3f8] sm:$0xff] }
 0xa00   :  { %6177 = vmatpush1.bf16.msra.mxu1 %v6176_v61  ;;  %v6214_v61 = vpack.c.bf16 %v5120_v59, %v5118_v58  ;;  %v5152_v58 = vld [vmem:[%s9201_s5 + $0x3b0] sm:$0xff]  ;;  %v6246_v59 = vpack.c.bf16 %v5158_v51, %v5156_v50  ;;  %v4061_v50 = vld [vmem:[%s9204_s8 + $0x20] sm:$0xff]  ;;  %v4062_v51 = vld [vmem:[%s9204_s8 + $0x28] sm:$0xff] }
 0xa01   :  { %6179 = vmatprep.subr.bf16.mxu1 %v6178_v62  ;;  %v5117_v62 = vld [vmem:[%s9201_s5 + $0x2a0] sm:$0xff] }
 0xa02   :  { %v6216_v0 = vpack.c.bf16 %v5119_v63, %v5117_v62  ;;  %v5159_v62 = vld [vmem:[%s9201_s5 + $0x3e0] sm:$0xff]  ;;  %v5161_v63 = vld [vmem:[%s9201_s5 + $0x3f0] sm:$0xff] }
 0xa04   :  { %6181 = vmatpush1.bf16.msra.mxu1 %v6180_v6  ;;  %v5127_v6 = vld [vmem:[%s9201_s5 + $0x2e8] sm:$0xff] }
 0xa05   :  { %6183 = vmatprep.subr.bf16.mxu1 %v6182_v8  ;;  %v5124_v8 = vld [vmem:[%s9201_s5 + $0x2d0] sm:$0xff] }
 0xa08   :  { %6185 = vmatpush1.bf16.msra.mxu1 %v6184_v18  ;;  %v6218_v18 = vpack.c.bf16 %v5127_v6, %v5125_v2  ;;  %v6252_v2 = vpack.c.bf16 %v5161_v63, %v5159_v62  ;;  %v4068_v62 = vld [vmem:[%s9204_s8 + $0x58] sm:$0xff] }
 0xa09   :  { %6187 = vmatprep.subr.bf16.mxu1 %v6186_v10  ;;  %v6220_v10 = vpack.c.bf16 %v5126_v9, %v5124_v8  ;;  %v5163_v8 = vld [vmem:[%s9201_s5 + $0x400] sm:$0xff]  ;;  %v5165_v9 = vld [vmem:[%s9201_s5 + $0x410] sm:$0xff] }
 0xa0a   :  { %v6256_v16 = vpack.c.bf16 %v5165_v9, %v5163_v8  ;;  %v4072_v8 = vld [vmem:[%s9204_s8 + $0x78] sm:$0xff] }
 0xa0c   :  { %6189 = vmatpush1.bf16.msra.mxu1 %v6188_v60  ;;  %v5130_v60 = vld [vmem:[%s9201_s5 + $0x300] sm:$0xff] }
 0xa0d   :  { %3522 = vmatprep.subr.mxu1 %v3383_v19  ;;  %v5133_v19 = vld [vmem:[%s9201_s5 + $0x318] sm:$0xff]  ;;  %v6224_v21 = vpack.c.bf16 %v5130_v60, %v5128_v54 }
 0xa0e   :  { %v6226_v22 = vpack.c.bf16 %v5135_v5, %v5133_v19  ;;  %v5174_v54 = vld [vmem:[%s9201_s5 + $0x458] sm:$0xff]  ;;  %v5171_v5 = vld [vmem:[%s9201_s5 + $0x440] sm:$0xff] }
 0xa10   :  { %3523 = vmatpush1.msra.mxu1 %v3382_v27  ;;  %v6228_v27 = vpack.c.bf16 %v5134_v25, %v5132_v24  ;;  %v5178_v24 = vld [vmem:[%s9201_s5 + $0x478] sm:$0xff] }
 0xa11   :  { %5092 = vmatmul.mubr.msk.f32.vlgmr.msra.gmra.mrb[28].mxu1 %vm1109_vm9, %v8451_v20  ;;  %6191 = vmatprep.subr.bf16.mxu1 %v6190_v28  ;;  %v5108_v20 = vld [vmem:[%s9201_s5 + $0x258] sm:$0xff] }
 0xa12   :  { %6193 = vmatpush1.bf16.msra.mxu1 %v6192_v29  ;;  %3664 = vmatprep.mubr.f32.mxu1 %v6514_v7  ;;  %v6202_v38 = vpack.c.bf16 %v5108_v20, %v5106_v36  ;;  %v5136_v29 = vld [vmem:[%s9201_s5 + $0x330] sm:$0xff]  ;;  %v6238_v20 = vpack.c.bf16 %v5147_v34, %v5145_v4  ;;  %v3889_v4 = vld [vmem:[%s9202_s6] sm:$0x3] }
 0xa13   :  { %6195 = vmatprep.subr.bf16.mxu1 %v6194_v30  ;;  %v5138_v30 = vld [vmem:[%s9201_s5 + $0x340] sm:$0xff]  ;;  %v3894_v34 = vrot.slane %v3889_v4, %v6905_v11  ;;  %v4058_v11 = vld [vmem:[%s9204_s8 + $0x8] sm:$0xff] }
 0xa14   :  { %v6232_v33 = vpack.c.bf16 %v5138_v30, %v5136_v29  ;;  %v5182_v29 = vld [vmem:[%s9201_s5 + $0x498] sm:$0xff] }
 0xa16   :  { %6197 = vmatpush1.bf16.msra.mxu1 %v6196_v14  ;;  %v5140_v14 = vld [vmem:[%s9201_s5 + $0x350] sm:$0xff] }
 0xa17   :  { %6199 = vmatprep.subr.bf16.mxu1 %v6198_v35  ;;  %v5142_v35 = vld [vmem:[%s9201_s5 + $0x360] sm:$0xff] }
 0xa18   :  { %v6236_v36 = vpack.c.bf16 %v5142_v35, %v5140_v14  ;;  %v5184_v14 = vld [vmem:[%s9201_s5 + $0x4a8] sm:$0xff]  ;;  %v5183_v35 = vld [vmem:[%s9201_s5 + $0x4a0] sm:$0xff] }
 0xa1a   :  { %6201 = vmatpush1.bf16.msra.mxu1 %v6200_v37  ;;  %v5144_v37 = vld [vmem:[%s9201_s5 + $0x370] sm:$0xff] }
 0xa1b   :  { %6203 = vmatprep.subr.bf16.mxu1 %v6202_v38  ;;  %v5146_v38 = vld [vmem:[%s9201_s5 + $0x380] sm:$0xff] }
 0xa1c   :  { %v6240_v42 = vpack.c.bf16 %v5146_v38, %v5144_v37 }
 0xa1e   :  { %6205 = vmatpush1.bf16.msra.mxu1 %v6204_v44  ;;  %v5148_v44 = vld [vmem:[%s9201_s5 + $0x390] sm:$0xff] }
 0xa1f   :  { %6207 = vmatprep.subr.bf16.mxu1 %v6206_v48  ;;  %v5150_v48 = vld [vmem:[%s9201_s5 + $0x3a0] sm:$0xff] }
 0xa20   :  { %v6244_v3 = vpack.c.bf16 %v5150_v48, %v5148_v44  ;;  %v4059_v48 = vld [vmem:[%s9204_s8 + $0x10] sm:$0xff] }
 0xa22   :  { %6209 = vmatpush1.bf16.msra.mxu1 %v6208_v52  ;;  %v5155_v52 = vld [vmem:[%s9201_s5 + $0x3c0] sm:$0xff] }
 0xa23   :  { %6211 = vmatprep.subr.bf16.mxu1 %v6210_v55  ;;  %v5157_v55 = vld [vmem:[%s9201_s5 + $0x3d0] sm:$0xff] }
 0xa26   :  { %6213 = vmatpush1.bf16.msra.mxu1 %v6212_v40  ;;  %v6248_v40 = vpack.c.bf16 %v5157_v55, %v5155_v52  ;;  %v6281_v52 = vpack.c.bf16 %v4062_v51, %v4061_v50  ;;  %v4063_v55 = vld [vmem:[%s9204_s8 + $0x30] sm:$0xff] }
 0xa27   :  { %6215 = vmatprep.subr.bf16.mxu1 %v6214_v61  ;;  %v6250_v61 = vpack.c.bf16 %v5162_v57, %v5160_v56  ;;  %v4064_v56 = vld [vmem:[%s9204_s8 + $0x38] sm:$0xff]  ;;  %v4244_v50 = vld [vmem:[%s9205_s9 + $0x10] sm:$0xff] }
 0xa28   :  { %v6284_v57 = vpack.c.bf16 %v4064_v56, %v4063_v55  ;;  %v4246_v56 = vld [vmem:[%s9205_s9 + $0x20] sm:$0xff] }
 0xa2a   :  { %6217 = vmatpush1.bf16.msra.mxu1 %v6216_v0  ;;  %v5164_v0 = vld [vmem:[%s9201_s5 + $0x408] sm:$0xff] }
 0xa2b   :  { %3628 = vmatprep.subr.mxu1 %v5122_v1  ;;  %v5166_v1 = vld [vmem:[%s9201_s5 + $0x418] sm:$0xff] }
 0xa2c   :  { %v6254_v6 = vpack.c.bf16 %v5166_v1, %v5164_v0  ;;  %v4069_v0 = vld [vmem:[%s9204_s8 + $0x60] sm:$0xff]  ;;  %v4070_v1 = vld [vmem:[%s9204_s8 + $0x68] sm:$0xff] }
 0xa2e   :  { %3629 = vmatpush1.msra.mxu1 %v5121_v17 }
 0xa2f   :  { %5123 = vmatmul.mubr.msk.f32.vlgmr.msra.gmra.mrb[28].mxu1 %vm1109_vm9, %v8483_v45  ;;  %6219 = vmatprep.subr.bf16.mxu1 %v6218_v18  ;;  %v5139_v45 = vld [vmem:[%s9201_s5 + $0x348] sm:$0xff]  ;;  %v5167_v18 = vld [vmem:[%s9201_s5 + $0x420] sm:$0xff] }
 0xa30   :  { %6221 = vmatpush1.bf16.msra.mxu1 %v6220_v10  ;;  %3772 = vmatprep.mubr.f32.mxu1 %v6514_v7  ;;  %v6230_v28 = vpack.c.bf16 %v5139_v45, %v5137_v26  ;;  %v5169_v10 = vld [vmem:[%s9201_s5 + $0x430] sm:$0xff]  ;;  %v5175_v45 = vld [vmem:[%s9201_s5 + $0x460] sm:$0xff] }
 0xa31   :  { %6223 = vmatprep.subr.bf16.mxu1 %v6222_v53  ;;  %v5172_v53 = vld [vmem:[%s9201_s5 + $0x448] sm:$0xff]  ;;  %v6260_v60 = vpack.c.bf16 %v5169_v10, %v5167_v18  ;;  %v4076_v18 = vld [vmem:[%s9204_s8 + $0x98] sm:$0xff] }
 0xa32   :  { %v6262_v19 = vpack.c.bf16 %v5174_v54, %v5172_v53 }
 0xa34   :  { %6225 = vmatpush1.bf16.msra.mxu1 %v6224_v21  ;;  %v5173_v21 = vld [vmem:[%s9201_s5 + $0x450] sm:$0xff] }
 0xa35   :  { %6227 = vmatprep.subr.bf16.mxu1 %v6226_v22  ;;  %v5176_v22 = vld [vmem:[%s9201_s5 + $0x468] sm:$0xff]  ;;  %v6264_v25 = vpack.c.bf16 %v5173_v21, %v5171_v5 }
 0xa36   :  { %v6266_v26 = vpack.c.bf16 %v5178_v24, %v5176_v22 }
 0xa38   :  { %6229 = vmatpush1.bf16.msra.mxu1 %v6228_v27  ;;  %v5177_v27 = vld [vmem:[%s9201_s5 + $0x470] sm:$0xff] }
 0xa39   :  { %6231 = vmatprep.subr.bf16.mxu1 %v6230_v28  ;;  %v5180_v28 = vld [vmem:[%s9201_s5 + $0x488] sm:$0xff]  ;;  %v6268_v30 = vpack.c.bf16 %v5177_v27, %v5175_v45  ;;  %v5193_v45 = vld [vmem:[%s9204_s8 + $0xb8] sm:$0xff] }
 0xa3a   :  { %v6270_v31 = vpack.c.bf16 %v5182_v29, %v5180_v28  ;;  %v5194_v28 = vld [vmem:[%s9204_s8 + $0xc0] sm:$0xff]  ;;  %v5195_v29 = vld [vmem:[%s9204_s8 + $0xc8] sm:$0xff] }
 0xa3c   :  { %6233 = vmatpush1.bf16.msra.mxu1 %v6232_v33  ;;  %v5181_v33 = vld [vmem:[%s9201_s5 + $0x490] sm:$0xff] }
 0xa3d   :  { %6235 = vmatprep.subr.bf16.mxu1 %v6234_v13  ;;  %v6272_v13 = vpack.c.bf16 %v5181_v33, %v5179_v32  ;;  %v5197_v32 = vld [vmem:[%s9204_s8 + $0xd8] sm:$0xff] }
 0xa40   :  { %6237 = vmatpush1.bf16.msra.mxu1 %v6236_v36  ;;  %v3898_v36 = vrot.slane %v3889_v4, %v6910_v15  ;;  %v5187_v15 = vld [vmem:[%s9203_s7 + $0x4] sm:$0xf]  ;;  %v5200_v4 = vld [vmem:[%s9204_s8 + $0xf0] sm:$0xff] }
 0xa41   :  { %6239 = vmatprep.subr.bf16.mxu1 %v6238_v20 }
 0xa44   :  { %6241 = vmatpush1.bf16.msra.mxu1 %v6240_v42 }
 0xa45   :  { %6243 = vmatprep.subr.bf16.mxu1 %v6242_v43  ;;  %v4057_v43 = vld [vmem:[%s9204_s8] sm:$0xff] }
 0xa46   :  { %v6275_v44 = vpack.c.bf16 %v4058_v11, %v4057_v43  ;;  %v5207_v43 = vld [vmem:[%s9204_s8 + $0x128] sm:$0xff] }
 0xa48   :  { %6245 = vmatpush1.bf16.msra.mxu1 %v6244_v3  ;;  %v4060_v3 = vld [vmem:[%s9204_s8 + $0x18] sm:$0xff] }
 0xa49   :  { %3736 = vmatprep.subr.mxu1 %v5153_v49  ;;  %v6278_v49 = vpack.c.bf16 %v4060_v3, %v4059_v48  ;;  %v4242_v3 = vld [vmem:[%s9205_s9] sm:$0xff] }
 0xa4c   :  { %3737 = vmatpush1.msra.mxu1 %v5152_v58  ;;  %v4065_v58 = vld [vmem:[%s9204_s8 + $0x40] sm:$0xff] }
 0xa4d   :  { %5154 = vmatmul.mubr.msk.f32.vlgmr.msra.gmra.mrb[28].mxu1 %vm1109_vm9, %v8486_v46  ;;  %6247 = vmatprep.subr.bf16.mxu1 %v6246_v59  ;;  %v5170_v46 = vld [vmem:[%s9201_s5 + $0x438] sm:$0xff]  ;;  %v4066_v59 = vld [vmem:[%s9204_s8 + $0x48] sm:$0xff] }
 0xa4e   :  { %6249 = vmatpush1.bf16.msra.mxu1 %v6248_v40  ;;  %3880 = vmatprep.mubr.f32.mxu1 %v6514_v7  ;;  %v6258_v17 = vpack.c.bf16 %v5170_v46, %v5168_v12  ;;  %v6287_v40 = vpack.c.bf16 %v4066_v59, %v4065_v58  ;;  %v4073_v12 = vld [vmem:[%s9204_s8 + $0x80] sm:$0xff]  ;;  %v4074_v46 = vld [vmem:[%s9204_s8 + $0x88] sm:$0xff]  ;;  %v4248_v59 = vld [vmem:[%s9205_s9 + $0x30] sm:$0xff] }
 0xa4f   :  { %6251 = vmatprep.subr.bf16.mxu1 %v6250_v61  ;;  %v4067_v61 = vld [vmem:[%s9204_s8 + $0x50] sm:$0xff] }
 0xa50   :  { %v6290_v63 = vpack.c.bf16 %v4068_v62, %v4067_v61  ;;  %v4250_v62 = vld [vmem:[%s9205_s9 + $0x40] sm:$0xff] }
 0xa52   :  { %6253 = vmatpush1.bf16.msra.mxu1 %v6252_v2  ;;  %v6293_v2 = vpack.c.bf16 %v4070_v1, %v4069_v0  ;;  %v4578_v1 = vld [vmem:[%s9207_s11] sm:$0xff] }
 0xa53   :  { %6255 = vmatprep.subr.bf16.mxu1 %v6254_v6  ;;  %v4071_v6 = vld [vmem:[%s9204_s8 + $0x70] sm:$0xff] }
 0xa54   :  { %v6296_v9 = vpack.c.bf16 %v4072_v8, %v4071_v6  ;;  %v4580_v6 = vld [vmem:[%s9207_s11 + $0x10] sm:$0xff] }
 0xa56   :  { %6257 = vmatpush1.bf16.msra.mxu1 %v6256_v16  ;;  %v6299_v16 = vpack.c.bf16 %v4074_v46, %v4073_v12  ;;  %v4582_v46 = vld [vmem:[%s9207_s11 + $0x20] sm:$0xff] }
 0xa57   :  { %6259 = vmatprep.subr.bf16.mxu1 %v6258_v17  ;;  %v4075_v17 = vld [vmem:[%s9204_s8 + $0x90] sm:$0xff] }
 0xa58   :  { %v6302_v10 = vpack.c.bf16 %v4076_v18, %v4075_v17 }
 0xa5a   :  { %6261 = vmatpush1.bf16.msra.mxu1 %v6260_v60  ;;  %v5190_v60 = vld [vmem:[%s9204_s8 + $0xa0] sm:$0xff] }
 0xa5b   :  { %6263 = vmatprep.subr.bf16.mxu1 %v6262_v19  ;;  %v5191_v19 = vld [vmem:[%s9204_s8 + $0xa8] sm:$0xff] }
 0xa5e   :  { %6265 = vmatpush1.bf16.msra.mxu1 %v6264_v25  ;;  %v6305_v25 = vpack.c.bf16 %v5191_v19, %v5190_v60 }
 0xa5f   :  { %6267 = vmatprep.subr.bf16.mxu1 %v6266_v26  ;;  %v5192_v26 = vld [vmem:[%s9204_s8 + $0xb0] sm:$0xff] }
 0xa60   :  { %v6308_v27 = vpack.c.bf16 %v5193_v45, %v5192_v26  ;;  %v5216_v26 = vld [vmem:[%s9205_s9 + $0x70] sm:$0xff]  ;;  %v5217_v45 = vld [vmem:[%s9205_s9 + $0x78] sm:$0xff] }
 0xa62   :  { %6269 = vmatpush1.bf16.msra.mxu1 %v6268_v30  ;;  %v6311_v30 = vpack.c.bf16 %v5195_v29, %v5194_v28  ;;  %v5218_v28 = vld [vmem:[%s9205_s9 + $0x80] sm:$0xff]  ;;  %v5219_v29 = vld [vmem:[%s9205_s9 + $0x88] sm:$0xff] }
 0xa63   :  { %6271 = vmatprep.subr.bf16.mxu1 %v6270_v31  ;;  %v5196_v31 = vld [vmem:[%s9204_s8 + $0xd0] sm:$0xff] }
 0xa64   :  { %v6314_v33 = vpack.c.bf16 %v5197_v32, %v5196_v31  ;;  %v5220_v31 = vld [vmem:[%s9205_s9 + $0x90] sm:$0xff]  ;;  %v5221_v32 = vld [vmem:[%s9205_s9 + $0x98] sm:$0xff] }
 0xa66   :  { %6273 = vmatpush1.bf16.msra.mxu1 %v6272_v13  ;;  %v5198_v13 = vld [vmem:[%s9204_s8 + $0xe0] sm:$0xff] }
 0xa67   :  { %3844 = vmatprep.subr.mxu1 %v5184_v14  ;;  %v5199_v14 = vld [vmem:[%s9204_s8 + $0xe8] sm:$0xff] }
 0xa6a   :  { %3845 = vmatpush1.msra.mxu1 %v5183_v35  ;;  %v6317_v35 = vpack.c.bf16 %v5199_v14, %v5198_v13  ;;  %v5223_v13 = vld [vmem:[%s9205_s9 + $0xa0] sm:$0xff]  ;;  %v5224_v14 = vld [vmem:[%s9205_s9 + $0xa8] sm:$0xff] }
 0xa6b   :  { %5185 = vmatmul.mubr.msk.f32.vlgmr.msra.gmra.mrb[28].mxu1 %vm1109_vm9, %v8489_v47  ;;  %6394 = vmatprep.subr.bf16.mxu1 %v6516_v23  ;;  %v3905_v47 = vld [vmem:[%s9203_s7] sm:$0xf] }
 0xa6c   :  { %5566 = vmatprep.mubr.msk.f32.mxu1 %vm6517_vm12, %v6514_v7 }
 0xb3e   :  { %v3882_v20 = vpop.f32.mrb[28].mxu1 }
 0xb3f   :  { %v3901_v37 = vadd.f32 %v3894_v34, %v3882_v20  ;;  %v3884_v38 = vpop.f32.mrb[29].mxu1  ;;  %v5201_v34 = vld [vmem:[%s9204_s8 + $0xf8] sm:$0xff]  ;;  %v5202_v20 = vld [vmem:[%s9204_s8 + $0x100] sm:$0xff] }
 0xb40   :  { %v3902_v39 = vadd.f32 %v3898_v36, %v3884_v38  ;;  %v6320_v36 = vpack.c.bf16 %v5201_v34, %v5200_v4  ;;  %v5225_v34 = vld [vmem:[%s9205_s9 + $0xb0] sm:$0xff] }
 0xb41   :  { %v3903_v42 = vmax.f32 %v3901_v37, 0.0  ;;  %v5203_v37 = vld [vmem:[%s9204_s8 + $0x108] sm:$0xff] }
 0xb42   :  { %v3904_v41 = vmax.f32 %v3902_v39, 0.0  ;;  %v6323_v38 = vpack.c.bf16 %v5203_v37, %v5202_v20  ;;  %v5204_v39 = vld [vmem:[%s9204_s8 + $0x110] sm:$0xff]  ;;  %v5227_v37 = vld [vmem:[%s9205_s9 + $0xc0] sm:$0xff] }
 0xb44   :  { %3909 = vmatprep.subr.mxu0 %v3904_v41 }
 0xb45   :  { %3910 = vmatpush1.msra.mxu0 %v3903_v42 }
 0xb46   :  { %5186 = vmatmul.mubr.msk.f32.vlgmr.msra.gmra.mrb[32].mxu0 %vm1600_vm10, %v3905_v47  ;;  %3984 = vmatprep.subr.mxu0 %v3904_v41  ;;  %v5205_v41 = vld [vmem:[%s9204_s8 + $0x118] sm:$0xff]  ;;  %v5206_v47 = vld [vmem:[%s9204_s8 + $0x120] sm:$0xff] }
 0xb47   :  { %3985 = vmatpush1.msra.mxu0 %v3903_v42  ;;  %4048 = vmatprep.mubr.f32.mxu0 %v6514_v7  ;;  %v6326_v42 = vpack.c.bf16 %v5205_v41, %v5204_v39  ;;  %v6329_v11 = vpack.c.bf16 %v5207_v43, %v5206_v47  ;;  %v5229_v41 = vld [vmem:[%s9205_s9 + $0xd0] sm:$0xff]  ;;  %v5231_v43 = vld [vmem:[%s9205_s9 + $0xe0] sm:$0xff] }
 0xb48   :  { %6274 = vmatprep.subr.bf16.mxu0 %v6516_v23 }
 0xb4a   :  { %5188 = vmatmul.mubr.msk.f32.vlgmr.msra.gmra.mrb[34].mxu0 %vm1600_vm10, %v5187_v15  ;;  %v5208_v15 = vld [vmem:[%s9204_s8 + $0x130] sm:$0xff] }
 0xb4b   :  { %6276 = vmatpush1.bf16.msra.mxu0 %v6275_v44  ;;  %v5209_v44 = vld [vmem:[%s9204_s8 + $0x138] sm:$0xff] }
 0xb4c   :  { %6277 = vmatprep.subr.bf16.mxu0 %v6516_v23  ;;  %v6332_v48 = vpack.c.bf16 %v5209_v44, %v5208_v15  ;;  %v5234_v44 = vld [vmem:[%s9205_s9 + $0xf0] sm:$0xff] }
 0xb4f   :  { %6279 = vmatpush1.bf16.msra.mxu0 %v6278_v49  ;;  %v4243_v49 = vld [vmem:[%s9205_s9 + $0x8] sm:$0xff] }
 0xb50   :  { %6280 = vmatprep.subr.bf16.mxu0 %v6516_v23  ;;  %v6335_v51 = vpack.c.bf16 %v4243_v49, %v4242_v3 }
 0xb53   :  { %6282 = vmatpush1.bf16.msra.mxu0 %v6281_v52  ;;  %v4245_v52 = vld [vmem:[%s9205_s9 + $0x18] sm:$0xff] }
 0xb54   :  { %6283 = vmatprep.subr.bf16.mxu0 %v6516_v23  ;;  %v6338_v55 = vpack.c.bf16 %v4245_v52, %v4244_v50  ;;  %v5236_v50 = vld [vmem:[%s9205_s9 + $0x100] sm:$0xff] }
 0xb57   :  { %6285 = vmatpush1.bf16.msra.mxu0 %v6284_v57  ;;  %v4247_v57 = vld [vmem:[%s9205_s9 + $0x28] sm:$0xff] }
 0xb58   :  { %6286 = vmatprep.subr.bf16.mxu0 %v6516_v23  ;;  %v6341_v58 = vpack.c.bf16 %v4247_v57, %v4246_v56  ;;  %v5239_v56 = vld [vmem:[%s9205_s9 + $0x118] sm:$0xff] }
 0xb5b   :  { %6288 = vmatpush1.bf16.msra.mxu0 %v6287_v40  ;;  %v4249_v40 = vld [vmem:[%s9205_s9 + $0x38] sm:$0xff] }
 0xb5c   :  { %6289 = vmatprep.subr.bf16.mxu0 %v6516_v23  ;;  %v6344_v61 = vpack.c.bf16 %v4249_v40, %v4248_v59  ;;  %v5242_v40 = vld [vmem:[%s9205_s9 + $0x130] sm:$0xff] }
 0xb5f   :  { %6291 = vmatpush1.bf16.msra.mxu0 %v6290_v63  ;;  %v4251_v63 = vld [vmem:[%s9205_s9 + $0x48] sm:$0xff] }
 0xb60   :  { %6292 = vmatprep.subr.bf16.mxu0 %v6516_v23  ;;  %v6347_v0 = vpack.c.bf16 %v4251_v63, %v4250_v62 }
 0xb63   :  { %6294 = vmatpush1.bf16.msra.mxu0 %v6293_v2  ;;  %v4579_v2 = vld [vmem:[%s9207_s11 + $0x8] sm:$0xff] }
 0xb64   :  { %6295 = vmatprep.subr.bf16.mxu0 %v6516_v23  ;;  %v6395_v8 = vpack.c.bf16 %v4579_v2, %v4578_v1  ;;  %v4241_v1 = vld [vmem:[%s9206_s10] sm:$0x1] }
 0xb66   :  { %6396 = vmatpush3.bf16.msra.mxu1 %v6395_v8 }
 0xb67   :  { %6297 = vmatpush1.bf16.msra.mxu0 %v6296_v9  ;;  %v4581_v9 = vld [vmem:[%s9207_s11 + $0x18] sm:$0xff]  ;;  %6397 = vmatprep.subr.bf16.mxu1 %v6516_v23 }
 0xb68   :  { %6298 = vmatprep.subr.bf16.mxu0 %v6516_v23  ;;  %v6398_v12 = vpack.c.bf16 %v4581_v9, %v4580_v6 }
 0xb6a   :  { %6399 = vmatpush3.bf16.msra.mxu1 %v6398_v12 }
 0xb6b   :  { %6300 = vmatpush1.bf16.msra.mxu0 %v6299_v16  ;;  %v4583_v16 = vld [vmem:[%s9207_s11 + $0x28] sm:$0xff]  ;;  %6400 = vmatprep.subr.bf16.mxu1 %v6516_v23 }
 0xb6c   :  { %6301 = vmatprep.subr.bf16.mxu0 %v6516_v23  ;;  %v6401_v17 = vpack.c.bf16 %v4583_v16, %v4582_v46 }
 0xb6e   :  { %6402 = vmatpush3.bf16.msra.mxu1 %v6401_v17 }
 0xb6f   :  { %6303 = vmatpush1.bf16.msra.mxu0 %v6302_v10  ;;  %5564 = vmatprep.subr.mxu1 %v6514_v7 }
 0xb70   :  { %6304 = vmatprep.subr.bf16.mxu0 %v6516_v23 }
 0xc19   :  { %v3975_v53 = vpop.f32.mrb[32].mxu0 }
 0xc1a   :  { %v3977_v54 = vpop.f32.mrb[33].mxu0 }
 0xc1d   :  { %v4050_v5 = vpop.f32.mrb[34].mxu0 }
 0xc1e   :  { %v4055_v21 = vmax.f32 %v3975_v53, %v4050_v5  ;;  %v4052_v22 = vpop.f32.mrb[35].mxu0  ;;  %v5212_v53 = vld [vmem:[%s9205_s9 + $0x50] sm:$0xff] }
 0xc1f   :  { %v4056_v24 = vmax.f32 %v3977_v54, %v4052_v22  ;;  %v5213_v54 = vld [vmem:[%s9205_s9 + $0x58] sm:$0xff]  ;;  %v5214_v22 = vld [vmem:[%s9205_s9 + $0x60] sm:$0xff] }
 0xc20   :  { %v6350_v19 = vpack.c.bf16 %v5213_v54, %v5212_v53 }
 0xc21   :  { %5189 = vmatprep.mubr.msk.f32.mxu0 %vm1773_vm11, %v4056_v24 }
 0xc22   :  { %4145 = vmatmul.mubr.f32.vlgmr.msra.gmra.mrb[36].mxu0 %v4055_v21 }
 0xc23   :  { %6306 = vmatpush1.bf16.msra.mxu0 %v6305_v25  ;;  %5210 = vmatprep.mubr.msk.f32.mxu0 %vm1773_vm11, %v4056_v24  ;;  %v5215_v24 = vld [vmem:[%s9205_s9 + $0x68] sm:$0xff] }
 0xc24   :  { %6307 = vmatprep.subr.bf16.mxu0 %v6516_v23  ;;  %v6353_v25 = vpack.c.bf16 %v5215_v24, %v5214_v22 }
 0xc27   :  { %6309 = vmatpush1.bf16.msra.mxu0 %v6308_v27  ;;  %v6356_v27 = vpack.c.bf16 %v5217_v45, %v5216_v26 }
 0xc28   :  { %6310 = vmatprep.subr.bf16.mxu0 %v6516_v23 }
 0xc2b   :  { %6312 = vmatpush1.bf16.msra.mxu0 %v6311_v30  ;;  %v6359_v30 = vpack.c.bf16 %v5219_v29, %v5218_v28 }
 0xc2c   :  { %6313 = vmatprep.subr.bf16.mxu0 %v6516_v23 }
 0xc2f   :  { %6315 = vmatpush1.bf16.msra.mxu0 %v6314_v33  ;;  %v6362_v33 = vpack.c.bf16 %v5221_v32, %v5220_v31 }
 0xc30   :  { %6316 = vmatprep.subr.bf16.mxu0 %v6516_v23 }
 0xc33   :  { %6318 = vmatpush1.bf16.msra.mxu0 %v6317_v35  ;;  %v6365_v35 = vpack.c.bf16 %v5224_v14, %v5223_v13 }
 0xc34   :  { %6319 = vmatprep.subr.bf16.mxu0 %v6516_v23 }
 0xc37   :  { %6321 = vmatpush1.bf16.msra.mxu0 %v6320_v36  ;;  %v5226_v36 = vld [vmem:[%s9205_s9 + $0xb8] sm:$0xff] }
 0xc38   :  { %6322 = vmatprep.subr.bf16.mxu0 %v6516_v23  ;;  %v6368_v20 = vpack.c.bf16 %v5226_v36, %v5225_v34 }
 0xc3b   :  { %6324 = vmatpush1.bf16.msra.mxu0 %v6323_v38  ;;  %v5228_v38 = vld [vmem:[%s9205_s9 + $0xc8] sm:$0xff] }
 0xc3c   :  { %6325 = vmatprep.subr.bf16.mxu0 %v6516_v23  ;;  %v6371_v39 = vpack.c.bf16 %v5228_v38, %v5227_v37 }
 0xc3f   :  { %6327 = vmatpush1.bf16.msra.mxu0 %v6326_v42  ;;  %v5230_v42 = vld [vmem:[%s9205_s9 + $0xd8] sm:$0xff] }
 0xc40   :  { %6328 = vmatprep.subr.bf16.mxu0 %v6516_v23  ;;  %v6374_v47 = vpack.c.bf16 %v5230_v42, %v5229_v41 }
 0xc43   :  { %6330 = vmatpush1.bf16.msra.mxu0 %v6329_v11  ;;  %v5232_v11 = vld [vmem:[%s9205_s9 + $0xe8] sm:$0xff] }
 0xc44   :  { %6331 = vmatprep.subr.bf16.mxu0 %v6516_v23  ;;  %v6377_v15 = vpack.c.bf16 %v5232_v11, %v5231_v43 }
 0xc47   :  { %6333 = vmatpush1.bf16.msra.mxu0 %v6332_v48  ;;  %v5235_v48 = vld [vmem:[%s9205_s9 + $0xf8] sm:$0xff] }
 0xc48   :  { %6334 = vmatprep.subr.bf16.mxu0 %v6516_v23  ;;  %v6380_v3 = vpack.c.bf16 %v5235_v48, %v5234_v44 }
 0xc4a   :  { %4235 = vmatmul.mubr.f32.vlgmr.msra.gmra.mrb[38].mxu0 %v4055_v21 }
 0xc4b   :  { %5480 = vmatprep.mubr.msk.f32.mxu0 %vm6517_vm12, %v6514_v7  ;;  %6336 = vmatpush3.bf16.msra.mxu0 %v6335_v51  ;;  %v5237_v51 = vld [vmem:[%s9205_s9 + $0x108] sm:$0xff] }
 0xc4c   :  { %6337 = vmatprep.subr.bf16.mxu0 %v6516_v23  ;;  %v6383_v52 = vpack.c.bf16 %v5237_v51, %v5236_v50 }
 0xc4f   :  { %6339 = vmatpush3.bf16.msra.mxu0 %v6338_v55  ;;  %v5238_v55 = vld [vmem:[%s9205_s9 + $0x110] sm:$0xff] }
 0xc50   :  { %6340 = vmatprep.subr.bf16.mxu0 %v6516_v23  ;;  %v6386_v57 = vpack.c.bf16 %v5239_v56, %v5238_v55 }
 0xc53   :  { %6342 = vmatpush3.bf16.msra.mxu0 %v6341_v58  ;;  %v5240_v58 = vld [vmem:[%s9205_s9 + $0x120] sm:$0xff] }
 0xc54   :  { %6343 = vmatprep.subr.bf16.mxu0 %v6516_v23 }
 0xc57   :  { %6345 = vmatpush3.bf16.msra.mxu0 %v6344_v61  ;;  %v5243_v61 = vld [vmem:[%s9205_s9 + $0x138] sm:$0xff] }
 0xc58   :  { %6346 = vmatprep.subr.bf16.mxu0 %v6516_v23  ;;  %v6392_v62 = vpack.c.bf16 %v5243_v61, %v5242_v40 }
 0xc5b   :  { %6348 = vmatpush3.bf16.msra.mxu0 %v6347_v0  ;;  %v4584_v0 = vld [vmem:[%s9207_s11 + $0x30] sm:$0x3]  ;;  %s6490_s11 = scalar_lea.vmem %s4670_s17, 32 }
 0xc5c   :  { %6349 = vmatprep.subr.bf16.mxu0 %v6516_v23  ;;  %5565 = vmatpush3.msk.msra.mxu1 %vm2292_vm14, %v4584_v0  ;;  %p6491_p0 = scmp.ne.s32.totalorder %s4670_s17, %s6490_s11  ;;  %p6496_p2 = scmp.lt.s32.totalorder %s6490_s11, %s6490_s11 }
 0xc5e   :  { %p6497_p3 = por %p6496_p2, %p6495_p1 }
 0xc60   :  { %p6498_p4 = pnand %p6497_p3, %p6491_p0 }
 0xcf5   :  { %v4146_v18 = vpop.f32.mrb[36].mxu0 }
 0xcf6   :  { %v4148_v10 = vpop.f32.mrb[37].mxu0 }
 0xd1d   :  { %v4236_v60 = vpop.f32.mrb[38].mxu0 }
 0xd1e   :  { %v9058_v5 = vmax.f32 %v4146_v18, %v4236_v60  ;;  %v4238_v21 = vpop.f32.mrb[39].mxu0 }
 0xd20   :  { %5481 = vmatmul.mubr.msk.f32.vlgmr.msra.gmra.mrb[40].mxu0 %vm1950_vm13, %v9058_v5  ;;  %v4336_v4 = vrot.slane %v9058_v5, 1  ;;  %v4420_v49 = vrot.slane %v9058_v5, 2  ;;  %v4504_v63 = vrot.slane %v9058_v5, 3 }
 0xd21   :  { %6351 = vmatpush3.bf16.msra.mxu0 %v6350_v19  ;;  %5503 = vmatprep.mubr.msk.f32.mxu0 %vm6517_vm12, %v6514_v7 }
 0xd22   :  { %6352 = vmatprep.subr.bf16.mxu0 %v6516_v23 }
 0xd25   :  { %6354 = vmatpush3.bf16.msra.mxu0 %v6353_v25 }
 0xd26   :  { %6355 = vmatprep.subr.bf16.mxu0 %v6516_v23 }
 0xd29   :  { %6357 = vmatpush3.bf16.msra.mxu0 %v6356_v27 }
 0xd2a   :  { %6358 = vmatprep.subr.bf16.mxu0 %v6516_v23 }
 0xd2d   :  { %6360 = vmatpush3.bf16.msra.mxu0 %v6359_v30 }
 0xd2e   :  { %6361 = vmatprep.subr.bf16.mxu0 %v6516_v23 }
 0xd31   :  { %6363 = vmatpush3.bf16.msra.mxu0 %v6362_v33 }
 0xd32   :  { %6364 = vmatprep.subr.bf16.mxu0 %v6516_v23 }
 0xd34   :  { %5504 = vmatmul.mubr.msk.f32.vlgmr.msra.gmra.mrb[40].mxu0 %vm1950_vm13, %v4336_v4 }
 0xd35   :  { %6366 = vmatpush3.bf16.msra.mxu0 %v6365_v35  ;;  %5526 = vmatprep.mubr.msk.f32.mxu0 %vm6517_vm12, %v6514_v7 }
 0xd36   :  { %6367 = vmatprep.subr.bf16.mxu0 %v6516_v23 }
 0xd39   :  { %6369 = vmatpush3.bf16.msra.mxu0 %v6368_v20 }
 0xd3a   :  { %6370 = vmatprep.subr.bf16.mxu0 %v6516_v23 }
 0xd3d   :  { %6372 = vmatpush3.bf16.msra.mxu0 %v6371_v39 }
 0xd3e   :  { %6373 = vmatprep.subr.bf16.mxu0 %v6516_v23 }
 0xd41   :  { %6375 = vmatpush3.bf16.msra.mxu0 %v6374_v47 }
 0xd42   :  { %6376 = vmatprep.subr.bf16.mxu0 %v6516_v23 }
 0xd45   :  { %6378 = vmatpush3.bf16.msra.mxu0 %v6377_v15 }
 0xd46   :  { %6379 = vmatprep.subr.bf16.mxu0 %v6516_v23 }
 0xd48   :  { %5527 = vmatmul.mubr.msk.f32.vlgmr.msra.gmra.mrb[40].mxu0 %vm1950_vm13, %v4420_v49 }
 0xd49   :  { %6381 = vmatpush3.bf16.msra.mxu0 %v6380_v3  ;;  %5549 = vmatprep.mubr.msk.f32.mxu0 %vm6517_vm12, %v6514_v7  ;;  %v5241_v7 = vld [vmem:[%s9205_s9 + $0x128] sm:$0xff] }
 0xd4a   :  { %6382 = vmatprep.subr.bf16.mxu0 %v6516_v23  ;;  %v6389_v59 = vpack.c.bf16 %v5241_v7, %v5240_v58 }
 0xd4d   :  { %6384 = vmatpush3.bf16.msra.mxu0 %v6383_v52 }
 0xd4e   :  { %6385 = vmatprep.subr.bf16.mxu0 %v6516_v23 }
 0xd51   :  { %6387 = vmatpush3.bf16.msra.mxu0 %v6386_v57 }
 0xd52   :  { %6388 = vmatprep.subr.bf16.mxu0 %v6516_v23 }
 0xd55   :  { %6390 = vmatpush3.bf16.msra.mxu0 %v6389_v59 }
 0xd56   :  { %6391 = vmatprep.subr.bf16.mxu0 %v6516_v23  ;;  %v4585_v23 = vld [vmem:[%s9208_s12] sm:$0x1] }
 0xd59   :  { %6393 = vmatpush3.bf16.msra.mxu0 %v6392_v62 }
 0xd5c   :  { %5550 = vmatmul.mubr.msk.f32.vlgmr.msra.gmra.mrb[40].mxu0 %vm1950_vm13, %v4504_v63 }
 0xe2f   :  { %v4573_v2 = vpop.f32.mrb[40].mxu0 }
 0xe30   :  { %v6410_v6 = vadd.f32 %v4573_v2, %v4241_v1  ;;  %v5551_v8 = vpop.f32.mrb[41].mxu0 }
 0xe32   :  { %5567 = vmatmul.mubr.msk.f32.vlgmr.msra.gmra.mrb[30].mxu1 %vm2288_vm15, %v6410_v6 }
 0xf05   :  { %v4658_v9 = vpop.f32.mrb[30].mxu1 }
 0xf06   :  { %v4659_v12 = vadd.f32 %v4658_v9, %v4585_v23  ;;  %v5568_v46 = vpop.f32.mrb[31].mxu1 }
 0xf08   :  { %4662 = vst.msk [vmem:[#allocation2 + $0x1] sm:$0x1] %vm2366_vm1, %v4659_v12 }
 0xf09   :  { %6501 = shalt.err (!%p6498_p4)
}
 0xf0a   :  { %s6502_s18 = scalar_lea.hbm %s9209_s13, 32 }
 0xf0b   :  { %p6503_p5 = scmp.ne.s32.totalorder %s9209_s13, %s6502_s18  ;;  %p6506_p6 = scmp.lt.u32.totalorder %s6502_s18, %s9209_s13 }
 0xf0d   :  { %p6508_p7 = pnand %p6506_p6, %p6503_p5 }
 0xf0f   :  { %6511 = shalt.err (!%p6508_p7)
}
 0xf10   :  { %4672 = dma.vmem_to_hbm [thread:$0]  %s4670_s17, 32, %s9209_s13, [#allocation3]  }
 0xf11   :  { %6512 = dma.done.wait [#allocation3], 32  }
 0xf12   :  { %6513 = vsyncadd [#allocation3], 4294967264 }
 0xf13   :  { %4676 = vsyncpa [#allocation3], 1 }

</bundles_post_ra>
